<compile_context>
chip_gen: v5e
topology: v5e:2x2
jax: 0.10.0
libtpu: 0.0.40
codegen_flags: <defaults>
</compile_context>

<pallas_src>
import functools

import jax
import jax.numpy as jnp
import numpy as np
from jax.experimental import pallas as pl
from jax.experimental.pallas import tpu as pltpu


# ------------------------------ fused kernel ---------------------------------

def _sepconv_kernel(x_ref, w1_ref, c1_ref, w2_ref, c2_ref, o_ref, *,
                    kernel_size, stride, pad, ho1, wo1):
    """One image per grid step.

    x_ref  : (stride*stride, Hh, Wh, C_in)  phase-split, zero-padded input
    w1_ref : (K*K*C_in,  C_out)  combined depthwise x pointwise x BN1 weight
    c1_ref : (1, C_out)          folded biases + BN1 shift (f32)
    w2_ref : (K*K*C_out, C_out)  combined depthwise x pointwise x BN2 weight
    c2_ref : (1, C_out)          folded biases + BN2 shift (f32)
    o_ref  : (1, Ho2, Wo2, C_out)
    """
    K, s, p = kernel_size, stride, pad
    c_in = x_ref.shape[-1]
    _, ho2, wo2, c_out = o_ref.shape

    # ---- block 1: relu (once) -> depthwise+pointwise+BN as ONE MXU matmul.
    x_relu = jnp.maximum(x_ref[...], 0.0)          # relu once, not per window
    taps = []
    for kh in range(K):
        for kw in range(K):
            ph = (kh % s) * s + (kw % s)           # phase of the split input
            r0, q0 = kh // s, kw // s
            taps.append(x_relu[ph, r0:r0 + ho1, q0:q0 + wo1, :])
    # (ho1, wo1, K*K*c_in) -> (ho1*wo1, K*K*c_in) is layout-trivial (wo1 % 8 == 0)
    cols1 = jnp.concatenate(taps, axis=-1).reshape(ho1 * wo1, K * K * c_in)
    y1 = jnp.dot(cols1.astype(w1_ref.dtype), w1_ref[...],
                 preferred_element_type=jnp.float32) + c1_ref[...]

    # Block-2 leading ReLU applied once here; zero halo built by concatenation
    # in registers (relu(0) == 0, so pad-after-relu == relu-after-pad).
    y1r = jnp.maximum(y1, 0.0).reshape(ho1, wo1, c_out)
    if p > 0:
        zc = jnp.zeros((ho1, p, c_out), y1r.dtype)
        y1p = jnp.concatenate([zc, y1r, zc], axis=1)
        zr = jnp.zeros((p, wo1 + 2 * p, c_out), y1r.dtype)
        y1p = jnp.concatenate([zr, y1p, zr], axis=0)
    else:
        y1p = y1r

    # ---- block 2: second fused matmul (stride 1).
    taps = []
    for kh in range(K):
        for kw in range(K):
            taps.append(y1p[kh:kh + ho2, kw:kw + wo2, :])
    cols2 = jnp.concatenate(taps, axis=-1).reshape(ho2 * wo2, K * K * c_out)
    y2 = jnp.dot(cols2.astype(w2_ref.dtype), w2_ref[...],
                 preferred_element_type=jnp.float32) + c2_ref[...]

    o_ref[0] = y2.reshape(ho2, wo2, c_out).astype(o_ref.dtype)


# --------------------------------- wrapper ------------------------------------

@functools.partial(jax.jit,
                   static_argnames=("kernel_size", "stride", "compute_dtype"))
def sepconv_forward(params, x, *, kernel_size, stride=1,
                    compute_dtype=jnp.float32):
    """x: NCHW float32 (PyTorch convention). Returns NCHW float32.

    compute_dtype controls the HBM/MXU dtype of activations + combined
    weights (f32 or bf16).  Biases/shifts and accumulation stay f32.
    Dropout2d is treated as identity (inference).  # TODO(synk): see header.
    """
    N, C_in, H, W = x.shape
    K = kernel_size
    p = (K - 1) // 2
    s = stride
    C_out = params["pw1_w"].shape[1]

    # conv output sizes (PyTorch formula)
    Ho1 = (H + 2 * p - K) // s + 1
    Wo1 = (W + 2 * p - K) // s + 1
    Ho2 = Ho1 + 2 * p - K + 1
    Wo2 = Wo1 + 2 * p - K + 1

    # ---- fold depthwise weight, conv biases and BatchNorm (eps=1e-3, running
    #      stats) into one im2col weight and one per-channel shift per block.
    eps = 1e-3

    def fold(dw_w, dw_b, pw_w, pw_b, gamma, beta, mean, var):
        scale = gamma * jax.lax.rsqrt(var + eps)
        shift = beta - mean * scale
        w = dw_w[:, :, :, None] * (pw_w * scale[None, :])[None, None, :, :]
        w = w.reshape(-1, pw_w.shape[1])                   # (K*K*C, C_out)
        c = (dw_b @ pw_w + pw_b) * scale + shift           # (C_out,)
        return w.astype(compute_dtype), c.reshape(1, -1).astype(jnp.float32)

    w1c, c1 = fold(params["dw1_w"], params["dw1_b"], params["pw1_w"],
                   params["pw1_b"], params["bn1_gamma"], params["bn1_beta"],
                   params["bn1_mean"], params["bn1_var"])
    w2c, c2 = fold(params["dw2_w"], params["dw2_b"], params["pw2_w"],
                   params["pw2_b"], params["bn2_gamma"], params["bn2_beta"],
                   params["bn2_mean"], params["bn2_var"])

    # ---- NCHW -> NHWC, spatial zero pad, phase split for the strided
    #      depthwise conv (kernel then only does unit-stride static slices).
    xh = jnp.transpose(x, (0, 2, 3, 1))
    Hp = -(-(H + 2 * p) // s) * s
    Wp = -(-(W + 2 * p) // s) * s
    xpad = jnp.pad(xh, ((0, 0), (p, Hp - H - p), (p, Wp - W - p), (0, 0)))
    Hh, Wh = Hp // s, Wp // s
    xph = (xpad.reshape(N, Hh, s, Wh, s, C_in)
               .transpose(0, 2, 4, 1, 3, 5)
               .reshape(N * s * s, Hh, Wh, C_in)).astype(compute_dtype)

    kern = functools.partial(_sepconv_kernel, kernel_size=K, stride=s, pad=p,
                             ho1=Ho1, wo1=Wo1)
    out = pl.pallas_call(
        kern,
        out_shape=jax.ShapeDtypeStruct((N, Ho2, Wo2, C_out), jnp.float32),
        grid_spec=pltpu.PrefetchScalarGridSpec(
            num_scalar_prefetch=0,
            grid=(N,),
            in_specs=[
                pl.BlockSpec((s * s, Hh, Wh, C_in), lambda n: (n, 0, 0, 0)),
                pl.BlockSpec((K * K * C_in, C_out), lambda n: (0, 0)),
                pl.BlockSpec((1, C_out), lambda n: (0, 0)),
                pl.BlockSpec((K * K * C_out, C_out), lambda n: (0, 0)),
                pl.BlockSpec((1, C_out), lambda n: (0, 0)),
            ],
            out_specs=pl.BlockSpec((1, Ho2, Wo2, C_out),
                                   lambda n: (n, 0, 0, 0)),
        ),
        compiler_params=pltpu.CompilerParams(
            dimension_semantics=("parallel",),
            vmem_limit_bytes=32 * 1024 * 1024),
    )(xph, w1c, c1, w2c, c2)

    # NHWC -> NCHW
    return jnp.transpose(out, (0, 3, 1, 2))


# ------------------------------ parameter init --------------------------------

def init_params(key, c_in, num_filters, kernel_size):
    C_out = num_filters
    K = kernel_size
    ks = jax.random.split(key, 16)

    def rnd(k, shape, scale=0.1):
        return jax.random.normal(k, shape, jnp.float32) * scale

    return dict(
        dw1_w=rnd(ks[0], (K, K, c_in)),        # depthwise conv 1 (K,K,C)
        dw1_b=rnd(ks[1], (c_in,)),
        pw1_w=rnd(ks[2], (c_in, C_out)),       # pointwise conv 1 (C_in,C_out)
        pw1_b=rnd(ks[3], (C_out,)),
        bn1_gamma=1.0 + rnd(ks[4], (C_out,)),
        bn1_beta=rnd(ks[5], (C_out,)),
        bn1_mean=rnd(ks[6], (C_out,)),
        bn1_var=jnp.abs(rnd(ks[7], (C_out,))) + 0.5,
        dw2_w=rnd(ks[8], (K, K, C_out)),       # depthwise conv 2
        dw2_b=rnd(ks[9], (C_out,)),
        pw2_w=rnd(ks[10], (C_out, C_out)),     # pointwise conv 2
        pw2_b=rnd(ks[11], (C_out,)),
        bn2_gamma=1.0 + rnd(ks[12], (C_out,)),
        bn2_beta=rnd(ks[13], (C_out,)),
        bn2_mean=rnd(ks[14], (C_out,)),
        bn2_var=jnp.abs(rnd(ks[15], (C_out,))) + 0.5,
    )


# ----------------------------- pure-JAX reference ------------------------------

def sepconv_ref(params, x, *, kernel_size, stride=1):
    """Independent reference (inference-mode BN, dropout = identity)."""
    K = kernel_size
    p = (K - 1) // 2
    eps = 1e-3
    hi = jax.lax.Precision.HIGHEST

    def sep_block(a, dw_w, dw_b, pw_w, pw_b, gamma, beta, mean, var, s):
        a = jnp.maximum(a, 0.0)
        C = a.shape[1]
        rhs = jnp.transpose(dw_w, (2, 0, 1))[:, None, :, :]      # (C,1,K,K)
        d = jax.lax.conv_general_dilated(
            a, rhs, window_strides=(s, s), padding=((p, p), (p, p)),
            dimension_numbers=("NCHW", "OIHW", "NCHW"),
            feature_group_count=C, precision=hi)
        d = d + dw_b[None, :, None, None]
        y = jnp.einsum("nchw,cf->nfhw", d, pw_w, precision=hi) \
            + pw_b[None, :, None, None]
        scale = gamma / jnp.sqrt(var + eps)
        shift = beta - mean * scale
        return y * scale[None, :, None, None] + shift[None, :, None, None]

    h = sep_block(x, params["dw1_w"], params["dw1_b"], params["pw1_w"],
                  params["pw1_b"], params["bn1_gamma"], params["bn1_beta"],
                  params["bn1_mean"], params["bn1_var"], stride)
    h = sep_block(h, params["dw2_w"], params["dw2_b"], params["pw2_w"],
                  params["pw2_b"], params["bn2_gamma"], params["bn2_beta"],
                  params["bn2_mean"], params["bn2_var"], 1)
    return h


# ----------------------------------- main --------------------------------------

if __name__ == "__main__":
    key = jax.random.PRNGKey(0)
    k_param, k_x = jax.random.split(key)

    N, C_in, H, W = 2, 4, 16, 16
    num_filters, K = 8, 3

    params = init_params(k_param, C_in, num_filters, K)
    x = jax.random.normal(k_x, (N, C_in, H, W), jnp.float32)

    # stride=1 (normal cell; module default), f32 path
    out1 = sepconv_forward(params, x, kernel_size=K, stride=1)
    jax.block_until_ready(out1)
    ref1 = sepconv_ref(params, x, kernel_size=K, stride=1)
    np.testing.assert_allclose(np.asarray(out1), np.asarray(ref1),
                               rtol=2e-4, atol=2e-5)
    assert out1.shape == (N, num_filters, H, W)

    # stride=2 (reduction cell), f32 path
    out2 = sepconv_forward(params, x, kernel_size=K, stride=2)
    jax.block_until_ready(out2)
    ref2 = sepconv_ref(params, x, kernel_size=K, stride=2)
    np.testing.assert_allclose(np.asarray(out2), np.asarray(ref2),
                               rtol=2e-4, atol=2e-5)
    assert out2.shape == (N, num_filters, H // 2, W // 2)

    # bf16 storage/MXU path (v6e/v7x feedback); accumulation stays f32.
    out3 = sepconv_forward(params, x, kernel_size=K, stride=1,
                           compute_dtype=jnp.bfloat16)
    jax.block_until_ready(out3)
    np.testing.assert_allclose(np.asarray(out3), np.asarray(ref1),
                               rtol=5e-2, atol=5e-2)
    assert out3.shape == (N, num_filters, H, W)

    print("KERNEL_OK")
</pallas_src>

<mosaic_0001>
module attributes {stable_mosaic.version = 11 : i64} {
  func.func @_sepconv_kernel(%arg0: i32, %arg1: memref<1x18x18x4xf32, #tpu.memory_space<vmem>>, %arg2: memref<36x8xf32, #tpu.memory_space<vmem>>, %arg3: memref<1x8xf32, #tpu.memory_space<vmem>>, %arg4: memref<72x8xf32, #tpu.memory_space<vmem>>, %arg5: memref<1x8xf32, #tpu.memory_space<vmem>>, %arg6: memref<1x16x16x8xf32, #tpu.memory_space<vmem>>) attributes {dimension_semantics = [#tpu.dimension_semantics<parallel>], iteration_bounds = array<i64: 2>, scalar_prefetch = 0 : i64, scratch_operands = 0 : i64, tpu.core_type = #tpu.core_type<tc>, window_params = [{transform_indices = @transform_0, window_bounds = array<i64: 1, 18, 18, 4>}, {pipeline_mode = #tpu.pipeline_mode<synchronous>, transform_indices = @transform_1, window_bounds = array<i64: 36, 8>}, {pipeline_mode = #tpu.pipeline_mode<synchronous>, transform_indices = @transform_2, window_bounds = array<i64: 1, 8>}, {pipeline_mode = #tpu.pipeline_mode<synchronous>, transform_indices = @transform_3, window_bounds = array<i64: 72, 8>}, {pipeline_mode = #tpu.pipeline_mode<synchronous>, transform_indices = @transform_4, window_bounds = array<i64: 1, 8>}, {transform_indices = @transform_5, window_bounds = array<i64: 1, 16, 16, 8>}]} {
    %c0 = arith.constant 0 : index
    %c0_0 = arith.constant 0 : index
    %c0_1 = arith.constant 0 : index
    %c0_2 = arith.constant 0 : index
    %0 = vector.load %arg1[%c0, %c0_0, %c0_1, %c0_2] : memref<1x18x18x4xf32, #tpu.memory_space<vmem>>, vector<1x18x18x4xf32>
    %cst = arith.constant 0.000000e+00 : f32
    %1 = vector.broadcast %cst : f32 to vector<1x18x18x4xf32>
    %2 = arith.maximumf %0, %1 : vector<1x18x18x4xf32>
    %3 = vector.extract_strided_slice %2 {offsets = [0, 0, 0, 0], sizes = [1, 16, 16, 4], strides = [1, 1, 1, 1]} : vector<1x18x18x4xf32> to vector<1x16x16x4xf32>
    %4 = vector.shape_cast %3 : vector<1x16x16x4xf32> to vector<16x16x4xf32>
    %5 = vector.extract_strided_slice %2 {offsets = [0, 0, 1, 0], sizes = [1, 16, 16, 4], strides = [1, 1, 1, 1]} : vector<1x18x18x4xf32> to vector<1x16x16x4xf32>
    %6 = vector.shape_cast %5 : vector<1x16x16x4xf32> to vector<16x16x4xf32>
    %7 = vector.extract_strided_slice %2 {offsets = [0, 0, 2, 0], sizes = [1, 16, 16, 4], strides = [1, 1, 1, 1]} : vector<1x18x18x4xf32> to vector<1x16x16x4xf32>
    %8 = vector.shape_cast %7 : vector<1x16x16x4xf32> to vector<16x16x4xf32>
    %9 = vector.extract_strided_slice %2 {offsets = [0, 1, 0, 0], sizes = [1, 16, 16, 4], strides = [1, 1, 1, 1]} : vector<1x18x18x4xf32> to vector<1x16x16x4xf32>
    %10 = vector.shape_cast %9 : vector<1x16x16x4xf32> to vector<16x16x4xf32>
    %11 = vector.extract_strided_slice %2 {offsets = [0, 1, 1, 0], sizes = [1, 16, 16, 4], strides = [1, 1, 1, 1]} : vector<1x18x18x4xf32> to vector<1x16x16x4xf32>
    %12 = vector.shape_cast %11 : vector<1x16x16x4xf32> to vector<16x16x4xf32>
    %13 = vector.extract_strided_slice %2 {offsets = [0, 1, 2, 0], sizes = [1, 16, 16, 4], strides = [1, 1, 1, 1]} : vector<1x18x18x4xf32> to vector<1x16x16x4xf32>
    %14 = vector.shape_cast %13 : vector<1x16x16x4xf32> to vector<16x16x4xf32>
    %15 = vector.extract_strided_slice %2 {offsets = [0, 2, 0, 0], sizes = [1, 16, 16, 4], strides = [1, 1, 1, 1]} : vector<1x18x18x4xf32> to vector<1x16x16x4xf32>
    %16 = vector.shape_cast %15 : vector<1x16x16x4xf32> to vector<16x16x4xf32>
    %17 = vector.extract_strided_slice %2 {offsets = [0, 2, 1, 0], sizes = [1, 16, 16, 4], strides = [1, 1, 1, 1]} : vector<1x18x18x4xf32> to vector<1x16x16x4xf32>
    %18 = vector.shape_cast %17 : vector<1x16x16x4xf32> to vector<16x16x4xf32>
    %19 = vector.extract_strided_slice %2 {offsets = [0, 2, 2, 0], sizes = [1, 16, 16, 4], strides = [1, 1, 1, 1]} : vector<1x18x18x4xf32> to vector<1x16x16x4xf32>
    %20 = vector.shape_cast %19 : vector<1x16x16x4xf32> to vector<16x16x4xf32>
    %21 = tpu.concatenate %4, %6, %8, %10, %12, %14, %16, %18, %20 in 2 : vector<16x16x4xf32>, vector<16x16x4xf32>, vector<16x16x4xf32>, vector<16x16x4xf32>, vector<16x16x4xf32>, vector<16x16x4xf32>, vector<16x16x4xf32>, vector<16x16x4xf32>, vector<16x16x4xf32> -> vector<16x16x36xf32>
    %22 = vector.shape_cast %21 : vector<16x16x36xf32> to vector<256x36xf32>
    %c0_3 = arith.constant 0 : index
    %c0_4 = arith.constant 0 : index
    %23 = vector.load %arg2[%c0_3, %c0_4] : memref<36x8xf32, #tpu.memory_space<vmem>>, vector<36x8xf32>
    %cst_5 = arith.constant dense<0.000000e+00> : vector<256x8xf32>
    %24 = tpu.matmul %22, %23, %cst_5 {dimension_numbers = #tpu.dot_dimension_numbers<[1], [0], [0], [1], [0, 0, 1, 1], [], []>} : vector<256x36xf32>, vector<36x8xf32>, vector<256x8xf32> -> vector<256x8xf32>
    %c0_6 = arith.constant 0 : index
    %c0_7 = arith.constant 0 : index
    %25 = vector.load %arg3[%c0_6, %c0_7] : memref<1x8xf32, #tpu.memory_space<vmem>>, vector<1x8xf32>
    %26 = vector.broadcast %25 : vector<1x8xf32> to vector<256x8xf32>
    %27 = arith.addf %24, %26 : vector<256x8xf32>
    %cst_8 = arith.constant 0.000000e+00 : f32
    %28 = vector.broadcast %cst_8 : f32 to vector<256x8xf32>
    %29 = arith.maximumf %27, %28 : vector<256x8xf32>
    %30 = vector.shape_cast %29 : vector<256x8xf32> to vector<16x16x8xf32>
    %cst_9 = arith.constant 0.000000e+00 : f32
    %31 = vector.broadcast %cst_9 : f32 to vector<16x1x8xf32>
    %32 = tpu.concatenate %31, %30, %31 in 1 : vector<16x1x8xf32>, vector<16x16x8xf32>, vector<16x1x8xf32> -> vector<16x18x8xf32>
    %cst_10 = arith.constant 0.000000e+00 : f32
    %33 = vector.broadcast %cst_10 : f32 to vector<1x18x8xf32>
    %34 = tpu.concatenate %33, %32, %33 in 0 : vector<1x18x8xf32>, vector<16x18x8xf32>, vector<1x18x8xf32> -> vector<18x18x8xf32>
    %35 = vector.extract_strided_slice %34 {offsets = [0, 0, 0], sizes = [16, 16, 8], strides = [1, 1, 1]} : vector<18x18x8xf32> to vector<16x16x8xf32>
    %36 = vector.extract_strided_slice %34 {offsets = [0, 1, 0], sizes = [16, 16, 8], strides = [1, 1, 1]} : vector<18x18x8xf32> to vector<16x16x8xf32>
    %37 = vector.extract_strided_slice %34 {offsets = [0, 2, 0], sizes = [16, 16, 8], strides = [1, 1, 1]} : vector<18x18x8xf32> to vector<16x16x8xf32>
    %38 = vector.extract_strided_slice %34 {offsets = [1, 0, 0], sizes = [16, 16, 8], strides = [1, 1, 1]} : vector<18x18x8xf32> to vector<16x16x8xf32>
    %39 = vector.extract_strided_slice %34 {offsets = [1, 1, 0], sizes = [16, 16, 8], strides = [1, 1, 1]} : vector<18x18x8xf32> to vector<16x16x8xf32>
    %40 = vector.extract_strided_slice %34 {offsets = [1, 2, 0], sizes = [16, 16, 8], strides = [1, 1, 1]} : vector<18x18x8xf32> to vector<16x16x8xf32>
    %41 = vector.extract_strided_slice %34 {offsets = [2, 0, 0], sizes = [16, 16, 8], strides = [1, 1, 1]} : vector<18x18x8xf32> to vector<16x16x8xf32>
    %42 = vector.extract_strided_slice %34 {offsets = [2, 1, 0], sizes = [16, 16, 8], strides = [1, 1, 1]} : vector<18x18x8xf32> to vector<16x16x8xf32>
    %43 = vector.extract_strided_slice %34 {offsets = [2, 2, 0], sizes = [16, 16, 8], strides = [1, 1, 1]} : vector<18x18x8xf32> to vector<16x16x8xf32>
    %44 = tpu.concatenate %35, %36, %37, %38, %39, %40, %41, %42, %43 in 2 : vector<16x16x8xf32>, vector<16x16x8xf32>, vector<16x16x8xf32>, vector<16x16x8xf32>, vector<16x16x8xf32>, vector<16x16x8xf32>, vector<16x16x8xf32>, vector<16x16x8xf32>, vector<16x16x8xf32> -> vector<16x16x72xf32>
    %45 = vector.shape_cast %44 : vector<16x16x72xf32> to vector<256x72xf32>
    %c0_11 = arith.constant 0 : index
    %c0_12 = arith.constant 0 : index
    %46 = vector.load %arg4[%c0_11, %c0_12] : memref<72x8xf32, #tpu.memory_space<vmem>>, vector<72x8xf32>
    %cst_13 = arith.constant dense<0.000000e+00> : vector<256x8xf32>
    %47 = tpu.matmul %45, %46, %cst_13 {dimension_numbers = #tpu.dot_dimension_numbers<[1], [0], [0], [1], [0, 0, 1, 1], [], []>} : vector<256x72xf32>, vector<72x8xf32>, vector<256x8xf32> -> vector<256x8xf32>
    %c0_14 = arith.constant 0 : index
    %c0_15 = arith.constant 0 : index
    %48 = vector.load %arg5[%c0_14, %c0_15] : memref<1x8xf32, #tpu.memory_space<vmem>>, vector<1x8xf32>
    %49 = vector.broadcast %48 : vector<1x8xf32> to vector<256x8xf32>
    %50 = arith.addf %47, %49 : vector<256x8xf32>
    %51 = vector.shape_cast %50 : vector<256x8xf32> to vector<16x16x8xf32>
    %c0_16 = arith.constant 0 : index
    %c0_17 = arith.constant 0 : index
    %c0_18 = arith.constant 0 : index
    %c0_19 = arith.constant 0 : index
    %52 = vector.load %arg6[%c0_16, %c0_17, %c0_18, %c0_19] : memref<1x16x16x8xf32, #tpu.memory_space<vmem>>, vector<1x16x16x8xf32>
    %53 = vector.shape_cast %52 : vector<1x16x16x8xf32> to vector<16x16x8xf32>
    %54 = vector.shape_cast %51 : vector<16x16x8xf32> to vector<1x16x16x8xf32>
    tpu.vector_store %arg6[%c0_16, %c0_17, %c0_18, %c0_19], %54 {strides = array<i32>} : memref<1x16x16x8xf32, #tpu.memory_space<vmem>>, vector<1x16x16x8xf32>,
    return
  }
  func.func @transform_0(%arg0: i32) -> (i32, i32, i32, i32) {
    %c0_i32 = arith.constant 0 : i32
    %c0_i32_0 = arith.constant 0 : i32
    %c0_i32_1 = arith.constant 0 : i32
    %c0_i32_2 = arith.constant 0 : i32
    return %arg0, %c0_i32, %c0_i32_0, %c0_i32_1 : i32, i32, i32, i32
  }
  func.func @transform_1(%arg0: i32) -> (i32, i32) {
    %c0_i32 = arith.constant 0 : i32
    %c0_i32_0 = arith.constant 0 : i32
    %c0_i32_1 = arith.constant 0 : i32
    return %c0_i32, %c0_i32_0 : i32, i32
  }
  func.func @transform_2(%arg0: i32) -> (i32, i32) {
    %c0_i32 = arith.constant 0 : i32
    %c0_i32_0 = arith.constant 0 : i32
    %c0_i32_1 = arith.constant 0 : i32
    return %c0_i32, %c0_i32_0 : i32, i32
  }
  func.func @transform_3(%arg0: i32) -> (i32, i32) {
    %c0_i32 = arith.constant 0 : i32
    %c0_i32_0 = arith.constant 0 : i32
    %c0_i32_1 = arith.constant 0 : i32
    return %c0_i32, %c0_i32_0 : i32, i32
  }
  func.func @transform_4(%arg0: i32) -> (i32, i32) {
    %c0_i32 = arith.constant 0 : i32
    %c0_i32_0 = arith.constant 0 : i32
    %c0_i32_1 = arith.constant 0 : i32
    return %c0_i32, %c0_i32_0 : i32, i32
  }
  func.func @transform_5(%arg0: i32) -> (i32, i32, i32, i32) {
    %c0_i32 = arith.constant 0 : i32
    %c0_i32_0 = arith.constant 0 : i32
    %c0_i32_1 = arith.constant 0 : i32
    %c0_i32_2 = arith.constant 0 : i32
    return %arg0, %c0_i32, %c0_i32_0, %c0_i32_1 : i32, i32, i32, i32
  }
}

</mosaic_0001>

<bundles_post_ra>
// kernel: sepconv_forward.1
= control target key start
LH: loop header
LB: loop body
LE: loop exit
PB: predicated region body
PF: predicated region fallthrough
CT: control target
= control target key end

     0   :  { %s3699_s18 = smov 0   ;;  %s7674_s0 = inlined_call_operand.vmem [shape: f32[2,18,18,4], index: 0, kind: input, shape index: {}]   ;;  %s7675_s1 = inlined_call_operand.vmem [shape: f32[36,8], index: 1, kind: input, shape index: {}]   ;;  %s7676_s2 = inlined_call_operand.vmem [shape: f32[1,8], index: 2, kind: input, shape index: {}]   ;;  %s7677_s3 = inlined_call_operand.vmem [shape: f32[72,8], index: 3, kind: input, shape index: {}]   ;;  %s7678_s4 = inlined_call_operand.vmem [shape: f32[1,8], index: 4, kind: input, shape index: {}]   ;;  %s7679_s5 = inlined_call_operand.vmem [shape: f32[2,16,16,8], index: 5, kind: output, shape index: {}]  }
   0x1 LB: > { %s3534_s19 = sadd.s32 4294967295, %s3654_s18   ;;  %p3538_p0 = scmp.ge.s32.totalorder %s3654_s18, 1  ;;  %s3654_s18 = sphi %s3699_s18, %s15_s18  }
   0x2   : > { %p187_p1 = scmp.lt.s32.totalorder %s3654_s18, 3 }
   0x4   : > { %p188_p2 = pnand %p3538_p0, %p187_p1 }
   0x6   : > { %191 = sbr.rel (%p188_p2) target bundleno = 1859 (0x743), region = 40 }
   0xb   : > { %p215_p3 = scmp.lt.s32.totalorder %s3534_s19, 1  ;;  %vm381_vm0 = vcmask 1046528   ;;  %s3656_s24 = smov 4   ;;  %vm558_vm1 = vcmask 1045504   ;;  %vm1707_vm2 = vcmask 1043456   ;;  %vm1337_vm3 = vcmask 31744  }
   0xc   : > { %s3657_s25 = smov 8   ;;  %s3658_s26 = smov 12   ;;  %vm1370_vm4 = vcmask 64512   ;;  %vm1403_vm5 = vcmask 97280   ;;  %vm1469_vm6 = vcmask 162816   ;;  %vm1436_vm7 = vcmask 130048  }
   0xd   : > { %s8832_s19 = smov (!%p215_p3, %s3534_s19), 1  ;;  %s3659_s27 = smov 16   ;;  %vm1502_vm8 = vcmask 195584   ;;  %vm1568_vm9 = vcmask 261120   ;;  %vm1535_vm10 = vcmask 228352   ;;  %vm1610_vm11 = vcmask 293888  }
   0xe   : > { %s3624_s20 = smul.u32 432, %s8832_s19  ;;  %s3660_s28 = smov 20   ;;  %vm1888_vm12 = vcmask 1040384   ;;  %vm3092_vm13 = vcmask 326656   ;;  %vm3125_vm14 = vcmask 392192   ;;  %vm3158_vm15 = vcmask 457728  }
   0xf   : > { %s3661_s29 = smov 24   ;;  %s3662_s30 = smov 28  }
  0x10   : > { %s3713_s23 = scalar_lea.vmem %s7674_s0, %s3624_s20  ;;  %s3663_s6 = smov 32  }
  0x11   : > { %v231_v0 = vld [vmem:[%s3713_s23 + $0x30] sm:$0xff]  ;;  %v232_v1 = vld [vmem:[%s3713_s23 + $0x38] sm:$0xff]  ;;  %v229_v5 = vld [vmem:[%s3713_s23 + $0x20] sm:$0xff]  ;;  %s3665_s21 = smov 40   ;;  %s3666_s22 = smov 48  }
  0x12   : > { %v228_v2 = vld [vmem:[%s3713_s23 + $0x18] sm:$0xff]  ;;  %v3718_v3 = vmax.f32 %v231_v0, 0.0  ;;  %v3720_v4 = vmax.f32 %v232_v1, 0.0  ;;  %v225_v7 = vld [vmem:[%s3713_s23] sm:$0xff]  ;;  %v226_v8 = vld [vmem:[%s3713_s23 + $0x8] sm:$0xff]  ;;  %v3727_v9 = vmax.f32 %v229_v5, 0.0 }
  0x13   : > { %v3723_v6 = vmax.f32 %v228_v2, 0.0  ;;  %v3729_v10 = vmax.f32 %v225_v7, 0.0  ;;  %v3731_v11 = vmax.f32 %v226_v8, 0.0  ;;  %v3734_v12 = vld [vmem:[%s3713_s23 + $0x40] sm:$0x3]  ;;  %v238_v31 = vld [vmem:[%s3713_s23 + $0x68] sm:$0xff] }
  0x14   : > { %7928 = vst [vmem:[#allocation3_spill] sm:$0xff] %v3727_v9  ;;  %v392_v13 = vrot.slane %v3718_v3, 1  ;;  %v393_v14 = vrot.slane %v3720_v4, 1  ;;  %v7687_v16 = vmax.f32 %v3734_v12, 0.0  ;;  %v3741_v17 = vld [vmem:[%s3713_s23 + $0x28] sm:$0x3] }
  0x15   : > { %7927 = vst [vmem:[#allocation2_spill] sm:$0xff] %v3723_v6  ;;  %v387_v15 = vrot.slane %v3723_v6, 1  ;;  %v388_v18 = vrot.slane %v3727_v9, 1  ;;  %v382_v19 = vrot.slane %v3729_v10, 1  ;;  %v383_v20 = vrot.slane %v3731_v11, 1  ;;  %v237_v30 = vld [vmem:[%s3713_s23 + $0x60] sm:$0xff] }
  0x16   : > { %7929 = vst [vmem:[#allocation4_spill] sm:$0xff] %v3729_v10  ;;  %v7689_v21 = vmax.f32 %v3741_v17, 0.0  ;;  %v3748_v22 = vld [vmem:[%s3713_s23 + $0x10] sm:$0x3]  ;;  %v3751_v23 = vsel %vm381_vm0, %v392_v13, %v393_v14  ;;  %v395_v27 = vrot.slane %v7687_v16, 1  ;;  %v234_v34 = vld [vmem:[%s3713_s23 + $0x48] sm:$0xff] }
  0x17   : > { %7930 = vst [vmem:[#allocation5_spill] sm:$0xff] %v3731_v11  ;;  %v7688_v24 = vmax.f32 %v3748_v22, 0.0  ;;  %470 = vrot.lane.b32.xlu2 %v3751_v23, %s3656_s24  ;;  %v3757_v25 = vsel %vm381_vm0, %v387_v15, %v388_v18  ;;  %v384_v26 = vsel %vm381_vm0, %v382_v19, %v383_v20  ;;  %v235_v32 = vld [vmem:[%s3713_s23 + $0x50] sm:$0xff]  ;;  %v3773_v33 = vld [vmem:[%s3713_s23 + $0x58] sm:$0x3]  ;;  %v3779_v36 = vmax.f32 %v237_v30, 0.0 }
  0x18   : > { %466 = vrot.lane.b32.xlu1 %v3757_v25, %s3656_s24  ;;  %462 = vrot.lane.b32.xlu0 %v384_v26, %s3656_s24  ;;  %v390_v28 = vrot.slane %v7689_v21, 1  ;;  %v3777_v35 = vsel %vm381_vm0, %v393_v14, %v395_v27  ;;  %v3781_v37 = vmax.f32 %v238_v31, 0.0  ;;  %v3783_v38 = vmax.f32 %v235_v32, 0.0  ;;  %v241_v48 = vld [vmem:[%s3713_s23 + $0x80] sm:$0xff]  ;;  %v3805_v49 = vld [vmem:[%s3713_s23 + $0x88] sm:$0x3] }
  0x19   : > { %v385_v29 = vrot.slane %v7688_v24, 1  ;;  %7931 = vst [vmem:[#allocation6_spill] sm:$0xff] %v3777_v35  ;;  %v7684_v41 = vmax.f32 %v3773_v33, 0.0  ;;  %v3790_v42 = vmax.f32 %v234_v34, 0.0  ;;  %v402_v43 = vrot.slane %v3779_v36, 1  ;;  %v240_v50 = vld [vmem:[%s3713_s23 + $0x78] sm:$0xff] }
  0x1a   : > { %7932 = vst [vmem:[#allocation7_spill] sm:$0xff] %v3779_v36  ;;  %v3786_v39 = vsel %vm381_vm0, %v388_v18, %v390_v28  ;;  %v403_v44 = vrot.slane %v3781_v37, 1  ;;  %v398_v45 = vrot.slane %v3783_v38, 1  ;;  %v3809_v51 = vld [vmem:[%s3713_s23 + $0x70] sm:$0x3]  ;;  %v3814_v53 = vmax.f32 %v241_v48, 0.0 }
  0x1b   : > { %v386_v40 = vsel %vm381_vm0, %v383_v20, %v385_v29  ;;  %v400_v46 = vrot.slane %v7684_v41, 1  ;;  %v397_v47 = vrot.slane %v3790_v42, 1  ;;  %v7683_v54 = vmax.f32 %v3805_v49, 0.0  ;;  %v246_v63 = vld [vmem:[%s3713_s23 + $0xa8] sm:$0xff]  ;;  %v247_v0 = vld [vmem:[%s3713_s23 + $0xb0] sm:$0xff]  ;;  %v244_v1 = vld [vmem:[%s3713_s23 + $0x98] sm:$0xff] }
  0x1c   : > { %v3812_v52 = vsel %vm381_vm0, %v402_v43, %v403_v44  ;;  %7934 = vst [vmem:[#allocation9_spill] sm:$0xff] %v3814_v53  ;;  %v3823_v57 = vmax.f32 %v240_v50, 0.0  ;;  %v7685_v58 = vmax.f32 %v3809_v51, 0.0  ;;  %v408_v59 = vrot.slane %v3814_v53, 1  ;;  %v3842_v2 = vld [vmem:[%s3713_s23 + $0xa0] sm:$0x3] }
  0x1d   : > { %7933 = vst [vmem:[#allocation8_spill] sm:$0xff] %v3812_v52  ;;  %v3818_v55 = vsel %vm381_vm0, %v398_v45, %v400_v46  ;;  %v3821_v56 = vsel %vm381_vm0, %v397_v47, %v398_v45  ;;  %v410_v60 = vrot.slane %v7683_v54, 1  ;;  %v243_v5 = vld [vmem:[%s3713_s23 + $0x90] sm:$0xff]  ;;  %v3848_v8 = vmax.f32 %v246_v63, 0.0  ;;  %v250_v31 = vld [vmem:[%s3713_s23 + $0xc8] sm:$0xff]  ;;  %v249_v34 = vld [vmem:[%s3713_s23 + $0xc0] sm:$0xff] }
  0x1e   : > { %7935 = vst [vmem:[#allocation10_spill] sm:$0xff] %v3818_v55  ;;  %v407_v61 = vrot.slane %v3823_v57, 1  ;;  %v405_v62 = vrot.slane %v7685_v58, 1  ;;  %v3850_v13 = vmax.f32 %v247_v0, 0.0  ;;  %v3852_v14 = vmax.f32 %v244_v1, 0.0  ;;  %v255_v63 = vld [vmem:[%s3713_s23 + $0xf0] sm:$0xff] }
  0x1f   : > { %472 = vrot.lane.b32.xlu2 %v3777_v35, %s3656_s24  ;;  %7936 = vst [vmem:[#allocation11_spill] sm:$0xff] %v3821_v56  ;;  %v3846_v7 = vsel %vm381_vm0, %v408_v59, %v410_v60  ;;  %v7681_v19 = vmax.f32 %v3842_v2, 0.0  ;;  %v3861_v20 = vmax.f32 %v243_v5, 0.0  ;;  %v417_v26 = vrot.slane %v3848_v8, 1  ;;  %v3877_v32 = vld [vmem:[%s3713_s23 + $0xd0] sm:$0x3] }
  0x20   : > { %468 = vrot.lane.b32.xlu1 %v3786_v39, %s3656_s24  ;;  %464 = vrot.lane.b32.xlu0 %v386_v40, %s3656_s24  ;;  %7937 = vst [vmem:[#allocation12_spill] sm:$0xff] %v3823_v57  ;;  %v3855_v15 = vsel %vm381_vm0, %v407_v61, %v408_v59  ;;  %v3858_v18 = vsel %vm381_vm0, %v403_v44, %v405_v62  ;;  %v418_v27 = vrot.slane %v3850_v13, 1  ;;  %v413_v28 = vrot.slane %v3852_v14, 1  ;;  %v3881_v40 = vld [vmem:[%s3713_s23 + $0xb8] sm:$0x3]  ;;  %v253_v1 = vld [vmem:[%s3713_s23 + $0xe0] sm:$0xff] }
  0x21   : > { %7938 = vst [vmem:[#allocation13_spill] sm:$0xff] %v3846_v7  ;;  %v415_v29 = vrot.slane %v7681_v19, 1  ;;  %v412_v30 = vrot.slane %v3861_v20, 1  ;;  %v3886_v44 = vmax.f32 %v250_v31, 0.0  ;;  %v7680_v45 = vmax.f32 %v3877_v32, 0.0  ;;  %v256_v0 = vld [vmem:[%s3713_s23 + $0xf8] sm:$0xff] }
  0x22   : > { %7939 = vst [vmem:[#allocation14_spill] sm:$0xff] %v3848_v8  ;;  %v3884_v43 = vsel %vm381_vm0, %v417_v26, %v418_v27  ;;  %v3895_v48 = vmax.f32 %v249_v34, 0.0  ;;  %v7682_v50 = vmax.f32 %v3881_v40, 0.0  ;;  %v3914_v5 = vld [vmem:[%s3713_s23 + $0xe8] sm:$0x3]  ;;  %v252_v26 = vld [vmem:[%s3713_s23 + $0xd8] sm:$0xff] }
  0x23   : > { %7940 = vst [vmem:[#allocation15_spill] sm:$0xff] %v3850_v13  ;;  %v3890_v46 = vsel %vm381_vm0, %v413_v28, %v415_v29  ;;  %v3893_v47 = vsel %vm381_vm0, %v412_v30, %v413_v28  ;;  %v423_v59 = vrot.slane %v3886_v44, 1  ;;  %v425_v60 = vrot.slane %v7680_v45, 1  ;;  %s3609_s20 = sshll.u32 %s8832_s19, 8 }
  0x24   : > { %7941 = vst [vmem:[#allocation16_spill] sm:$0xff] %v3852_v14  ;;  %v422_v61 = vrot.slane %v3895_v48, 1  ;;  %v420_v62 = vrot.slane %v7682_v50, 1  ;;  %v3920_v29 = vmax.f32 %v255_v63, 0.0  ;;  %v3922_v30 = vmax.f32 %v256_v0, 0.0  ;;  %v259_v0 = vld [vmem:[%s3713_s23 + $0x110] sm:$0xff] }
  0x25   : > { %7942 = vst [vmem:[#allocation17_spill] sm:$0xff] %v3855_v15  ;;  %v3918_v28 = vsel %vm381_vm0, %v423_v59, %v425_v60  ;;  %v3924_v31 = vmax.f32 %v253_v1, 0.0  ;;  %v7686_v19 = vmax.f32 %v3914_v5, 0.0  ;;  %v3933_v60 = vmax.f32 %v252_v26, 0.0  ;;  %v3949_v1 = vld [vmem:[%s3713_s23 + $0x118] sm:$0x3] }
  0x26   : > { %7943 = vst [vmem:[#allocation18_spill] sm:$0xff] %v3858_v18  ;;  %v3927_v34 = vsel %vm381_vm0, %v422_v61, %v423_v59  ;;  %v3930_v45 = vsel %vm381_vm0, %v418_v27, %v420_v62  ;;  %v432_v63 = vrot.slane %v3920_v29, 1  ;;  %v433_v59 = vrot.slane %v3922_v30, 1  ;;  %v258_v26 = vld [vmem:[%s3713_s23 + $0x108] sm:$0xff]  ;;  %v3953_v50 = vld [vmem:[%s3713_s23 + $0x100] sm:$0x3] }
  0x27   : > { %478 = vrot.lane.b32.xlu2 %v3812_v52, %s3656_s24  ;;  %7944 = vst [vmem:[#allocation19_spill] sm:$0xff] %v3861_v20  ;;  %v428_v27 = vrot.slane %v3924_v31, 1  ;;  %v430_v61 = vrot.slane %v7686_v19, 1  ;;  %v427_v62 = vrot.slane %v3933_v60, 1  ;;  %v3958_v41 = vmax.f32 %v259_v0, 0.0  ;;  %v264_v0 = vld [vmem:[%s3713_s23 + $0x138] sm:$0xff] }
  0x28   : > { %476 = vrot.lane.b32.xlu1 %v3818_v55, %s3656_s24  ;;  %474 = vrot.lane.b32.xlu0 %v3821_v56, %s3656_s24  ;;  %7945 = vst [vmem:[#allocation20_spill] sm:$0xff] %v3884_v43  ;;  %v3956_v54 = vsel %vm381_vm0, %v432_v63, %v433_v59  ;;  %v7702_v58 = vmax.f32 %v3949_v1, 0.0  ;;  %v3967_v24 = vmax.f32 %v258_v26, 0.0  ;;  %v7703_v21 = vmax.f32 %v3953_v50, 0.0  ;;  %v265_v26 = vld [vmem:[%s3713_s23 + $0x140] sm:$0xff] }
  0x29   : > { %7946 = vst [vmem:[#allocation21_spill] sm:$0xff] %v3890_v46  ;;  %v3962_v19 = vsel %vm381_vm0, %v428_v27, %v430_v61  ;;  %v3965_v16 = vsel %vm381_vm0, %v427_v62, %v428_v27  ;;  %v438_v63 = vrot.slane %v3958_v41, 1 }
  0x2a   : > { %7947 = vst [vmem:[#allocation22_spill] sm:$0xff] %v3893_v47  ;;  %v440_v61 = vrot.slane %v7702_v58, 1  ;;  %v437_v27 = vrot.slane %v3967_v24, 1  ;;  %v435_v62 = vrot.slane %v7703_v21, 1 }
  0x2b   : > { %7948 = vst [vmem:[#allocation23_spill] sm:$0xff] %v3895_v48 }
  0x2c   : > { %7949 = vst [vmem:[#allocation24_spill] sm:$0xff] %v3918_v28  ;;  %v3999_v21 = vsel %vm381_vm0, %v437_v27, %v438_v63 }
  0x2d   : > { %7950 = vst [vmem:[#allocation25_spill] sm:$0xff] %v3922_v30 }
  0x2e   : > { %7951 = vst [vmem:[#allocation26_spill] sm:$0xff] %v3927_v34 }
  0x2f   : > { %484 = vrot.lane.b32.xlu2 %v3846_v7, %s3656_s24  ;;  %7952 = vst [vmem:[#allocation27_spill] sm:$0xff] %v3930_v45 }
  0x30   : > { %482 = vrot.lane.b32.xlu1 %v3855_v15, %s3656_s24  ;;  %480 = vrot.lane.b32.xlu0 %v3858_v18, %s3656_s24  ;;  %7953 = vst [vmem:[#allocation28_spill] sm:$0xff] %v3956_v54 }
  0x31   : > { %7954 = vst [vmem:[#allocation29_spill] sm:$0xff] %v3958_v41 }
  0x32   : > { %7955 = vst [vmem:[#allocation30_spill] sm:$0xff] %v3962_v19 }
  0x33   : > { %7956 = vst [vmem:[#allocation31_spill] sm:$0xff] %v3965_v16 }
  0x34   : > { %7957 = vst [vmem:[#allocation32_spill] sm:$0xff] %v3967_v24 }
  0x35   : > { %7962 = vst [vmem:[#allocation37_spill] sm:$0xff] %v3999_v21 }
  0x37   : > { %490 = vrot.lane.b32.xlu2 %v3884_v43, %s3656_s24  ;;  %v261_v43 = vld [vmem:[%s3713_s23 + $0x120] sm:$0xff] }
  0x38   : > { %488 = vrot.lane.b32.xlu1 %v3890_v46, %s3656_s24  ;;  %486 = vrot.lane.b32.xlu0 %v3893_v47, %s3656_s24 }
  0x3f   : > { %496 = vrot.lane.b32.xlu2 %v3918_v28, %s3656_s24  ;;  %v262_v28 = vld [vmem:[%s3713_s23 + $0x128] sm:$0xff] }
  0x40   : > { %494 = vrot.lane.b32.xlu1 %v3927_v34, %s3656_s24  ;;  %492 = vrot.lane.b32.xlu0 %v3930_v45, %s3656_s24  ;;  %v3994_v45 = vmax.f32 %v265_v26, 0.0  ;;  %v3996_v58 = vmax.f32 %v262_v28, 0.0  ;;  %v4002_v34 = vsel %vm381_vm0, %v433_v59, %v435_v62  ;;  %v268_v62 = vld [vmem:[%s3713_s23 + $0x158] sm:$0xff]  ;;  %v267_v26 = vld [vmem:[%s3713_s23 + $0x150] sm:$0xff] }
  0x41   : > { %7963 = vst [vmem:[#allocation38_spill] sm:$0xff] %v4002_v34  ;;  %v4033_v46 = vmax.f32 %v267_v26, 0.0  ;;  %v4056_v26 = vld [vmem:[%s3713_s23 + $0x178] sm:$0x3] }
  0x42   : > { %7960 = vst [vmem:[#allocation35_spill] sm:$0xff] %v3994_v45  ;;  %v443_v59 = vrot.slane %v3996_v58, 1 }
  0x43   : > { %7961 = vst [vmem:[#allocation36_spill] sm:$0xff] %v3996_v58 }
  0x44   : > { %7967 = vst [vmem:[#allocation42_spill] sm:$0xff] %v4033_v46 }
  0x47   : > { %502 = vrot.lane.b32.xlu2 %v3956_v54, %s3656_s24  ;;  %v3986_v54 = vld [vmem:[%s3713_s23 + $0x130] sm:$0x3] }
  0x48   : > { %500 = vrot.lane.b32.xlu1 %v3962_v19, %s3656_s24  ;;  %498 = vrot.lane.b32.xlu0 %v3965_v16, %s3656_s24  ;;  %v3990_v19 = vsel %vm381_vm0, %v438_v63, %v440_v61  ;;  %v3992_v16 = vmax.f32 %v264_v0, 0.0  ;;  %v7718_v7 = vmax.f32 %v3986_v54, 0.0  ;;  %v4005_v61 = vmax.f32 %v261_v43, 0.0  ;;  %v4021_v0 = vld [vmem:[%s3713_s23 + $0x160] sm:$0x3] }
  0x49   : > { %7958 = vst [vmem:[#allocation33_spill] sm:$0xff] %v3990_v19  ;;  %v448_v63 = vrot.slane %v3994_v45, 1  ;;  %v7733_v47 = vmax.f32 %v4021_v0, 0.0 }
  0x4a   : > { %7959 = vst [vmem:[#allocation34_spill] sm:$0xff] %v3992_v16  ;;  %v447_v28 = vrot.slane %v3992_v16, 1  ;;  %v445_v27 = vrot.slane %v7718_v7, 1  ;;  %v442_v43 = vrot.slane %v4005_v61, 1 }
  0x4b   : > { %7964 = vst [vmem:[#allocation39_spill] sm:$0xff] %v4005_v61 }
  0x4c   : > { %v4036_v7 = vsel %vm381_vm0, %v443_v59, %v445_v27  ;;  %v4039_v52 = vsel %vm381_vm0, %v442_v43, %v443_v59  ;;  %v455_v27 = vrot.slane %v7733_v47, 1  ;;  %v271_v43 = vld [vmem:[%s3713_s23 + $0x170] sm:$0xff]  ;;  %v7737_v47 = vmax.f32 %v4056_v26, 0.0 }
  0x4d   : > { %7968 = vst [vmem:[#allocation43_spill] sm:$0xff] %v4036_v7  ;;  %v4068_v35 = vmax.f32 %v271_v43, 0.0 }
  0x4e   : > { %7969 = vst [vmem:[#allocation44_spill] sm:$0xff] %v4039_v52 }
  0x4f   : > { %508 = vrot.lane.b32.xlu2 %v3990_v19, %s3656_s24  ;;  %v4025_v19 = vld [vmem:[%s3713_s23 + $0x148] sm:$0x3]  ;;  %7973 = vst [vmem:[#allocation48_spill] sm:$0xff] %v4068_v35 }
  0x50   : > { %506 = vrot.lane.b32.xlu1 %v3999_v21, %s3656_s24  ;;  %504 = vrot.lane.b32.xlu0 %v4002_v34, %s3656_s24  ;;  %v4028_v34 = vsel %vm381_vm0, %v447_v28, %v448_v63  ;;  %v4030_v21 = vmax.f32 %v268_v62, 0.0  ;;  %v7736_v18 = vmax.f32 %v4025_v19, 0.0  ;;  %v452_v62 = vrot.slane %v4033_v46, 1 }
  0x51   : > { %7965 = vst [vmem:[#allocation40_spill] sm:$0xff] %v4028_v34 }
  0x52   : > { %7966 = vst [vmem:[#allocation41_spill] sm:$0xff] %v4030_v21  ;;  %v453_v28 = vrot.slane %v4030_v21, 1  ;;  %v450_v59 = vrot.slane %v7736_v18, 1 }
  0x54   : > { %v4060_v15 = vsel %vm381_vm0, %v453_v28, %v455_v27  ;;  %v458_v27 = vrot.slane %v4068_v35, 1 }
  0x55   : > { %7970 = vst [vmem:[#allocation45_spill] sm:$0xff] %v4060_v15 }
  0x57   : > { %514 = vrot.lane.b32.xlu2 %v4028_v34, %s3656_s24  ;;  %v270_v34 = vld [vmem:[%s3713_s23 + $0x168] sm:$0xff] }
  0x58   : > { %512 = vrot.lane.b32.xlu1 %v4036_v7, %s3656_s24  ;;  %510 = vrot.lane.b32.xlu0 %v4039_v52, %s3656_s24  ;;  %v4063_v7 = vsel %vm381_vm0, %v452_v62, %v453_v28  ;;  %v4066_v52 = vsel %vm381_vm0, %v448_v63, %v450_v59  ;;  %v4071_v56 = vmax.f32 %v270_v34, 0.0  ;;  %v559_v28 = vrot.slane %v3729_v10, 2 }
  0x59   : > { %7971 = vst [vmem:[#allocation46_spill] sm:$0xff] %v4063_v7  ;;  %v560_v63 = vrot.slane %v3731_v11, 2  ;;  %v460_v62 = vrot.slane %v7737_v47, 1  ;;  %v565_v47 = vrot.slane %v3727_v9, 2  ;;  %v7977_v11 = vmax.f32 %v3741_v17, 0.0 }
  0x5a   : > { %7972 = vst [vmem:[#allocation47_spill] sm:$0xff] %v4066_v52  ;;  %v457_v34 = vrot.slane %v4071_v56, 1  ;;  %v7978_v10 = vmax.f32 %v3748_v22, 0.0  ;;  %v570_v22 = vrot.slane %v3720_v4, 2 }
  0x5b   : > { %7974 = vst [vmem:[#allocation49_spill] sm:$0xff] %v4071_v56  ;;  %v561_v59 = vsel %vm558_vm1, %v559_v28, %v560_v63  ;;  %v4087_v43 = vsel %vm381_vm0, %v458_v27, %v460_v62  ;;  %v567_v28 = vrot.slane %v7977_v11, 2  ;;  %v564_v62 = vrot.slane %v3723_v6, 2 }
  0x5c   : > { %7975 = vst [vmem:[#allocation50_spill] sm:$0xff] %v4087_v43  ;;  %v4090_v18 = vsel %vm381_vm0, %v457_v34, %v458_v27  ;;  %v562_v27 = vrot.slane %v7978_v10, 2  ;;  %v574_v11 = vrot.slane %v3790_v42, 2  ;;  %v575_v10 = vrot.slane %v3783_v38, 2 }
  0x5d   : > { %7976 = vst [vmem:[#allocation51_spill] sm:$0xff] %v4090_v18  ;;  %v4104_v34 = vsel %vm558_vm1, %v565_v47, %v567_v28 }
  0x5e   : > { %7979 = vst [vmem:[#allocation52_spill] sm:$0xff] %v4104_v34 }
  0x5f   : > { %520 = vrot.lane.b32.xlu2 %v4060_v15, %s3656_s24  ;;  %v563_v15 = vsel %vm558_vm1, %v560_v63, %v562_v27  ;;  %v569_v63 = vrot.slane %v3718_v3, 2 }
  0x60   : > { %518 = vrot.lane.b32.xlu1 %v4063_v7, %s3656_s24  ;;  %516 = vrot.lane.b32.xlu0 %v4066_v52, %s3656_s24 }
  0x67   : > { %639 = vrot.lane.b32.xlu2 %v561_v59, %s3657_s25  ;;  %v4107_v59 = vsel %vm558_vm1, %v564_v62, %v565_v47  ;;  %v7981_v47 = vmax.f32 %v3734_v12, 0.0  ;;  %v4124_v62 = vsel %vm558_vm1, %v574_v11, %v575_v10  ;;  %v580_v12 = vrot.slane %v3781_v37, 2 }
  0x68   : > { %524 = vrot.lane.b32.xlu1 %v4087_v43, %s3656_s24  ;;  %522 = vrot.lane.b32.xlu0 %v4090_v18, %s3656_s24  ;;  %7982 = vst [vmem:[#allocation54_spill] sm:$0xff] %v4124_v62  ;;  %v7985_v11 = vmax.f32 %v3809_v51, 0.0  ;;  %v590_v51 = vrot.slane %v3852_v14, 2  ;;  %s3668_s24 = smov 64  }
  0x69   : > { %v572_v28 = vrot.slane %v7981_v47, 2 }
  0x6a   : > { %v582_v47 = vrot.slane %v7985_v11, 2 }
  0x6b   : > { %v4127_v27 = vsel %vm558_vm1, %v570_v22, %v572_v28  ;;  %v579_v28 = vrot.slane %v3779_v36, 2 }
  0x6c   : > { %7983 = vst [vmem:[#allocation55_spill] sm:$0xff] %v4127_v27 }
  0x6f   : > { %645 = vrot.lane.b32.xlu2 %v4104_v34, %s3657_s25  ;;  %v4150_v34 = vsel %vm558_vm1, %v579_v28, %v580_v12  ;;  %v584_v28 = vrot.slane %v3823_v57, 2 }
  0x70   : > { %643 = vrot.lane.b32.xlu1 %v4107_v59, %s3657_s25  ;;  %641 = vrot.lane.b32.xlu0 %v563_v15, %s3657_s25  ;;  %v4130_v15 = vsel %vm558_vm1, %v569_v63, %v570_v22  ;;  %v7987_v22 = vmax.f32 %v3773_v33, 0.0  ;;  %7989 = vst [vmem:[#allocation59_spill] sm:$0xff] %v4150_v34  ;;  %v589_v33 = vrot.slane %v3861_v20, 2 }
  0x71   : > { %v4117_v17 = vpop.permute.xlu2 %470  ;;  %7984 = vst [vmem:[#allocation56_spill] sm:$0xff] %v4130_v15 }
  0x72   : > { %7980 = vst [vmem:[#allocation53_spill] sm:$0xff] %v4117_v17  ;;  %v577_v63 = vrot.slane %v7987_v22, 2  ;;  %v4170_v22 = vsel %vm558_vm1, %v589_v33, %v590_v51  ;;  %v7995_v33 = vmax.f32 %v3881_v40, 0.0 }
  0x73   : > { %7992 = vst [vmem:[#allocation61_spill] sm:$0xff] %v4170_v22 }
  0x77   : > { %651 = vrot.lane.b32.xlu2 %v4124_v62, %s3657_s25  ;;  %v4147_v62 = vsel %vm558_vm1, %v580_v12, %v582_v47  ;;  %v585_v12 = vrot.slane %v3814_v53, 2 }
  0x78   : > { %649 = vrot.lane.b32.xlu1 %v4127_v27, %s3657_s25  ;;  %647 = vrot.lane.b32.xlu0 %v4130_v15, %s3657_s25  ;;  %7988 = vst [vmem:[#allocation58_spill] sm:$0xff] %v4147_v62  ;;  %v4153_v15 = vsel %vm558_vm1, %v575_v10, %v577_v63  ;;  %v7991_v10 = vmax.f32 %v3805_v49, 0.0  ;;  %v595_v49 = vrot.slane %v3850_v13, 2 }
  0x79   : > { %v4141_v17 = vpop.permute.xlu2 %472 }
  0x7a   : > { %7986 = vst [vmem:[#allocation57_spill] sm:$0xff] %v4141_v17  ;;  %v587_v47 = vrot.slane %v7991_v10, 2  ;;  %v4176_v17 = vsel %vm558_vm1, %v584_v28, %v585_v12  ;;  %v597_v10 = vrot.slane %v7995_v33, 2  ;;  %v605_v33 = vrot.slane %v3924_v31, 2 }
  0x7b   : > { %7994 = vst [vmem:[#allocation63_spill] sm:$0xff] %v4176_v17 }
  0x7c   : > { %v4173_v63 = vsel %vm558_vm1, %v585_v12, %v587_v47  ;;  %v594_v47 = vrot.slane %v3848_v8, 2  ;;  %v7997_v12 = vmax.f32 %v3842_v2, 0.0  ;;  %v604_v2 = vrot.slane %v3933_v60, 2 }
  0x7d   : > { %7993 = vst [vmem:[#allocation62_spill] sm:$0xff] %v4173_v63 }
  0x7e   : > { %v592_v28 = vrot.slane %v7997_v12, 2  ;;  %v599_v12 = vrot.slane %v3895_v48, 2 }
  0x7f   : > { %657 = vrot.lane.b32.xlu2 %v4147_v62, %s3657_s25 }
  0x80   : > { %655 = vrot.lane.b32.xlu1 %v4150_v34, %s3657_s25  ;;  %653 = vrot.lane.b32.xlu0 %v4153_v15, %s3657_s25  ;;  %v4203_v40 = vsel %vm558_vm1, %v590_v51, %v592_v28  ;;  %v8003_v51 = vmax.f32 %v3877_v32, 0.0  ;;  %v610_v32 = vrot.slane %v3922_v30, 2 }
  0x81   : > { %v4163_v11 = vpop.permute.xlu2 %478 }
  0x82   : > { %7990 = vst [vmem:[#allocation60_spill] sm:$0xff] %v4163_v11 }
  0x87   : > { %663 = vrot.lane.b32.xlu2 %v4170_v22, %s3657_s25 }
  0x88   : > { %661 = vrot.lane.b32.xlu1 %v4173_v63, %s3657_s25  ;;  %659 = vrot.lane.b32.xlu0 %v4176_v17, %s3657_s25  ;;  %v4197_v63 = vsel %vm558_vm1, %v595_v49, %v597_v10  ;;  %v4200_v17 = vsel %vm558_vm1, %v594_v47, %v595_v49  ;;  %v600_v49 = vrot.slane %v3886_v44, 2  ;;  %v602_v47 = vrot.slane %v8003_v51, 2 }
  0x89   : > { %v4187_v11 = vpop.permute.xlu2 %484  ;;  %8000 = vst [vmem:[#allocation67_spill] sm:$0xff] %v4197_v63 }
  0x8a   : > { %7996 = vst [vmem:[#allocation64_spill] sm:$0xff] %v4187_v11  ;;  %v4192_v62 = vpop.permute.xlu1 %466  ;;  %v4194_v22 = vpop.permute.xlu0 %462 }
  0x8b   : > { %7998 = vst [vmem:[#allocation65_spill] sm:$0xff] %v4192_v62  ;;  %v4224_v62 = vsel %vm558_vm1, %v604_v2, %v605_v33  ;;  %v8009_v2 = vmax.f32 %v3953_v50, 0.0 }
  0x8c   : > { %7999 = vst [vmem:[#allocation66_spill] sm:$0xff] %v4194_v22  ;;  %v4227_v22 = vsel %vm558_vm1, %v600_v49, %v602_v47  ;;  %v609_v47 = vrot.slane %v3920_v29, 2 }
  0x8d   : > { %8001 = vst [vmem:[#allocation68_spill] sm:$0xff] %v4200_v17  ;;  %v612_v51 = vrot.slane %v8009_v2, 2  ;;  %v620_v2 = vrot.slane %v3996_v58, 2 }
  0x8e   : > { %8006 = vst [vmem:[#allocation72_spill] sm:$0xff] %v4224_v62 }
  0x8f   : > { %669 = vrot.lane.b32.xlu2 %v4197_v63, %s3657_s25  ;;  %8007 = vst [vmem:[#allocation73_spill] sm:$0xff] %v4227_v22  ;;  %v4230_v63 = vsel %vm558_vm1, %v599_v12, %v600_v49  ;;  %v8011_v49 = vmax.f32 %v3914_v5, 0.0  ;;  %v619_v5 = vrot.slane %v4005_v61, 2 }
  0x90   : > { %667 = vrot.lane.b32.xlu1 %v4200_v17, %s3657_s25  ;;  %665 = vrot.lane.b32.xlu0 %v4203_v40, %s3657_s25  ;;  %8008 = vst [vmem:[#allocation74_spill] sm:$0xff] %v4230_v63 }
  0x91   : > { %v4213_v10 = vpop.permute.xlu2 %490  ;;  %v607_v12 = vrot.slane %v8011_v49, 2  ;;  %v614_v49 = vrot.slane %v3967_v24, 2 }
  0x92   : > { %8002 = vst [vmem:[#allocation69_spill] sm:$0xff] %v4213_v10  ;;  %v4219_v28 = vpop.permute.xlu1 %468  ;;  %v4221_v11 = vpop.permute.xlu0 %464 }
  0x93   : > { %8004 = vst [vmem:[#allocation70_spill] sm:$0xff] %v4219_v28  ;;  %v4257_v50 = vsel %vm558_vm1, %v605_v33, %v607_v12  ;;  %v8017_v33 = vmax.f32 %v3949_v1, 0.0  ;;  %v625_v1 = vrot.slane %v3994_v45, 2 }
  0x94   : > { %8005 = vst [vmem:[#allocation71_spill] sm:$0xff] %v4221_v11 }
  0x97   : > { %675 = vrot.lane.b32.xlu2 %v4224_v62, %s3657_s25  ;;  %v4251_v62 = vsel %vm558_vm1, %v610_v32, %v612_v51 }
  0x98   : > { %673 = vrot.lane.b32.xlu1 %v4227_v22, %s3657_s25  ;;  %671 = vrot.lane.b32.xlu0 %v4230_v63, %s3657_s25  ;;  %8014 = vst [vmem:[#allocation78_spill] sm:$0xff] %v4251_v62  ;;  %v4254_v63 = vsel %vm558_vm1, %v609_v47, %v610_v32  ;;  %v615_v32 = vrot.slane %v3958_v41, 2  ;;  %v617_v47 = vrot.slane %v8017_v33, 2 }
  0x99   : > { %v4241_v10 = vpop.permute.xlu2 %496  ;;  %8015 = vst [vmem:[#allocation79_spill] sm:$0xff] %v4254_v63 }
  0x9a   : > { %8010 = vst [vmem:[#allocation75_spill] sm:$0xff] %v4241_v10  ;;  %v4246_v28 = vpop.permute.xlu1 %476  ;;  %v4248_v11 = vpop.permute.xlu0 %474  ;;  %v4281_v10 = vsel %vm558_vm1, %v615_v32, %v617_v47  ;;  %v624_v47 = vrot.slane %v3992_v16, 2 }
  0x9b   : > { %8012 = vst [vmem:[#allocation76_spill] sm:$0xff] %v4246_v28 }
  0x9c   : > { %8013 = vst [vmem:[#allocation77_spill] sm:$0xff] %v4248_v11  ;;  %v4278_v11 = vsel %vm558_vm1, %v619_v5, %v620_v2  ;;  %v8023_v5 = vmax.f32 %v4025_v19, 0.0 }
  0x9d   : > { %8020 = vst [vmem:[#allocation83_spill] sm:$0xff] %v4278_v11 }
  0x9e   : > { %8021 = vst [vmem:[#allocation84_spill] sm:$0xff] %v4281_v10  ;;  %v627_v33 = vrot.slane %v8023_v5, 2  ;;  %v635_v5 = vrot.slane %v4068_v35, 2 }
  0x9f   : > { %681 = vrot.lane.b32.xlu2 %v4251_v62, %s3657_s25  ;;  %v4284_v62 = vsel %vm558_vm1, %v614_v49, %v615_v32  ;;  %v8025_v32 = vmax.f32 %v3986_v54, 0.0  ;;  %v634_v54 = vrot.slane %v4071_v56, 2 }
  0xa0   : > { %679 = vrot.lane.b32.xlu1 %v4254_v63, %s3657_s25  ;;  %677 = vrot.lane.b32.xlu0 %v4257_v50, %s3657_s25  ;;  %8022 = vst [vmem:[#allocation85_spill] sm:$0xff] %v4284_v62 }
  0xa1   : > { %v4267_v51 = vpop.permute.xlu2 %502  ;;  %v622_v49 = vrot.slane %v8025_v32, 2  ;;  %v629_v32 = vrot.slane %v4033_v46, 2 }
  0xa2   : > { %8016 = vst [vmem:[#allocation80_spill] sm:$0xff] %v4267_v51  ;;  %v4273_v12 = vpop.permute.xlu1 %482  ;;  %v4275_v28 = vpop.permute.xlu0 %480 }
  0xa3   : > { %8018 = vst [vmem:[#allocation81_spill] sm:$0xff] %v4273_v12  ;;  %v4311_v19 = vsel %vm558_vm1, %v620_v2, %v622_v49  ;;  %v8031_v2 = vmax.f32 %v4021_v0, 0.0 }
  0xa4   : > { %8019 = vst [vmem:[#allocation82_spill] sm:$0xff] %v4275_v28 }
  0xa7   : > { %687 = vrot.lane.b32.xlu2 %v4278_v11, %s3657_s25  ;;  %v4305_v11 = vsel %vm558_vm1, %v625_v1, %v627_v33 }
  0xa8   : > { %685 = vrot.lane.b32.xlu1 %v4281_v10, %s3657_s25  ;;  %683 = vrot.lane.b32.xlu0 %v4284_v62, %s3657_s25  ;;  %8028 = vst [vmem:[#allocation89_spill] sm:$0xff] %v4305_v11  ;;  %v4308_v62 = vsel %vm558_vm1, %v624_v47, %v625_v1  ;;  %v630_v1 = vrot.slane %v4030_v21, 2  ;;  %v632_v47 = vrot.slane %v8031_v2, 2 }
  0xa9   : > { %v4295_v12 = vpop.permute.xlu2 %508  ;;  %8029 = vst [vmem:[#allocation90_spill] sm:$0xff] %v4308_v62 }
  0xaa   : > { %8024 = vst [vmem:[#allocation86_spill] sm:$0xff] %v4295_v12  ;;  %v4300_v28 = vpop.permute.xlu1 %488  ;;  %v4302_v51 = vpop.permute.xlu0 %486  ;;  %v4335_v12 = vsel %vm558_vm1, %v630_v1, %v632_v47 }
  0xab   : > { %8026 = vst [vmem:[#allocation87_spill] sm:$0xff] %v4300_v28 }
  0xac   : > { %8027 = vst [vmem:[#allocation88_spill] sm:$0xff] %v4302_v51  ;;  %v4332_v51 = vsel %vm558_vm1, %v634_v54, %v635_v5  ;;  %v8036_v54 = vmax.f32 %v4056_v26, 0.0 }
  0xad   : > { %8034 = vst [vmem:[#allocation94_spill] sm:$0xff] %v4335_v12 }
  0xae   : > { %v637_v2 = vrot.slane %v8036_v54, 2 }
  0xaf   : > { %693 = vrot.lane.b32.xlu2 %v4305_v11, %s3657_s25  ;;  %v4338_v11 = vsel %vm558_vm1, %v629_v32, %v630_v1 }
  0xb0   : > { %691 = vrot.lane.b32.xlu1 %v4308_v62, %s3657_s25  ;;  %689 = vrot.lane.b32.xlu0 %v4311_v19, %s3657_s25  ;;  %v4355_v1 = vsel %vm558_vm1, %v635_v5, %v637_v2 }
  0xb1   : > { %v4321_v33 = vpop.permute.xlu2 %514 }
  0xb2   : > { %8030 = vst [vmem:[#allocation91_spill] sm:$0xff] %v4321_v33  ;;  %v4327_v49 = vpop.permute.xlu1 %494  ;;  %v4329_v28 = vpop.permute.xlu0 %492 }
  0xb3   : > { %8032 = vst [vmem:[#allocation92_spill] sm:$0xff] %v4327_v49 }
  0xb4   : > { %8033 = vst [vmem:[#allocation93_spill] sm:$0xff] %v4329_v28 }
  0xb7   : > { %699 = vrot.lane.b32.xlu2 %v4332_v51, %s3657_s25 }
  0xb8   : > { %697 = vrot.lane.b32.xlu1 %v4335_v12, %s3657_s25  ;;  %695 = vrot.lane.b32.xlu0 %v4338_v11, %s3657_s25 }
  0xb9   : > { %v4346_v0 = vpop.permute.xlu2 %520 }
  0xba   : > { %8035 = vst [vmem:[#allocation95_spill] sm:$0xff] %v4346_v0  ;;  %v4350_v49 = vpop.permute.xlu1 %500  ;;  %v4352_v47 = vpop.permute.xlu0 %498 }
  0xbb   : > { %8037 = vst [vmem:[#allocation96_spill] sm:$0xff] %v4350_v49 }
  0xbc   : > { %8038 = vst [vmem:[#allocation97_spill] sm:$0xff] %v4352_v47 }
  0xbf   : > { %739 = vrot.lane.b32.xlu2 %v3727_v9, %s3658_s26 }
  0xc0   : > { %737 = vrot.lane.b32.xlu1 %v3723_v6, %s3658_s26  ;;  %701 = vrot.lane.b32.xlu0 %v4355_v1, %s3657_s25 }
  0xc1   : > { %v4363_v32 = vpop.permute.xlu2 %639 }
  0xc2   : > { %8039 = vst [vmem:[#allocation98_spill] sm:$0xff] %v4363_v32  ;;  %v4365_v26 = vpop.permute.xlu1 %506  ;;  %v4367_v54 = vpop.permute.xlu0 %504 }
  0xc3   : > { %8040 = vst [vmem:[#allocation99_spill] sm:$0xff] %v4365_v26 }
  0xc4   : > { %8041 = vst [vmem:[#allocation100_spill] sm:$0xff] %v4367_v54 }
  0xc7   : > { %745 = vrot.lane.b32.xlu2 %v3790_v42, %s3658_s26 }
  0xc8   : > { %743 = vrot.lane.b32.xlu1 %v3720_v4, %s3658_s26  ;;  %741 = vrot.lane.b32.xlu0 %v3718_v3, %s3658_s26 }
  0xc9   : > { %v4375_v5 = vpop.permute.xlu2 %645 }
  0xca   : > { %8042 = vst [vmem:[#allocation101_spill] sm:$0xff] %v4375_v5  ;;  %v4377_v2 = vpop.permute.xlu1 %512  ;;  %v4379_v0 = vpop.permute.xlu0 %510 }
  0xcb   : > { %8043 = vst [vmem:[#allocation102_spill] sm:$0xff] %v4377_v2 }
  0xcc   : > { %8044 = vst [vmem:[#allocation103_spill] sm:$0xff] %v4379_v0 }
  0xcf   : > { %751 = vrot.lane.b32.xlu2 %v3781_v37, %s3658_s26 }
  0xd0   : > { %749 = vrot.lane.b32.xlu1 %v3779_v36, %s3658_s26  ;;  %747 = vrot.lane.b32.xlu0 %v3783_v38, %s3658_s26 }
  0xd1   : > { %v4387_v28 = vpop.permute.xlu2 %651 }
  0xd2   : > { %8045 = vst [vmem:[#allocation104_spill] sm:$0xff] %v4387_v28  ;;  %v4389_v33 = vpop.permute.xlu1 %518  ;;  %v4391_v26 = vpop.permute.xlu0 %516 }
  0xd3   : > { %8046 = vst [vmem:[#allocation105_spill] sm:$0xff] %v4389_v33 }
  0xd4   : > { %8047 = vst [vmem:[#allocation106_spill] sm:$0xff] %v4391_v26 }
  0xd7   : > { %757 = vrot.lane.b32.xlu2 %v3861_v20, %s3658_s26 }
  0xd8   : > { %755 = vrot.lane.b32.xlu1 %v3814_v53, %s3658_s26  ;;  %753 = vrot.lane.b32.xlu0 %v3823_v57, %s3658_s26 }
  0xd9   : > { %v4399_v2 = vpop.permute.xlu2 %657 }
  0xda   : > { %8048 = vst [vmem:[#allocation107_spill] sm:$0xff] %v4399_v2  ;;  %v4401_v0 = vpop.permute.xlu1 %524  ;;  %v4403_v54 = vpop.permute.xlu0 %522 }
  0xdb   : > { %8049 = vst [vmem:[#allocation108_spill] sm:$0xff] %v4401_v0 }
  0xdc   : > { %8050 = vst [vmem:[#allocation109_spill] sm:$0xff] %v4403_v54 }
  0xdf   : > { %763 = vrot.lane.b32.xlu2 %v3850_v13, %s3658_s26 }
  0xe0   : > { %761 = vrot.lane.b32.xlu1 %v3848_v8, %s3658_s26  ;;  %759 = vrot.lane.b32.xlu0 %v3852_v14, %s3658_s26 }
  0xe1   : > { %v4411_v33 = vpop.permute.xlu2 %663 }
  0xe2   : > { %8051 = vst [vmem:[#allocation110_spill] sm:$0xff] %v4411_v33  ;;  %v4413_v26 = vpop.permute.xlu1 %643  ;;  %v4415_v49 = vpop.permute.xlu0 %641 }
  0xe3   : > { %8052 = vst [vmem:[#allocation111_spill] sm:$0xff] %v4413_v26  ;;  %v8080_v26 = vld [vmem:[#allocation17_spill] sm:$0xff] }
  0xe4   : > { %8053 = vst [vmem:[#allocation112_spill] sm:$0xff] %v4415_v49 }
  0xe7   : > { %769 = vrot.lane.b32.xlu2 %v3933_v60, %s3658_s26 }
  0xe8   : > { %767 = vrot.lane.b32.xlu1 %v3886_v44, %s3658_s26  ;;  %765 = vrot.lane.b32.xlu0 %v3895_v48, %s3658_s26 }
  0xe9   : > { %v4423_v0 = vpop.permute.xlu2 %669 }
  0xea   : > { %8054 = vst [vmem:[#allocation113_spill] sm:$0xff] %v4423_v0  ;;  %v4425_v54 = vpop.permute.xlu1 %649  ;;  %v4427_v2 = vpop.permute.xlu0 %647 }
  0xeb   : > { %8055 = vst [vmem:[#allocation114_spill] sm:$0xff] %v4425_v54 }
  0xec   : > { %8056 = vst [vmem:[#allocation115_spill] sm:$0xff] %v4427_v2 }
  0xef   : > { %775 = vrot.lane.b32.xlu2 %v3922_v30, %s3658_s26 }
  0xf0   : > { %773 = vrot.lane.b32.xlu1 %v3920_v29, %s3658_s26  ;;  %771 = vrot.lane.b32.xlu0 %v3924_v31, %s3658_s26 }
  0xf1   : > { %v4435_v33 = vpop.permute.xlu2 %675 }
  0xf2   : > { %8057 = vst [vmem:[#allocation116_spill] sm:$0xff] %v4435_v33  ;;  %v4437_v47 = vpop.permute.xlu1 %655  ;;  %v4439_v28 = vpop.permute.xlu0 %653 }
  0xf3   : > { %8058 = vst [vmem:[#allocation117_spill] sm:$0xff] %v4437_v47 }
  0xf4   : > { %8059 = vst [vmem:[#allocation118_spill] sm:$0xff] %v4439_v28 }
  0xf7   : > { %781 = vrot.lane.b32.xlu2 %v4005_v61, %s3658_s26 }
  0xf8   : > { %779 = vrot.lane.b32.xlu1 %v3958_v41, %s3658_s26  ;;  %777 = vrot.lane.b32.xlu0 %v3967_v24, %s3658_s26 }
  0xf9   : > { %v4447_v0 = vpop.permute.xlu2 %681 }
  0xfa   : > { %8060 = vst [vmem:[#allocation119_spill] sm:$0xff] %v4447_v0  ;;  %v4449_v54 = vpop.permute.xlu1 %661  ;;  %v4451_v33 = vpop.permute.xlu0 %659  ;;  %v273_v0 = vld [vmem:[%s3713_s23 + $0x180] sm:$0xff] }
  0xfb   : > { %8061 = vst [vmem:[#allocation120_spill] sm:$0xff] %v4449_v54  ;;  %v274_v54 = vld [vmem:[%s3713_s23 + $0x188] sm:$0xff] }
  0xfc   : > { %8062 = vst [vmem:[#allocation121_spill] sm:$0xff] %v4451_v33 }
  0xff   : > { %787 = vrot.lane.b32.xlu2 %v3994_v45, %s3658_s26 }
 0x100   : > { %785 = vrot.lane.b32.xlu1 %v3992_v16, %s3658_s26  ;;  %783 = vrot.lane.b32.xlu0 %v3996_v58, %s3658_s26 }
 0x101   : > { %v4459_v47 = vpop.permute.xlu2 %687 }
 0x102   : > { %8063 = vst [vmem:[#allocation122_spill] sm:$0xff] %v4459_v47  ;;  %v4461_v28 = vpop.permute.xlu1 %667  ;;  %v4463_v2 = vpop.permute.xlu0 %665 }
 0x103   : > { %8064 = vst [vmem:[#allocation123_spill] sm:$0xff] %v4461_v28  ;;  %v4479_v28 = vmax.f32 %v274_v54, 0.0 }
 0x104   : > { %8065 = vst [vmem:[#allocation124_spill] sm:$0xff] %v4463_v2  ;;  %v4481_v2 = vmax.f32 %v273_v0, 0.0 }
 0x107   : > { %793 = vrot.lane.b32.xlu2 %v4071_v56, %s3658_s26 }
 0x108   : > { %791 = vrot.lane.b32.xlu1 %v4030_v21, %s3658_s26  ;;  %789 = vrot.lane.b32.xlu0 %v4033_v46, %s3658_s26 }
 0x109   : > { %v4472_v33 = vpop.permute.xlu2 %693 }
 0x10a   : > { %8066 = vst [vmem:[#allocation125_spill] sm:$0xff] %v4472_v33  ;;  %v4475_v5 = vpop.permute.xlu1 %673  ;;  %v4477_v47 = vpop.permute.xlu0 %671 }
 0x10b   : > { %8067 = vst [vmem:[#allocation126_spill] sm:$0xff] %v4475_v5 }
 0x10c   : > { %8068 = vst [vmem:[#allocation127_spill] sm:$0xff] %v4477_v47 }
 0x10f   : > { %799 = vrot.lane.b32.xlu2 %v4479_v28, %s3658_s26 }
 0x110   : > { %797 = vrot.lane.b32.xlu1 %v4481_v2, %s3658_s26  ;;  %795 = vrot.lane.b32.xlu0 %v4068_v35, %s3658_s26 }
 0x111   : > { %v4489_v9 = vpop.permute.xlu2 %699 }
 0x112   : > { %8069 = vst [vmem:[#allocation128_spill] sm:$0xff] %v4489_v9  ;;  %v4491_v33 = vpop.permute.xlu1 %679  ;;  %v4493_v5 = vpop.permute.xlu0 %677  ;;  %v8075_v9 = vld [vmem:[#allocation11_spill] sm:$0xff] }
 0x113   : > { %8070 = vst [vmem:[#allocation129_spill] sm:$0xff] %v4491_v33  ;;  %v8076_v33 = vld [vmem:[#allocation6_spill] sm:$0xff] }
 0x114   : > { %8071 = vst [vmem:[#allocation130_spill] sm:$0xff] %v4493_v5 }
 0x117   : > { %843 = vrot.lane.b32.xlu2 %v3751_v23, %s3659_s27 }
 0x118   : > { %841 = vrot.lane.b32.xlu1 %v3786_v39, %s3659_s27  ;;  %839 = vrot.lane.b32.xlu0 %v3757_v25, %s3659_s27 }
 0x119   : > { %v4501_v0 = vpop.permute.xlu2 %739 }
 0x11a   : > { %8072 = vst [vmem:[#allocation131_spill] sm:$0xff] %v4501_v0  ;;  %v4503_v54 = vpop.permute.xlu1 %685  ;;  %v4505_v47 = vpop.permute.xlu0 %683 }
 0x11b   : > { %8073 = vst [vmem:[#allocation132_spill] sm:$0xff] %v4503_v54  ;;  %v8081_v54 = vld [vmem:[#allocation18_spill] sm:$0xff] }
 0x11c   : > { %8074 = vst [vmem:[#allocation133_spill] sm:$0xff] %v4505_v47  ;;  %v8082_v47 = vld [vmem:[#allocation8_spill] sm:$0xff] }
 0x11f   : > { %849 = vrot.lane.b32.xlu2 %v3818_v55, %s3659_s27 }
 0x120   : > { %847 = vrot.lane.b32.xlu1 %v8075_v9, %s3659_s27  ;;  %845 = vrot.lane.b32.xlu0 %v8076_v33, %s3659_s27 }
 0x121   : > { %v4513_v5 = vpop.permute.xlu2 %745 }
 0x122   : > { %8077 = vst [vmem:[#allocation11_spill] sm:$0xff] %v4513_v5  ;;  %v4515_v39 = vpop.permute.xlu1 %691  ;;  %v4517_v25 = vpop.permute.xlu0 %689  ;;  %v8086_v5 = vld [vmem:[#allocation21_spill] sm:$0xff] }
 0x123   : > { %8078 = vst [vmem:[#allocation6_spill] sm:$0xff] %v4515_v39  ;;  %v8087_v39 = vld [vmem:[#allocation22_spill] sm:$0xff] }
 0x124   : > { %8079 = vst [vmem:[#allocation134_spill] sm:$0xff] %v4517_v25  ;;  %v8088_v25 = vld [vmem:[#allocation13_spill] sm:$0xff] }
 0x127   : > { %855 = vrot.lane.b32.xlu2 %v8080_v26, %s3659_s27 }
 0x128   : > { %853 = vrot.lane.b32.xlu1 %v8081_v54, %s3659_s27  ;;  %851 = vrot.lane.b32.xlu0 %v8082_v47, %s3659_s27 }
 0x129   : > { %v4525_v6 = vpop.permute.xlu2 %751 }
 0x12a   : > { %8083 = vst [vmem:[#allocation18_spill] sm:$0xff] %v4525_v6  ;;  %v4527_v0 = vpop.permute.xlu1 %697  ;;  %v4529_v49 = vpop.permute.xlu0 %695  ;;  %v8092_v6 = vld [vmem:[#allocation26_spill] sm:$0xff] }
 0x12b   : > { %8084 = vst [vmem:[#allocation8_spill] sm:$0xff] %v4527_v0  ;;  %v8093_v0 = vld [vmem:[#allocation27_spill] sm:$0xff] }
 0x12c   : > { %8085 = vst [vmem:[#allocation135_spill] sm:$0xff] %v4529_v49  ;;  %v8094_v49 = vld [vmem:[#allocation20_spill] sm:$0xff] }
 0x12f   : > { %861 = vrot.lane.b32.xlu2 %v8086_v5, %s3659_s27 }
 0x130   : > { %859 = vrot.lane.b32.xlu1 %v8087_v39, %s3659_s27  ;;  %857 = vrot.lane.b32.xlu0 %v8088_v25, %s3659_s27 }
 0x131   : > { %v4537_v32 = vpop.permute.xlu2 %757 }
 0x132   : > { %8089 = vst [vmem:[#allocation136_spill] sm:$0xff] %v4537_v32  ;;  %v4539_v26 = vpop.permute.xlu1 %737  ;;  %v4541_v55 = vpop.permute.xlu0 %701  ;;  %v8098_v32 = vld [vmem:[#allocation30_spill] sm:$0xff] }
 0x133   : > { %8090 = vst [vmem:[#allocation137_spill] sm:$0xff] %v4539_v26  ;;  %v8100_v26 = vld [vmem:[#allocation24_spill] sm:$0xff] }
 0x134   : > { %8091 = vst [vmem:[#allocation138_spill] sm:$0xff] %v4541_v55  ;;  %v8099_v55 = vld [vmem:[#allocation31_spill] sm:$0xff] }
 0x137   : > { %867 = vrot.lane.b32.xlu2 %v8092_v6, %s3659_s27 }
 0x138   : > { %865 = vrot.lane.b32.xlu1 %v8093_v0, %s3659_s27  ;;  %863 = vrot.lane.b32.xlu0 %v8094_v49, %s3659_s27 }
 0x139   : > { %v4549_v5 = vpop.permute.xlu2 %763 }
 0x13a   : > { %8095 = vst [vmem:[#allocation139_spill] sm:$0xff] %v4549_v5  ;;  %v4551_v39 = vpop.permute.xlu1 %743  ;;  %v4553_v25 = vpop.permute.xlu0 %741  ;;  %v8104_v5 = vld [vmem:[#allocation37_spill] sm:$0xff] }
 0x13b   : > { %8096 = vst [vmem:[#allocation140_spill] sm:$0xff] %v4551_v39  ;;  %v8105_v39 = vld [vmem:[#allocation38_spill] sm:$0xff] }
 0x13c   : > { %8097 = vst [vmem:[#allocation141_spill] sm:$0xff] %v4553_v25  ;;  %v8106_v25 = vld [vmem:[#allocation28_spill] sm:$0xff] }
 0x13f   : > { %873 = vrot.lane.b32.xlu2 %v8098_v32, %s3659_s27 }
 0x140   : > { %871 = vrot.lane.b32.xlu1 %v8099_v55, %s3659_s27  ;;  %869 = vrot.lane.b32.xlu0 %v8100_v26, %s3659_s27 }
 0x141   : > { %v4561_v6 = vpop.permute.xlu2 %769 }
 0x142   : > { %8101 = vst [vmem:[#allocation142_spill] sm:$0xff] %v4561_v6  ;;  %v4563_v0 = vpop.permute.xlu1 %749  ;;  %v4565_v49 = vpop.permute.xlu0 %747  ;;  %v8110_v6 = vld [vmem:[#allocation43_spill] sm:$0xff] }
 0x143   : > { %8102 = vst [vmem:[#allocation143_spill] sm:$0xff] %v4563_v0  ;;  %v8111_v0 = vld [vmem:[#allocation44_spill] sm:$0xff] }
 0x144   : > { %8103 = vst [vmem:[#allocation144_spill] sm:$0xff] %v4565_v49  ;;  %v8112_v49 = vld [vmem:[#allocation33_spill] sm:$0xff] }
 0x147   : > { %879 = vrot.lane.b32.xlu2 %v8104_v5, %s3659_s27 }
 0x148   : > { %877 = vrot.lane.b32.xlu1 %v8105_v39, %s3659_s27  ;;  %875 = vrot.lane.b32.xlu0 %v8106_v25, %s3659_s27 }
 0x149   : > { %v4573_v32 = vpop.permute.xlu2 %775 }
 0x14a   : > { %8107 = vst [vmem:[#allocation145_spill] sm:$0xff] %v4573_v32  ;;  %v4575_v55 = vpop.permute.xlu1 %755  ;;  %v4577_v26 = vpop.permute.xlu0 %753 }
 0x14b   : > { %8108 = vst [vmem:[#allocation146_spill] sm:$0xff] %v4575_v55  ;;  %v8116_v55 = vld [vmem:[#allocation40_spill] sm:$0xff] }
 0x14c   : > { %8109 = vst [vmem:[#allocation147_spill] sm:$0xff] %v4577_v26 }
 0x14f   : > { %885 = vrot.lane.b32.xlu2 %v8110_v6, %s3659_s27 }
 0x150   : > { %883 = vrot.lane.b32.xlu1 %v8111_v0, %s3659_s27  ;;  %881 = vrot.lane.b32.xlu0 %v8112_v49, %s3659_s27 }
 0x151   : > { %v4585_v5 = vpop.permute.xlu2 %781 }
 0x152   : > { %8113 = vst [vmem:[#allocation44_spill] sm:$0xff] %v4585_v5  ;;  %v4587_v39 = vpop.permute.xlu1 %761  ;;  %v4589_v25 = vpop.permute.xlu0 %759  ;;  %v4604_v5 = vld [vmem:[%s3713_s23 + $0x190] sm:$0x3] }
 0x153   : > { %8114 = vst [vmem:[#allocation33_spill] sm:$0xff] %v4587_v39  ;;  %v7776_v39 = vmax.f32 %v4604_v5, 0.0 }
 0x154   : > { %8115 = vst [vmem:[#allocation148_spill] sm:$0xff] %v4589_v25  ;;  %v8120_v25 = vld [vmem:[#allocation45_spill] sm:$0xff] }
 0x157   : > { %891 = vrot.lane.b32.xlu2 %v4063_v7, %s3659_s27 }
 0x158   : > { %889 = vrot.lane.b32.xlu1 %v4066_v52, %s3659_s27  ;;  %887 = vrot.lane.b32.xlu0 %v8116_v55, %s3659_s27 }
 0x159   : > { %v4597_v26 = vpop.permute.xlu2 %787 }
 0x15a   : > { %8117 = vst [vmem:[#allocation149_spill] sm:$0xff] %v4597_v26  ;;  %v4599_v32 = vpop.permute.xlu1 %767  ;;  %v4601_v6 = vpop.permute.xlu0 %765  ;;  %v835_v26 = vrot.slane %v4479_v28, 1 }
 0x15b   : > { %8118 = vst [vmem:[#allocation150_spill] sm:$0xff] %v4599_v32  ;;  %v837_v32 = vrot.slane %v7776_v39, 1 }
 0x15c   : > { %8119 = vst [vmem:[#allocation151_spill] sm:$0xff] %v4601_v6  ;;  %v834_v6 = vrot.slane %v4481_v2, 1 }
 0x15f   : > { %897 = vrot.lane.b32.xlu2 %v4087_v43, %s3659_s27  ;;  %v4624_v43 = vsel %vm381_vm0, %v835_v26, %v837_v32 }
 0x160   : > { %895 = vrot.lane.b32.xlu1 %v4090_v18, %s3659_s27  ;;  %893 = vrot.lane.b32.xlu0 %v8120_v25, %s3659_s27  ;;  %v4627_v18 = vsel %vm381_vm0, %v834_v6, %v835_v26  ;;  %v8127_v6 = vld [vmem:[#allocation56_spill] sm:$0xff] }
 0x161   : > { %v4613_v7 = vpop.permute.xlu2 %793 }
 0x162   : > { %8121 = vst [vmem:[#allocation45_spill] sm:$0xff] %v4613_v7  ;;  %v4619_v55 = vpop.permute.xlu1 %773  ;;  %v4621_v52 = vpop.permute.xlu0 %771 }
 0x163   : > { %8122 = vst [vmem:[#allocation152_spill] sm:$0xff] %v4619_v55 }
 0x164   : > { %8123 = vst [vmem:[#allocation153_spill] sm:$0xff] %v4621_v52 }
 0x167   : > { %940 = vrot.lane.b32.xlu2 %v4107_v59, %s3660_s28  ;;  %v8128_v59 = vld [vmem:[#allocation52_spill] sm:$0xff] }
 0x168   : > { %901 = vrot.lane.b32.xlu1 %v4624_v43, %s3659_s27  ;;  %899 = vrot.lane.b32.xlu0 %v4627_v18, %s3659_s27 }
 0x169   : > { %v4635_v39 = vpop.permute.xlu2 %799 }
 0x16a   : > { %8124 = vst [vmem:[#allocation154_spill] sm:$0xff] %v4635_v39  ;;  %v4637_v7 = vpop.permute.xlu1 %779  ;;  %v4639_v55 = vpop.permute.xlu0 %777  ;;  %v8132_v39 = vld [vmem:[#allocation54_spill] sm:$0xff] }
 0x16b   : > { %8125 = vst [vmem:[#allocation155_spill] sm:$0xff] %v4637_v7 }
 0x16c   : > { %8126 = vst [vmem:[#allocation156_spill] sm:$0xff] %v4639_v55 }
 0x16f   : > { %946 = vrot.lane.b32.xlu2 %v4127_v27, %s3660_s28 }
 0x170   : > { %944 = vrot.lane.b32.xlu1 %v8127_v6, %s3660_s28  ;;  %942 = vrot.lane.b32.xlu0 %v8128_v59, %s3660_s28 }
 0x171   : > { %v4647_v32 = vpop.permute.xlu2 %843 }
 0x172   : > { %8129 = vst [vmem:[#allocation56_spill] sm:$0xff] %v4647_v32  ;;  %v4649_v26 = vpop.permute.xlu1 %785  ;;  %v4651_v52 = vpop.permute.xlu0 %783  ;;  %v8136_v32 = vld [vmem:[#allocation62_spill] sm:$0xff] }
 0x173   : > { %8130 = vst [vmem:[#allocation52_spill] sm:$0xff] %v4649_v26  ;;  %v8137_v26 = vld [vmem:[#allocation63_spill] sm:$0xff] }
 0x174   : > { %8131 = vst [vmem:[#allocation157_spill] sm:$0xff] %v4651_v52  ;;  %v8138_v52 = vld [vmem:[#allocation58_spill] sm:$0xff] }
 0x177   : > { %952 = vrot.lane.b32.xlu2 %v4150_v34, %s3660_s28 }
 0x178   : > { %950 = vrot.lane.b32.xlu1 %v4153_v15, %s3660_s28  ;;  %948 = vrot.lane.b32.xlu0 %v8132_v39, %s3660_s28 }
 0x179   : > { %v4659_v7 = vpop.permute.xlu2 %849 }
 0x17a   : > { %8133 = vst [vmem:[#allocation158_spill] sm:$0xff] %v4659_v7  ;;  %v4661_v55 = vpop.permute.xlu1 %791  ;;  %v4663_v59 = vpop.permute.xlu0 %789 }
 0x17b   : > { %8134 = vst [vmem:[#allocation159_spill] sm:$0xff] %v4661_v55  ;;  %v8142_v55 = vld [vmem:[#allocation61_spill] sm:$0xff] }
 0x17c   : > { %8135 = vst [vmem:[#allocation160_spill] sm:$0xff] %v4663_v59 }
 0x17f   : > { %958 = vrot.lane.b32.xlu2 %v8136_v32, %s3660_s28 }
 0x180   : > { %956 = vrot.lane.b32.xlu1 %v8137_v26, %s3660_s28  ;;  %954 = vrot.lane.b32.xlu0 %v8138_v52, %s3660_s28 }
 0x181   : > { %v4671_v34 = vpop.permute.xlu2 %855 }
 0x182   : > { %8139 = vst [vmem:[#allocation63_spill] sm:$0xff] %v4671_v34  ;;  %v4673_v27 = vpop.permute.xlu1 %797  ;;  %v4675_v39 = vpop.permute.xlu0 %795 }
 0x183   : > { %8140 = vst [vmem:[#allocation58_spill] sm:$0xff] %v4673_v27  ;;  %v8146_v27 = vld [vmem:[#allocation74_spill] sm:$0xff] }
 0x184   : > { %8141 = vst [vmem:[#allocation161_spill] sm:$0xff] %v4675_v39  ;;  %v8147_v39 = vld [vmem:[#allocation67_spill] sm:$0xff] }
 0x187   : > { %964 = vrot.lane.b32.xlu2 %v4200_v17, %s3660_s28 }
 0x188   : > { %962 = vrot.lane.b32.xlu1 %v4203_v40, %s3660_s28  ;;  %960 = vrot.lane.b32.xlu0 %v8142_v55, %s3660_s28 }
 0x189   : > { %v4683_v59 = vpop.permute.xlu2 %861 }
 0x18a   : > { %8143 = vst [vmem:[#allocation162_spill] sm:$0xff] %v4683_v59  ;;  %v4685_v7 = vpop.permute.xlu1 %841  ;;  %v4687_v32 = vpop.permute.xlu0 %839  ;;  %v8151_v59 = vld [vmem:[#allocation72_spill] sm:$0xff] }
 0x18b   : > { %8144 = vst [vmem:[#allocation163_spill] sm:$0xff] %v4685_v7 }
 0x18c   : > { %8145 = vst [vmem:[#allocation164_spill] sm:$0xff] %v4687_v32 }
 0x18f   : > { %970 = vrot.lane.b32.xlu2 %v4227_v22, %s3660_s28 }
 0x190   : > { %968 = vrot.lane.b32.xlu1 %v8146_v27, %s3660_s28  ;;  %966 = vrot.lane.b32.xlu0 %v8147_v39, %s3660_s28 }
 0x191   : > { %v4695_v34 = vpop.permute.xlu2 %867 }
 0x192   : > { %8148 = vst [vmem:[#allocation74_spill] sm:$0xff] %v4695_v34  ;;  %v4697_v17 = vpop.permute.xlu1 %847  ;;  %v4699_v55 = vpop.permute.xlu0 %845  ;;  %v8155_v34 = vld [vmem:[#allocation85_spill] sm:$0xff] }
 0x193   : > { %8149 = vst [vmem:[#allocation67_spill] sm:$0xff] %v4697_v17  ;;  %v8156_v17 = vld [vmem:[#allocation78_spill] sm:$0xff] }
 0x194   : > { %8150 = vst [vmem:[#allocation165_spill] sm:$0xff] %v4699_v55 }
 0x197   : > { %976 = vrot.lane.b32.xlu2 %v4254_v63, %s3660_s28 }
 0x198   : > { %974 = vrot.lane.b32.xlu1 %v4257_v50, %s3660_s28  ;;  %972 = vrot.lane.b32.xlu0 %v8151_v59, %s3660_s28 }
 0x199   : > { %v4707_v7 = vpop.permute.xlu2 %873 }
 0x19a   : > { %8152 = vst [vmem:[#allocation166_spill] sm:$0xff] %v4707_v7  ;;  %v4709_v32 = vpop.permute.xlu1 %853  ;;  %v4711_v22 = vpop.permute.xlu0 %851 }
 0x19b   : > { %8153 = vst [vmem:[#allocation167_spill] sm:$0xff] %v4709_v32  ;;  %v8160_v32 = vld [vmem:[#allocation83_spill] sm:$0xff] }
 0x19c   : > { %8154 = vst [vmem:[#allocation168_spill] sm:$0xff] %v4711_v22 }
 0x19f   : > { %982 = vrot.lane.b32.xlu2 %v4281_v10, %s3660_s28 }
 0x1a0   : > { %980 = vrot.lane.b32.xlu1 %v8155_v34, %s3660_s28  ;;  %978 = vrot.lane.b32.xlu0 %v8156_v17, %s3660_s28 }
 0x1a1   : > { %v4719_v55 = vpop.permute.xlu2 %879 }
 0x1a2   : > { %8157 = vst [vmem:[#allocation85_spill] sm:$0xff] %v4719_v55  ;;  %v4721_v63 = vpop.permute.xlu1 %859  ;;  %v4723_v59 = vpop.permute.xlu0 %857  ;;  %v936_v55 = vrot.slane %v4479_v28, 2 }
 0x1a3   : > { %8158 = vst [vmem:[#allocation78_spill] sm:$0xff] %v4721_v63  ;;  %v8164_v63 = vld [vmem:[#allocation89_spill] sm:$0xff] }
 0x1a4   : > { %8159 = vst [vmem:[#allocation169_spill] sm:$0xff] %v4723_v59  ;;  %v935_v59 = vrot.slane %v4481_v2, 2 }
 0x1a7   : > { %988 = vrot.lane.b32.xlu2 %v4308_v62, %s3660_s28 }
 0x1a8   : > { %986 = vrot.lane.b32.xlu1 %v4311_v19, %s3660_s28  ;;  %984 = vrot.lane.b32.xlu0 %v8160_v32, %s3660_s28 }
 0x1a9   : > { %v4731_v22 = vpop.permute.xlu2 %885 }
 0x1aa   : > { %8161 = vst [vmem:[#allocation83_spill] sm:$0xff] %v4731_v22  ;;  %v4733_v7 = vpop.permute.xlu1 %865  ;;  %v4735_v10 = vpop.permute.xlu0 %863 }
 0x1ab   : > { %8162 = vst [vmem:[#allocation170_spill] sm:$0xff] %v4733_v7 }
 0x1ac   : > { %8163 = vst [vmem:[#allocation171_spill] sm:$0xff] %v4735_v10  ;;  %v4752_v10 = vsel %vm558_vm1, %v935_v59, %v936_v55 }
 0x1af   : > { %994 = vrot.lane.b32.xlu2 %v4335_v12, %s3660_s28 }
 0x1b0   : > { %992 = vrot.lane.b32.xlu1 %v4338_v11, %s3660_s28  ;;  %990 = vrot.lane.b32.xlu0 %v8164_v63, %s3660_s28 }
 0x1b1   : > { %v4745_v62 = vpop.permute.xlu2 %891 }
 0x1b2   : > { %8165 = vst [vmem:[#allocation172_spill] sm:$0xff] %v4745_v62  ;;  %v4747_v22 = vpop.permute.xlu1 %871  ;;  %v4749_v7 = vpop.permute.xlu0 %869  ;;  %v8169_v62 = vmax.f32 %v4604_v5, 0.0 }
 0x1b3   : > { %8166 = vst [vmem:[#allocation173_spill] sm:$0xff] %v4747_v22 }
 0x1b4   : > { %8167 = vst [vmem:[#allocation174_spill] sm:$0xff] %v4749_v7  ;;  %v938_v63 = vrot.slane %v8169_v62, 2 }
 0x1b6   : > { %v4769_v59 = vsel %vm558_vm1, %v936_v55, %v938_v63 }
 0x1b7   : > { %1000 = vrot.lane.b32.xlu2 %v4752_v10, %s3660_s28 }
 0x1b8   : > { %998 = vrot.lane.b32.xlu1 %v4355_v1, %s3660_s28  ;;  %996 = vrot.lane.b32.xlu0 %v4332_v51, %s3660_s28 }
 0x1b9   : > { %v4760_v12 = vpop.permute.xlu2 %897 }
 0x1ba   : > { %8168 = vst [vmem:[#allocation175_spill] sm:$0xff] %v4760_v12  ;;  %v4764_v22 = vpop.permute.xlu1 %877  ;;  %v4766_v7 = vpop.permute.xlu0 %875 }
 0x1bb   : > { %8170 = vst [vmem:[#allocation176_spill] sm:$0xff] %v4764_v22 }
 0x1bf   : > { %1040 = vrot.lane.b32.xlu2 %v3720_v4, %s3661_s29 }
 0x1c0   : > { %1038 = vrot.lane.b32.xlu1 %v3718_v3, %s3661_s29  ;;  %1002 = vrot.lane.b32.xlu0 %v4769_v59, %s3660_s28  ;;  %s7439_s28 = scalar_lea.vmem %s7679_s5, %s3609_s20 }
 0x1c1   : > { %v4777_v12 = vpop.permute.xlu2 %940 }
 0x1c2   : > { %v4779_v62 = vpop.permute.xlu1 %883  ;;  %v4781_v5 = vpop.permute.xlu0 %881 }
 0x1c3   : > { %8171 = vst [vmem:[#allocation177_spill] sm:$0xff] %v4779_v62 }
 0x1c4   : > { %8172 = vst [vmem:[#allocation178_spill] sm:$0xff] %v4781_v5 }
 0x1c7   : > { %1046 = vrot.lane.b32.xlu2 %v3779_v36, %s3661_s29 }
 0x1c8   : > { %1044 = vrot.lane.b32.xlu1 %v3783_v38, %s3661_s29  ;;  %1042 = vrot.lane.b32.xlu0 %v3790_v42, %s3661_s29 }
 0x1c9   : > { %v4789_v55 = vpop.permute.xlu2 %946 }
 0x1ca   : > { %v4791_v63 = vpop.permute.xlu1 %889  ;;  %v4793_v22 = vpop.permute.xlu0 %887 }
 0x1cb   : > { %8173 = vst [vmem:[#allocation179_spill] sm:$0xff] %v4791_v63 }
 0x1cc   : > { %8174 = vst [vmem:[#allocation180_spill] sm:$0xff] %v4793_v22 }
 0x1cf   : > { %1052 = vrot.lane.b32.xlu2 %v3814_v53, %s3661_s29 }
 0x1d0   : > { %1050 = vrot.lane.b32.xlu1 %v3823_v57, %s3661_s29  ;;  %1048 = vrot.lane.b32.xlu0 %v3781_v37, %s3661_s29  ;;  %v8221_v57 = vld [vmem:[#allocation51_spill] sm:$0xff] }
 0x1d1   : > { %v4801_v62 = vpop.permute.xlu2 %952 }
 0x1d2   : > { %v4803_v5 = vpop.permute.xlu1 %895  ;;  %v4805_v36 = vpop.permute.xlu0 %893 }
 0x1d3   : > { %8175 = vst [vmem:[#allocation181_spill] sm:$0xff] %v4803_v5 }
 0x1d4   : > { %8176 = vst [vmem:[#allocation182_spill] sm:$0xff] %v4805_v36 }
 0x1d7   : > { %1058 = vrot.lane.b32.xlu2 %v3848_v8, %s3661_s29 }
 0x1d8   : > { %1056 = vrot.lane.b32.xlu1 %v3852_v14, %s3661_s29  ;;  %1054 = vrot.lane.b32.xlu0 %v3861_v20, %s3661_s29 }
 0x1d9   : > { %v4813_v63 = vpop.permute.xlu2 %958 }
 0x1da   : > { %v4815_v22 = vpop.permute.xlu1 %901  ;;  %v4817_v53 = vpop.permute.xlu0 %899 }
 0x1db   : > { %8177 = vst [vmem:[#allocation183_spill] sm:$0xff] %v4815_v22 }
 0x1dc   : > { %8178 = vst [vmem:[#allocation184_spill] sm:$0xff] %v4817_v53 }
 0x1df   : > { %1064 = vrot.lane.b32.xlu2 %v3886_v44, %s3661_s29 }
 0x1e0   : > { %1062 = vrot.lane.b32.xlu1 %v3895_v48, %s3661_s29  ;;  %1060 = vrot.lane.b32.xlu0 %v3850_v13, %s3661_s29 }
 0x1e1   : > { %v4825_v5 = vpop.permute.xlu2 %964 }
 0x1e2   : > { %8179 = vst [vmem:[#allocation185_spill] sm:$0xff] %v4825_v5  ;;  %v4827_v36 = vpop.permute.xlu1 %944  ;;  %v4829_v8 = vpop.permute.xlu0 %942 }
 0x1e7   : > { %1070 = vrot.lane.b32.xlu2 %v3920_v29, %s3661_s29 }
 0x1e8   : > { %1068 = vrot.lane.b32.xlu1 %v3924_v31, %s3661_s29  ;;  %1066 = vrot.lane.b32.xlu0 %v3933_v60, %s3661_s29 }
 0x1e9   : > { %v4837_v22 = vpop.permute.xlu2 %970 }
 0x1ea   : > { %8180 = vst [vmem:[#allocation186_spill] sm:$0xff] %v4837_v22  ;;  %v4839_v53 = vpop.permute.xlu1 %950  ;;  %v4841_v48 = vpop.permute.xlu0 %948 }
 0x1ef   : > { %1076 = vrot.lane.b32.xlu2 %v3958_v41, %s3661_s29 }
 0x1f0   : > { %1074 = vrot.lane.b32.xlu1 %v3967_v24, %s3661_s29  ;;  %1072 = vrot.lane.b32.xlu0 %v3922_v30, %s3661_s29  ;;  %v8205_v24 = vld [vmem:[#allocation31_spill] sm:$0xff] }
 0x1f1   : > { %v4849_v13 = vpop.permute.xlu2 %976 }
 0x1f2   : > { %v4851_v14 = vpop.permute.xlu1 %956  ;;  %v4853_v5 = vpop.permute.xlu0 %954 }
 0x1f7   : > { %1082 = vrot.lane.b32.xlu2 %v3992_v16, %s3661_s29 }
 0x1f8   : > { %1080 = vrot.lane.b32.xlu1 %v3996_v58, %s3661_s29  ;;  %1078 = vrot.lane.b32.xlu0 %v4005_v61, %s3661_s29 }
 0x1f9   : > { %v4861_v22 = vpop.permute.xlu2 %982 }
 0x1fa   : > { %8181 = vst [vmem:[#allocation187_spill] sm:$0xff] %v4861_v22  ;;  %v4863_v20 = vpop.permute.xlu1 %962  ;;  %v4865_v41 = vpop.permute.xlu0 %960  ;;  %v8216_v22 = vld [vmem:[#allocation40_spill] sm:$0xff] }
 0x1fb   : > { %8182 = vst [vmem:[#allocation188_spill] sm:$0xff] %v4863_v20  ;;  %v276_v20 = vld [vmem:[%s3713_s23 + $0x198] sm:$0xff] }
 0x1fc   : > { %8183 = vst [vmem:[#allocation189_spill] sm:$0xff] %v4865_v41 }
 0x1ff   : > { %1088 = vrot.lane.b32.xlu2 %v4030_v21, %s3661_s29  ;;  %v277_v21 = vld [vmem:[%s3713_s23 + $0x1a0] sm:$0xff] }
 0x200   : > { %1086 = vrot.lane.b32.xlu1 %v4033_v46, %s3661_s29  ;;  %1084 = vrot.lane.b32.xlu0 %v3994_v45, %s3661_s29 }
 0x201   : > { %v4873_v16 = vpop.permute.xlu2 %988 }
 0x202   : > { %8184 = vst [vmem:[#allocation190_spill] sm:$0xff] %v4873_v16  ;;  %v4875_v58 = vpop.permute.xlu1 %968  ;;  %v4877_v61 = vpop.permute.xlu0 %966 }
 0x203   : > { %8185 = vst [vmem:[#allocation191_spill] sm:$0xff] %v4875_v58  ;;  %v4893_v58 = vmax.f32 %v277_v21, 0.0 }
 0x204   : > { %8186 = vst [vmem:[#allocation192_spill] sm:$0xff] %v4877_v61  ;;  %v4895_v61 = vmax.f32 %v276_v20, 0.0 }
 0x207   : > { %1094 = vrot.lane.b32.xlu2 %v4481_v2, %s3661_s29 }
 0x208   : > { %1092 = vrot.lane.b32.xlu1 %v4068_v35, %s3661_s29  ;;  %1090 = vrot.lane.b32.xlu0 %v4071_v56, %s3661_s29 }
 0x209   : > { %v4886_v46 = vpop.permute.xlu2 %994 }
 0x20a   : > { %8187 = vst [vmem:[#allocation193_spill] sm:$0xff] %v4886_v46  ;;  %v4889_v45 = vpop.permute.xlu1 %974  ;;  %v4891_v16 = vpop.permute.xlu0 %972  ;;  %v8196_v46 = vld [vmem:[#allocation13_spill] sm:$0xff] }
 0x20b   : > { %8188 = vst [vmem:[#allocation194_spill] sm:$0xff] %v4891_v16  ;;  %v8195_v16 = vld [vmem:[#allocation22_spill] sm:$0xff] }
 0x20f   : > { %1100 = vrot.lane.b32.xlu2 %v4893_v58, %s3661_s29 }
 0x210   : > { %1098 = vrot.lane.b32.xlu1 %v4895_v61, %s3661_s29  ;;  %1096 = vrot.lane.b32.xlu0 %v4479_v28, %s3661_s29 }
 0x211   : > { %v4903_v2 = vpop.permute.xlu2 %1000 }
 0x212   : > { %8189 = vst [vmem:[#allocation195_spill] sm:$0xff] %v4903_v2  ;;  %v4905_v35 = vpop.permute.xlu1 %980  ;;  %v4907_v56 = vpop.permute.xlu0 %978 }
 0x217   : > { %1144 = vrot.lane.b32.xlu2 %v8075_v9, %s3662_s30  ;;  %v8192_v9 = vld [vmem:[#allocation10_spill] sm:$0xff] }
 0x218   : > { %1142 = vrot.lane.b32.xlu1 %v8076_v33, %s3662_s30  ;;  %1140 = vrot.lane.b32.xlu0 %v3751_v23, %s3662_s30 }
 0x219   : > { %v4915_v21 = vpop.permute.xlu2 %1040 }
 0x21a   : > { %v4917_v20 = vpop.permute.xlu1 %986  ;;  %v4919_v28 = vpop.permute.xlu0 %984 }
 0x21b   : > { %8190 = vst [vmem:[#allocation196_spill] sm:$0xff] %v4917_v20 }
 0x21c   : > { %8191 = vst [vmem:[#allocation197_spill] sm:$0xff] %v4919_v28  ;;  %v8200_v28 = vld [vmem:[#allocation27_spill] sm:$0xff] }
 0x21f   : > { %1150 = vrot.lane.b32.xlu2 %v8081_v54, %s3662_s30  ;;  %v8197_v54 = vld [vmem:[#allocation17_spill] sm:$0xff] }
 0x220   : > { %1148 = vrot.lane.b32.xlu1 %v8082_v47, %s3662_s30  ;;  %1146 = vrot.lane.b32.xlu0 %v8192_v9, %s3662_s30 }
 0x221   : > { %v4927_v2 = vpop.permute.xlu2 %1046 }
 0x222   : > { %v4929_v33 = vpop.permute.xlu1 %992  ;;  %v4931_v23 = vpop.permute.xlu0 %990 }
 0x223   : > { %8193 = vst [vmem:[#allocation10_spill] sm:$0xff] %v4929_v33  ;;  %v8201_v33 = vld [vmem:[#allocation20_spill] sm:$0xff] }
 0x224   : > { %8194 = vst [vmem:[#allocation198_spill] sm:$0xff] %v4931_v23 }
 0x227   : > { %1156 = vrot.lane.b32.xlu2 %v8195_v16, %s3662_s30  ;;  %v8202_v16 = vld [vmem:[#allocation21_spill] sm:$0xff] }
 0x228   : > { %1154 = vrot.lane.b32.xlu1 %v8196_v46, %s3662_s30  ;;  %1152 = vrot.lane.b32.xlu0 %v8197_v54, %s3662_s30 }
 0x229   : > { %v4939_v20 = vpop.permute.xlu2 %1052 }
 0x22a   : > { %v4941_v47 = vpop.permute.xlu1 %998  ;;  %v4943_v9 = vpop.permute.xlu0 %996 }
 0x22b   : > { %8198 = vst [vmem:[#allocation22_spill] sm:$0xff] %v4941_v47  ;;  %v8206_v47 = vld [vmem:[#allocation24_spill] sm:$0xff] }
 0x22c   : > { %8199 = vst [vmem:[#allocation13_spill] sm:$0xff] %v4943_v9 }
 0x22f   : > { %1162 = vrot.lane.b32.xlu2 %v8200_v28, %s3662_s30  ;;  %v8207_v28 = vld [vmem:[#allocation26_spill] sm:$0xff] }
 0x230   : > { %1160 = vrot.lane.b32.xlu1 %v8201_v33, %s3662_s30  ;;  %1158 = vrot.lane.b32.xlu0 %v8202_v16, %s3662_s30 }
 0x231   : > { %v4951_v23 = vpop.permute.xlu2 %1058 }
 0x232   : > { %8203 = vst [vmem:[#allocation17_spill] sm:$0xff] %v4951_v23  ;;  %v4953_v46 = vpop.permute.xlu1 %1038  ;;  %v4955_v54 = vpop.permute.xlu0 %1002  ;;  %v8209_v23 = vld [vmem:[#allocation38_spill] sm:$0xff] }
 0x233   : > { %8204 = vst [vmem:[#allocation27_spill] sm:$0xff] %v4955_v54  ;;  %v8210_v54 = vld [vmem:[#allocation28_spill] sm:$0xff] }
 0x237   : > { %1168 = vrot.lane.b32.xlu2 %v8205_v24, %s3662_s30  ;;  %v8211_v24 = vld [vmem:[#allocation30_spill] sm:$0xff] }
 0x238   : > { %1166 = vrot.lane.b32.xlu1 %v8206_v47, %s3662_s30  ;;  %1164 = vrot.lane.b32.xlu0 %v8207_v28, %s3662_s30 }
 0x239   : > { %v4963_v9 = vpop.permute.xlu2 %1064 }
 0x23a   : > { %8208 = vst [vmem:[#allocation20_spill] sm:$0xff] %v4963_v9  ;;  %v4965_v33 = vpop.permute.xlu1 %1044  ;;  %v4967_v16 = vpop.permute.xlu0 %1042 }
 0x23f   : > { %1174 = vrot.lane.b32.xlu2 %v8209_v23, %s3662_s30  ;;  %v8213_v23 = vld [vmem:[#allocation37_spill] sm:$0xff] }
 0x240   : > { %1172 = vrot.lane.b32.xlu1 %v8210_v54, %s3662_s30  ;;  %1170 = vrot.lane.b32.xlu0 %v8211_v24, %s3662_s30 }
 0x241   : > { %v4975_v41 = vpop.permute.xlu2 %1070 }
 0x242   : > { %8212 = vst [vmem:[#allocation21_spill] sm:$0xff] %v4975_v41  ;;  %v4977_v47 = vpop.permute.xlu1 %1050  ;;  %v4979_v28 = vpop.permute.xlu0 %1048  ;;  %v8215_v41 = vld [vmem:[#allocation47_spill] sm:$0xff] }
 0x247   : > { %1180 = vrot.lane.b32.xlu2 %v8111_v0, %s3662_s30  ;;  %v8217_v0 = vld [vmem:[#allocation43_spill] sm:$0xff] }
 0x248   : > { %1178 = vrot.lane.b32.xlu1 %v8112_v49, %s3662_s30  ;;  %1176 = vrot.lane.b32.xlu0 %v8213_v23, %s3662_s30 }
 0x249   : > { %v4987_v54 = vpop.permute.xlu2 %1076 }
 0x24a   : > { %v4989_v9 = vpop.permute.xlu1 %1056  ;;  %v4991_v24 = vpop.permute.xlu0 %1054 }
 0x24b   : > { %8214 = vst [vmem:[#allocation31_spill] sm:$0xff] %v4989_v9 }
 0x24f   : > { %1186 = vrot.lane.b32.xlu2 %v8215_v41, %s3662_s30  ;;  %v8222_v41 = vld [vmem:[#allocation46_spill] sm:$0xff] }
 0x250   : > { %1184 = vrot.lane.b32.xlu1 %v8216_v22, %s3662_s30  ;;  %1182 = vrot.lane.b32.xlu0 %v8217_v0, %s3662_s30 }
 0x251   : > { %v4999_v49 = vpop.permute.xlu2 %1082 }
 0x252   : > { %8218 = vst [vmem:[#allocation24_spill] sm:$0xff] %v4999_v49  ;;  %v5001_v30 = vpop.permute.xlu1 %1062  ;;  %v5003_v23 = vpop.permute.xlu0 %1060  ;;  %v5018_v49 = vld [vmem:[%s3713_s23 + $0x1a8] sm:$0x3]  ;;  %s3667_s23 = smov 56  }
 0x253   : > { %8219 = vst [vmem:[#allocation26_spill] sm:$0xff] %v5001_v30  ;;  %v7804_v30 = vmax.f32 %v5018_v49, 0.0 }
 0x254   : > { %8220 = vst [vmem:[#allocation38_spill] sm:$0xff] %v5003_v23 }
 0x257   : > { %1192 = vrot.lane.b32.xlu2 %v8221_v57, %s3662_s30  ;;  %v8226_v57 = vld [vmem:[#allocation50_spill] sm:$0xff] }
 0x258   : > { %1190 = vrot.lane.b32.xlu1 %v8120_v25, %s3662_s30  ;;  %1188 = vrot.lane.b32.xlu0 %v8222_v41, %s3662_s30  ;;  %v1136_v41 = vrot.slane %v4893_v58, 1 }
 0x259   : > { %v5011_v9 = vpop.permute.xlu2 %1088 }
 0x25a   : > { %8223 = vst [vmem:[#allocation28_spill] sm:$0xff] %v5011_v9  ;;  %v5013_v22 = vpop.permute.xlu1 %1068  ;;  %v5015_v0 = vpop.permute.xlu0 %1066 }
 0x25b   : > { %8224 = vst [vmem:[#allocation30_spill] sm:$0xff] %v5013_v22  ;;  %v1138_v22 = vrot.slane %v7804_v30, 1 }
 0x25c   : > { %8225 = vst [vmem:[#allocation37_spill] sm:$0xff] %v5015_v0  ;;  %v1135_v0 = vrot.slane %v4895_v61, 1 }
 0x25f   : > { %1198 = vrot.lane.b32.xlu2 %v4624_v43, %s3662_s30  ;;  %v1139_v43 = vsel %vm381_vm0, %v1136_v41, %v1138_v22  ;;  %v8230_v22 = vld [vmem:[#allocation54_spill] sm:$0xff] }
 0x260   : > { %1196 = vrot.lane.b32.xlu1 %v4627_v18, %s3662_s30  ;;  %1194 = vrot.lane.b32.xlu0 %v8226_v57, %s3662_s30  ;;  %v1137_v18 = vsel %vm381_vm0, %v1135_v0, %v1136_v41  ;;  %v8231_v0 = vld [vmem:[#allocation55_spill] sm:$0xff] }
 0x261   : > { %v5027_v25 = vpop.permute.xlu2 %1094 }
 0x262   : > { %8227 = vst [vmem:[#allocation47_spill] sm:$0xff] %v5027_v25  ;;  %v5033_v9 = vpop.permute.xlu1 %1074  ;;  %v5035_v23 = vpop.permute.xlu0 %1072 }
 0x267   : > { %1241 = vrot.lane.b32.xlu2 %v8127_v6, %s3663_s6 }
 0x268   : > { %1202 = vrot.lane.b32.xlu1 %v1139_v43, %s3662_s30  ;;  %1200 = vrot.lane.b32.xlu0 %v1137_v18, %s3662_s30 }
 0x269   : > { %v5043_v57 = vpop.permute.xlu2 %1100 }
 0x26a   : > { %8228 = vst [vmem:[#allocation40_spill] sm:$0xff] %v5043_v57  ;;  %v5045_v30 = vpop.permute.xlu1 %1080  ;;  %v5047_v25 = vpop.permute.xlu0 %1078  ;;  %v8237_v57 = vld [vmem:[#allocation61_spill] sm:$0xff] }
 0x26b   : > { %8229 = vst [vmem:[#allocation43_spill] sm:$0xff] %v5045_v30 }
 0x26f   : > { %1247 = vrot.lane.b32.xlu2 %v4153_v15, %s3663_s6  ;;  %v8234_v15 = vld [vmem:[#allocation59_spill] sm:$0xff] }
 0x270   : > { %1245 = vrot.lane.b32.xlu1 %v8230_v22, %s3663_s6  ;;  %1243 = vrot.lane.b32.xlu0 %v8231_v0, %s3663_s6 }
 0x271   : > { %v5055_v6 = vpop.permute.xlu2 %1144 }
 0x272   : > { %v5057_v41 = vpop.permute.xlu1 %1086  ;;  %v5059_v43 = vpop.permute.xlu0 %1084 }
 0x273   : > { %8232 = vst [vmem:[#allocation51_spill] sm:$0xff] %v5057_v41 }
 0x274   : > { %8233 = vst [vmem:[#allocation46_spill] sm:$0xff] %v5059_v43 }
 0x277   : > { %1253 = vrot.lane.b32.xlu2 %v8137_v26, %s3663_s6  ;;  %v8238_v26 = vld [vmem:[#allocation62_spill] sm:$0xff] }
 0x278   : > { %1251 = vrot.lane.b32.xlu1 %v8138_v52, %s3663_s6  ;;  %1249 = vrot.lane.b32.xlu0 %v8234_v15, %s3663_s6 }
 0x279   : > { %v5067_v18 = vpop.permute.xlu2 %1150 }
 0x27a   : > { %v5069_v22 = vpop.permute.xlu1 %1092  ;;  %v5071_v0 = vpop.permute.xlu0 %1090 }
 0x27b   : > { %8235 = vst [vmem:[#allocation50_spill] sm:$0xff] %v5069_v22 }
 0x27c   : > { %8236 = vst [vmem:[#allocation54_spill] sm:$0xff] %v5071_v0 }
 0x27f   : > { %1259 = vrot.lane.b32.xlu2 %v4203_v40, %s3663_s6  ;;  %v8241_v40 = vld [vmem:[#allocation68_spill] sm:$0xff] }
 0x280   : > { %1257 = vrot.lane.b32.xlu1 %v8237_v57, %s3663_s6  ;;  %1255 = vrot.lane.b32.xlu0 %v8238_v26, %s3663_s6 }
 0x281   : > { %v5079_v41 = vpop.permute.xlu2 %1156 }
 0x282   : > { %v5081_v52 = vpop.permute.xlu1 %1098  ;;  %v5083_v15 = vpop.permute.xlu0 %1096 }
 0x283   : > { %8239 = vst [vmem:[#allocation55_spill] sm:$0xff] %v5081_v52  ;;  %v8243_v52 = vld [vmem:[#allocation72_spill] sm:$0xff] }
 0x284   : > { %8240 = vst [vmem:[#allocation59_spill] sm:$0xff] %v5083_v15 }
 0x287   : > { %1265 = vrot.lane.b32.xlu2 %v8146_v27, %s3663_s6  ;;  %v8244_v27 = vld [vmem:[#allocation73_spill] sm:$0xff] }
 0x288   : > { %1263 = vrot.lane.b32.xlu1 %v8147_v39, %s3663_s6  ;;  %1261 = vrot.lane.b32.xlu0 %v8241_v40, %s3663_s6 }
 0x289   : > { %v5091_v22 = vpop.permute.xlu2 %1162 }
 0x28a   : > { %8242 = vst [vmem:[#allocation61_spill] sm:$0xff] %v5091_v22  ;;  %v5093_v57 = vpop.permute.xlu1 %1142  ;;  %v5095_v26 = vpop.permute.xlu0 %1140 }
 0x28f   : > { %1271 = vrot.lane.b32.xlu2 %v4257_v50, %s3663_s6  ;;  %v8246_v50 = vld [vmem:[#allocation79_spill] sm:$0xff] }
 0x290   : > { %1269 = vrot.lane.b32.xlu1 %v8243_v52, %s3663_s6  ;;  %1267 = vrot.lane.b32.xlu0 %v8244_v27, %s3663_s6 }
 0x291   : > { %v5103_v15 = vpop.permute.xlu2 %1168 }
 0x292   : > { %8245 = vst [vmem:[#allocation62_spill] sm:$0xff] %v5103_v15  ;;  %v5105_v39 = vpop.permute.xlu1 %1148  ;;  %v5107_v40 = vpop.permute.xlu0 %1146  ;;  %v1605_v15 = vld [vmem:[%s7675_s1 + $0x20] sm:$0xf] }
 0x293   : > { %3542 = vmatpush.msk.msra.mxu0 %vm1707_vm2, %v1605_v15  ;;  %3610 = vmatpush.msk.msra.mxu3 %vm1707_vm2, %v1605_v15  ;;  %v1602_v15 = vld [vmem:[%s7675_s1 + $0x8] sm:$0xff]  ;;  %vm3237_vm2 = vcmask 588800  }
 0x297   : > { %1277 = vrot.lane.b32.xlu2 %v8155_v34, %s3663_s6  ;;  %v1604_v34 = vld [vmem:[%s7675_s1 + $0x18] sm:$0xff] }
 0x298   : > { %1275 = vrot.lane.b32.xlu1 %v8156_v17, %s3663_s6  ;;  %1273 = vrot.lane.b32.xlu0 %v8246_v50, %s3663_s6  ;;  %v1603_v17 = vld [vmem:[%s7675_s1 + $0x10] sm:$0xff] }
 0x299   : > { %v5115_v0 = vpop.permute.xlu2 %1174  ;;  %1723 = vmatpush.msra.mxu0 %v1604_v34  ;;  %3611 = vmatpush.msra.mxu3 %v1604_v34  ;;  %v8247_v50 = vld [vmem:[#allocation84_spill] sm:$0xff] }
 0x29a   : > { %v5117_v52 = vpop.permute.xlu1 %1154  ;;  %v5119_v27 = vpop.permute.xlu0 %1152 }
 0x29b   : > { %1724 = vmatpush.msra.mxu0 %v1603_v17  ;;  %3612 = vmatpush.msra.mxu3 %v1603_v17 }
 0x29d   : > { %1725 = vmatpush.msra.mxu0 %v1602_v15  ;;  %3613 = vmatpush.msra.mxu3 %v1602_v15  ;;  %v1236_v15 = vrot.slane %v4895_v61, 2 }
 0x29f   : > { %1283 = vrot.lane.b32.xlu2 %v4311_v19, %s3663_s6  ;;  %v1601_v19 = vld [vmem:[%s7675_s1] sm:$0xff] }
 0x2a0   : > { %1281 = vrot.lane.b32.xlu1 %v8160_v32, %s3663_s6  ;;  %1279 = vrot.lane.b32.xlu0 %v8247_v50, %s3663_s6  ;;  %v8249_v32 = vld [vmem:[#allocation89_spill] sm:$0xff]  ;;  %v8250_v50 = vld [vmem:[#allocation90_spill] sm:$0xff] }
 0x2a1   : > { %v5139_v43 = vpop.permute.xlu2 %1180  ;;  %1726 = vmatpush.msra.mxu0 %v1601_v19  ;;  %3614 = vmatpush.msra.mxu3 %v1601_v19  ;;  %v1237_v19 = vrot.slane %v4893_v58, 2  ;;  %v8259_v58 = vmax.f32 %v5018_v49, 0.0 }
 0x2a2   : > { %v5141_v22 = vpop.permute.xlu1 %1160  ;;  %v5143_v34 = vpop.permute.xlu0 %1158 }
 0x2a3   : > { %8248 = vst [vmem:[#allocation68_spill] sm:$0xff] %v5141_v22 }
 0x2a7   : > { %1289 = vrot.lane.b32.xlu2 %v4338_v11, %s3663_s6  ;;  %v8254_v11 = vld [vmem:[#allocation94_spill] sm:$0xff] }
 0x2a8   : > { %1287 = vrot.lane.b32.xlu1 %v8249_v32, %s3663_s6  ;;  %1285 = vrot.lane.b32.xlu0 %v8250_v50, %s3663_s6 }
 0x2a9   : > { %v5154_v17 = vpop.permute.xlu2 %1186 }
 0x2aa   : > { %8251 = vst [vmem:[#allocation72_spill] sm:$0xff] %v5154_v17  ;;  %v5156_v22 = vpop.permute.xlu1 %1166  ;;  %v5158_v30 = vpop.permute.xlu0 %1164 }
 0x2ab   : > { %8252 = vst [vmem:[#allocation73_spill] sm:$0xff] %v5156_v22 }
 0x2ac   : > { %8253 = vst [vmem:[#allocation79_spill] sm:$0xff] %v5158_v30  ;;  %v1238_v30 = vsel %vm558_vm1, %v1236_v15, %v1237_v19  ;;  %v8260_v15 = vld [vmem:[#allocation66_spill] sm:$0xff] }
 0x2af   : > { %1295 = vrot.lane.b32.xlu2 %v4355_v1, %s3663_s6 }
 0x2b0   : > { %1293 = vrot.lane.b32.xlu1 %v4332_v51, %s3663_s6  ;;  %1291 = vrot.lane.b32.xlu0 %v8254_v11, %s3663_s6  ;;  %v1239_v51 = vrot.slane %v8259_v58, 2  ;;  %v8264_v58 = vld [vmem:[#allocation164_spill] sm:$0xff] }
 0x2b1   : > { %v5168_v32 = vpop.permute.xlu2 %1192 }
 0x2b2   : > { %8255 = vst [vmem:[#allocation84_spill] sm:$0xff] %v5168_v32  ;;  %v5170_v50 = vpop.permute.xlu1 %1172  ;;  %v5172_v22 = vpop.permute.xlu0 %1170  ;;  %v1240_v49 = vsel %vm558_vm1, %v1237_v19, %v1239_v51 }
 0x2b3   : > { %8256 = vst [vmem:[#allocation89_spill] sm:$0xff] %v5170_v50  ;;  %v8261_v50 = vld [vmem:[#allocation4_spill] sm:$0xff] }
 0x2b4   : > { %8257 = vst [vmem:[#allocation90_spill] sm:$0xff] %v5172_v22  ;;  %v8262_v22 = vld [vmem:[#allocation98_spill] sm:$0xff] }
 0x2b7   : > { %1301 = vrot.lane.b32.xlu2 %v1238_v30, %s3663_s6  ;;  %v1338_v30 = vsel %vm1337_vm3, %v8261_v50, %v8260_v15 }
 0x2b8   : > { %1299 = vrot.lane.b32.xlu1 %v4769_v59, %s3663_s6  ;;  %1297 = vrot.lane.b32.xlu0 %v4752_v10, %s3663_s6  ;;  %v1371_v59 = vsel %vm1370_vm4, %v1338_v30, %v8262_v22  ;;  %v8263_v10 = vld [vmem:[#allocation137_spill] sm:$0xff] }
 0x2b9   : > { %v5180_v61 = vpop.permute.xlu2 %1198  ;;  %v1404_v32 = vsel %vm1403_vm5, %v1371_v59, %v8263_v10  ;;  %v8271_v59 = vld [vmem:[#allocation71_spill] sm:$0xff]  ;;  %v8272_v10 = vld [vmem:[#allocation5_spill] sm:$0xff] }
 0x2ba   : > { %8258 = vst [vmem:[#allocation94_spill] sm:$0xff] %v5180_v61  ;;  %v5184_v1 = vpop.permute.xlu1 %1178  ;;  %v5186_v11 = vpop.permute.xlu0 %1176  ;;  %v1437_v61 = vsel %vm1436_vm7, %v1404_v32, %v8264_v58  ;;  %v8273_v58 = vld [vmem:[#allocation112_spill] sm:$0xff] }
 0x2bb   : > { %v1470_v17 = vsel %vm1469_vm6, %v1437_v61, %v4777_v12 }
 0x2bc   : > { %v1503_v50 = vsel %vm1502_vm8, %v1470_v17, %v4953_v46 }
 0x2bd   : > { %v1536_v22 = vsel %vm1535_vm10, %v1503_v50, %v5095_v26 }
 0x2c0   : > { %1303 = vrot.lane.b32.xlu0 %v1240_v49, %s3663_s6  ;;  %v1339_v49 = vsel %vm1337_vm3, %v8272_v10, %v8271_v59 }
 0x2c1   : > { %v1242_v15 = vpop.permute.xlu2 %1241  ;;  %v1372_v50 = vsel %vm1370_vm4, %v1339_v49, %v8273_v58  ;;  %v8276_v58 = vld [vmem:[#allocation65_spill] sm:$0xff] }
 0x2c2   : > { %v5205_v19 = vpop.permute.xlu1 %1184  ;;  %v5207_v51 = vpop.permute.xlu0 %1182  ;;  %v1569_v32 = vsel %vm1568_vm9, %v1536_v22, %v1242_v15  ;;  %v8274_v15 = vld [vmem:[#allocation131_spill] sm:$0xff] }
 0x2c3   : > { %3543 = vmatmul.msk.f32.vlgmr.msra.gmra.mxu0 %vm1610_vm11, %v1569_v32  ;;  %v1405_v32 = vsel %vm1403_vm5, %v1372_v50, %v8274_v15 }
 0x2c9   : > { %v1248_v22 = vpop.permute.xlu2 %1247 }
 0x2ca   : > { %v5211_v12 = vpop.permute.xlu1 %1190  ;;  %v5213_v61 = vpop.permute.xlu0 %1188 }
 0x2cb   : > { %8265 = vst [vmem:[#allocation66_spill] sm:$0xff] %v5211_v12  ;;  %v8275_v12 = vld [vmem:[#allocation163_spill] sm:$0xff] }
 0x2cc   : > { %8266 = vst [vmem:[#allocation4_spill] sm:$0xff] %v5213_v61  ;;  %v8277_v61 = vld [vmem:[#allocation2_spill] sm:$0xff] }
 0x2cd   : > { %v1340_v50 = vsel %vm1337_vm3, %v8277_v61, %v8276_v58  ;;  %v8281_v58 = vld [vmem:[#allocation70_spill] sm:$0xff] }
 0x2d2   : > { %v5215_v46 = vpop.permute.xlu1 %1196  ;;  %v5217_v17 = vpop.permute.xlu0 %1194 }
 0x2d3   : > { %8267 = vst [vmem:[#allocation98_spill] sm:$0xff] %v5215_v46  ;;  %v1438_v46 = vsel %vm1436_vm7, %v1405_v32, %v8275_v12  ;;  %v8278_v12 = vld [vmem:[#allocation111_spill] sm:$0xff] }
 0x2d4   : > { %8268 = vst [vmem:[#allocation137_spill] sm:$0xff] %v5217_v17  ;;  %v1471_v17 = vsel %vm1469_vm6, %v1438_v46, %v4829_v8  ;;  %v1373_v15 = vsel %vm1370_vm4, %v1340_v50, %v8278_v12  ;;  %v8279_v8 = vld [vmem:[#allocation141_spill] sm:$0xff]  ;;  %v8282_v50 = vld [vmem:[#allocation3_spill] sm:$0xff] }
 0x2d5   : > { %v1406_v46 = vsel %vm1403_vm5, %v1373_v15, %v8279_v8  ;;  %v1341_v12 = vsel %vm1337_vm3, %v8282_v50, %v8281_v58  ;;  %v8283_v15 = vld [vmem:[#allocation101_spill] sm:$0xff] }
 0x2d6   : > { %v1374_v8 = vsel %vm1370_vm4, %v1341_v12, %v8283_v15  ;;  %v8286_v58 = vld [vmem:[#allocation53_spill] sm:$0xff]  ;;  %v8288_v12 = vld [vmem:[#allocation11_spill] sm:$0xff] }
 0x2d7   : > { %v1342_v50 = vsel %vm1337_vm3, %v3718_v3, %v8286_v58  ;;  %v8293_v58 = vld [vmem:[#allocation158_spill] sm:$0xff] }
 0x2da   : > { %v5219_v30 = vpop.permute.xlu1 %1202  ;;  %v5221_v26 = vpop.permute.xlu0 %1200 }
 0x2db   : > { %8269 = vst [vmem:[#allocation164_spill] sm:$0xff] %v5219_v30  ;;  %v1504_v30 = vsel %vm1502_vm8, %v1471_v17, %v4915_v21  ;;  %v8280_v21 = vld [vmem:[#allocation56_spill] sm:$0xff] }
 0x2dc   : > { %8270 = vst [vmem:[#allocation199_spill] sm:$0xff] %v5221_v26  ;;  %v1537_v26 = vsel %vm1535_vm10, %v1504_v30, %v5093_v57  ;;  %v1439_v17 = vsel %vm1436_vm7, %v1406_v46, %v8280_v21  ;;  %v1254_v57 = vpop.permute.xlu2 %1253 }
 0x2dd   : > { %v1472_v30 = vsel %vm1469_vm6, %v1439_v17, %v4827_v36  ;;  %v8284_v36 = vld [vmem:[#allocation140_spill] sm:$0xff] }
 0x2de   : > { %v1407_v46 = vsel %vm1403_vm5, %v1374_v8, %v8284_v36  ;;  %v8289_v8 = vld [vmem:[#allocation67_spill] sm:$0xff] }
 0x2e2   : > { %v1246_v59 = vpop.permute.xlu1 %1245  ;;  %v1244_v10 = vpop.permute.xlu0 %1243 }
 0x2e3   : > { %v1570_v49 = vsel %vm1568_vm9, %v1537_v26, %v1244_v10  ;;  %v1505_v26 = vsel %vm1502_vm8, %v1472_v30, %v4967_v16  ;;  %v8285_v16 = vld [vmem:[#allocation165_spill] sm:$0xff] }
 0x2e4   : > { %3544 = vmatmul.msk.f32.gmra.mxu0 %vm1610_vm11, %v1570_v49  ;;  %v1538_v61 = vsel %vm1535_vm10, %v1505_v26, %v5055_v6  ;;  %v1440_v21 = vsel %vm1436_vm7, %v1407_v46, %v8285_v16  ;;  %v5270_v17 = vpop.permute.xlu2 %1259 }
 0x2e5   : > { %v1571_v49 = vsel %vm1568_vm9, %v1538_v61, %v1246_v59  ;;  %v1473_v6 = vsel %vm1469_vm6, %v1440_v21, %v4789_v55  ;;  %v8287_v55 = vld [vmem:[#allocation115_spill] sm:$0xff] }
 0x2e6   : > { %v1506_v59 = vsel %vm1502_vm8, %v1473_v6, %v4965_v33  ;;  %v1375_v33 = vsel %vm1370_vm4, %v1342_v50, %v8287_v55  ;;  %v8290_v6 = vld [vmem:[#allocation57_spill] sm:$0xff] }
 0x2e7   : > { %v1539_v30 = vsel %vm1535_vm10, %v1506_v59, %v5107_v40  ;;  %v1408_v15 = vsel %vm1403_vm5, %v1375_v33, %v8288_v12  ;;  %v1343_v59 = vsel %vm1337_vm3, %v3720_v4, %v8290_v6  ;;  %v8299_v6 = vld [vmem:[#allocation153_spill] sm:$0xff] }
 0x2e8   : > { %v1441_v40 = vsel %vm1436_vm7, %v1408_v15, %v8289_v8  ;;  %v8294_v15 = vld [vmem:[#allocation75_spill] sm:$0xff] }
 0x2e9   : > { %v1474_v36 = vsel %vm1469_vm6, %v1441_v40, %v4841_v48  ;;  %v8291_v48 = vld [vmem:[#allocation114_spill] sm:$0xff]  ;;  %v1355_v8 = vsel %vm1337_vm3, %v3886_v44, %v8294_v15  ;;  %v8295_v40 = vld [vmem:[#allocation77_spill] sm:$0xff] }
 0x2ea   : > { %v1252_v32 = vpop.permute.xlu1 %1251  ;;  %v1250_v10 = vpop.permute.xlu0 %1249 }
 0x2ec   : > { %3545 = vmatmul.msk.f32.gmra.mxu0 %vm1610_vm11, %v1571_v49  ;;  %v1572_v49 = vsel %vm1568_vm9, %v1539_v30, %v1248_v22  ;;  %v1507_v22 = vsel %vm1502_vm8, %v1474_v36, %v4927_v2  ;;  %v5303_v30 = vpop.permute.xlu2 %1265  ;;  %v1376_v2 = vsel %vm1370_vm4, %v1343_v59, %v8291_v48  ;;  %v1344_v36 = vsel %vm1337_vm3, %v3790_v42, %v8295_v40  ;;  %v8300_v48 = vld [vmem:[#allocation166_spill] sm:$0xff]  ;;  %v8303_v40 = vld [vmem:[#allocation97_spill] sm:$0xff] }
 0x2ed   : > { %v1540_v3 = vsel %vm1535_vm10, %v1507_v22, %v5105_v39 }
 0x2ee   : > { %v1573_v21 = vsel %vm1568_vm9, %v1540_v3, %v1250_v10 }
 0x2f2   : > { %v5274_v26 = vpop.permute.xlu1 %1257  ;;  %v5276_v61 = vpop.permute.xlu0 %1255 }
 0x2f4   : > { %3546 = vmatmul.msk.f32.gmra.mxu0 %vm1610_vm11, %v1572_v49  ;;  %v8292_v49 = vld [vmem:[#allocation144_spill] sm:$0xff]  ;;  %v5338_v59 = vpop.permute.xlu2 %1271 }
 0x2f5   : > { %v1409_v39 = vsel %vm1403_vm5, %v1376_v2, %v8292_v49  ;;  %v8301_v2 = vld [vmem:[#allocation168_spill] sm:$0xff] }
 0x2f6   : > { %v1442_v50 = vsel %vm1436_vm7, %v1409_v39, %v8293_v58 }
 0x2f7   : > { %v1475_v10 = vsel %vm1469_vm6, %v1442_v50, %v4839_v53  ;;  %v8296_v53 = vld [vmem:[#allocation104_spill] sm:$0xff] }
 0x2f8   : > { %v1508_v55 = vsel %vm1502_vm8, %v1475_v10, %v4979_v28  ;;  %v1377_v28 = vsel %vm1370_vm4, %v1344_v36, %v8296_v53  ;;  %v8306_v36 = vld [vmem:[#allocation18_spill] sm:$0xff] }
 0x2f9   : > { %v1541_v4 = vsel %vm1535_vm10, %v1508_v55, %v5067_v18  ;;  %v8297_v18 = vld [vmem:[#allocation126_spill] sm:$0xff] }
 0x2fa   : > { %v5295_v46 = vpop.permute.xlu1 %1263  ;;  %v5297_v16 = vpop.permute.xlu0 %1261  ;;  %v1574_v12 = vsel %vm1568_vm9, %v1541_v4, %v1252_v32  ;;  %v1388_v3 = vsel %vm1370_vm4, %v1355_v8, %v8297_v18  ;;  %v8302_v8 = vld [vmem:[#allocation76_spill] sm:$0xff] }
 0x2fb   : > { %v1421_v44 = vsel %vm1403_vm5, %v1388_v3, %v8299_v6  ;;  %v8308_v3 = vld [vmem:[#allocation167_spill] sm:$0xff] }
 0x2fc   : > { %3547 = vmatmul.msk.f32.gmra.mxu0 %vm1610_vm11, %v1573_v21  ;;  %v8298_v21 = vld [vmem:[#allocation143_spill] sm:$0xff]  ;;  %v1454_v42 = vsel %vm1436_vm7, %v1421_v44, %v8300_v48  ;;  %v1278_v44 = vpop.permute.xlu2 %1277 }
 0x2fd   : > { %v1410_v32 = vsel %vm1403_vm5, %v1377_v28, %v8298_v21  ;;  %v1487_v58 = vsel %vm1469_vm6, %v1454_v42, %v4889_v45  ;;  %v1345_v45 = vsel %vm1337_vm3, %v3783_v38, %v8302_v8  ;;  %v8307_v28 = vld [vmem:[#allocation152_spill] sm:$0xff] }
 0x2fe   : > { %v1443_v49 = vsel %vm1436_vm7, %v1410_v32, %v8301_v2  ;;  %v1520_v10 = vsel %vm1502_vm8, %v1487_v58, %v5035_v23  ;;  %v8304_v23 = vld [vmem:[#allocation116_spill] sm:$0xff] }
 0x2ff   : > { %v1476_v39 = vsel %vm1469_vm6, %v1443_v49, %v4801_v62  ;;  %v1553_v55 = vsel %vm1535_vm10, %v1520_v10, %v5115_v0  ;;  %v8314_v10 = vld [vmem:[#allocation145_spill] sm:$0xff] }
 0x300   : > { %v1509_v50 = vsel %vm1502_vm8, %v1476_v39, %v4977_v47  ;;  %v1356_v47 = vsel %vm1337_vm3, %v3933_v60, %v8303_v40  ;;  %v8309_v39 = vld [vmem:[#allocation60_spill] sm:$0xff] }
 0x301   : > { %v1542_v4 = vsel %vm1535_vm10, %v1509_v50, %v5119_v27  ;;  %v1389_v0 = vsel %vm1370_vm4, %v1356_v47, %v8304_v23  ;;  %v8305_v27 = vld [vmem:[#allocation118_spill] sm:$0xff]  ;;  %v8311_v50 = vld [vmem:[#allocation96_spill] sm:$0xff] }
 0x302   : > { %v5318_v33 = vpop.permute.xlu1 %1269  ;;  %v5327_v22 = vpop.permute.xlu0 %1267  ;;  %v1575_v15 = vsel %vm1568_vm9, %v1542_v4, %v1254_v57  ;;  %v1378_v57 = vsel %vm1370_vm4, %v1345_v45, %v8305_v27  ;;  %v1422_v38 = vsel %vm1403_vm5, %v1389_v0, %v8307_v28  ;;  %v8315_v4 = vld [vmem:[#allocation147_spill] sm:$0xff]  ;;  %v8319_v28 = vld [vmem:[#allocation82_spill] sm:$0xff] }
 0x303   : > { %v1411_v53 = vsel %vm1403_vm5, %v1378_v57, %v8306_v36  ;;  %v1455_v21 = vsel %vm1436_vm7, %v1422_v38, %v4766_v7  ;;  %v8322_v38 = vld [vmem:[#allocation146_spill] sm:$0xff] }
 0x304   : > { %3548 = vmatmul.msk.f32.gmra.mxu0 %vm1610_vm11, %v1574_v12  ;;  %v1444_v60 = vsel %vm1436_vm7, %v1411_v53, %v8308_v3  ;;  %v1488_v32 = vsel %vm1469_vm6, %v1455_v21, %v4849_v13  ;;  %v8318_v53 = vld [vmem:[#allocation80_spill] sm:$0xff]  ;;  %v8324_v21 = vld [vmem:[#allocation85_spill] sm:$0xff] }
 0x305   : > { %v1477_v6 = vsel %vm1469_vm6, %v1444_v60, %v4853_v5  ;;  %v1521_v42 = vsel %vm1502_vm8, %v1488_v32, %v5033_v9  ;;  %v8310_v5 = vld [vmem:[#allocation7_spill] sm:$0xff]  ;;  %v8312_v9 = vld [vmem:[#allocation117_spill] sm:$0xff]  ;;  %v8323_v60 = vld [vmem:[#allocation156_spill] sm:$0xff] }
 0x306   : > { %v1510_v48 = vsel %vm1502_vm8, %v1477_v6, %v4939_v20  ;;  %v1554_v49 = vsel %vm1535_vm10, %v1521_v42, %v5186_v11  ;;  %v1346_v58 = vsel %vm1337_vm3, %v8310_v5, %v8309_v39  ;;  %v1357_v20 = vsel %vm1337_vm3, %v3924_v31, %v8311_v50  ;;  %v8313_v11 = vld [vmem:[#allocation130_spill] sm:$0xff]  ;;  %v8317_v31 = vld [vmem:[#allocation176_spill] sm:$0xff] }
 0x307   : > { %v1543_v2 = vsel %vm1535_vm10, %v1510_v48, %v5117_v52  ;;  %v1587_v13 = vsel %vm1568_vm9, %v1554_v49, %v1278_v44  ;;  %v1379_v52 = vsel %vm1370_vm4, %v1346_v58, %v8312_v9  ;;  %v8327_v58 = vld [vmem:[#allocation81_spill] sm:$0xff] }
 0x308   : > { %v1576_v7 = vsel %vm1568_vm9, %v1543_v2, %v5276_v61  ;;  %v1390_v61 = vsel %vm1370_vm4, %v1357_v20, %v8313_v11  ;;  %v8326_v2 = vld [vmem:[#allocation31_spill] sm:$0xff]  ;;  %v8329_v20 = vld [vmem:[#allocation100_spill] sm:$0xff]  ;;  %v8330_v9 = vld [vmem:[#allocation25_spill] sm:$0xff] }
 0x309   : > { %v8333_v11 = vld [vmem:[#allocation136_spill] sm:$0xff] }
 0x30a   : > { %v1276_v12 = vpop.permute.xlu1 %1275  ;;  %v5374_v18 = vpop.permute.xlu0 %1273 }
 0x30b   : > { %v1586_v62 = vsel %vm1568_vm9, %v1553_v55, %v1276_v12  ;;  %v1423_v55 = vsel %vm1403_vm5, %v1390_v61, %v8314_v10  ;;  %v1412_v12 = vsel %vm1403_vm5, %v1379_v52, %v8315_v4  ;;  %v1359_v52 = vsel %vm1337_vm3, %v8330_v9, %v8329_v20  ;;  %v8334_v10 = vld [vmem:[#allocation155_spill] sm:$0xff]  ;;  %v8335_v4 = vld [vmem:[#allocation78_spill] sm:$0xff] }
 0x30c   : > { %3549 = vmatmul.msk.f32.gmra.mxu0 %vm1610_vm11, %v1575_v15  ;;  %3560 = vmatmul.msk.f32.vlgmr.msra.gmra.mxu3 %vm1610_vm11, %v1586_v62  ;;  %v8316_v15 = vld [vmem:[#allocation63_spill] sm:$0xff]  ;;  %v1456_v8 = vsel %vm1436_vm7, %v1423_v55, %v8317_v31 }
 0x30d   : > { %v1445_v62 = vsel %vm1436_vm7, %v1412_v12, %v8316_v15  ;;  %v1489_v40 = vsel %vm1469_vm6, %v1456_v8, %v4907_v56  ;;  %v1358_v56 = vsel %vm1337_vm3, %v3920_v29, %v8318_v53  ;;  %v8336_v15 = vld [vmem:[#allocation178_spill] sm:$0xff]  ;;  %v8337_v31 = vld [vmem:[#allocation187_spill] sm:$0xff] }
 0x30e   : > { %v1478_v45 = vsel %vm1469_vm6, %v1445_v62, %v4851_v14  ;;  %v1522_v23 = vsel %vm1502_vm8, %v1489_v40, %v4987_v54  ;;  %v1347_v54 = vsel %vm1337_vm3, %v3781_v37, %v8319_v28  ;;  %v8325_v37 = vld [vmem:[#allocation169_spill] sm:$0xff] }
 0x30f   : > { %v1511_v0 = vsel %vm1502_vm8, %v1478_v45, %v4991_v24  ;;  %v1555_v57 = vsel %vm1535_vm10, %v1522_v23, %v5184_v1  ;;  %v8320_v24 = vld [vmem:[#allocation107_spill] sm:$0xff]  ;;  %v8321_v1 = vld [vmem:[#allocation129_spill] sm:$0xff] }
 0x310   : > { %v1544_v27 = vsel %vm1535_vm10, %v1511_v0, %v5079_v41  ;;  %v1380_v41 = vsel %vm1370_vm4, %v1347_v54, %v8320_v24  ;;  %v8338_v45 = vld [vmem:[#allocation189_spill] sm:$0xff]  ;;  %v8342_v54 = vld [vmem:[#allocation64_spill] sm:$0xff] }
 0x311   : > { %v1577_v36 = vsel %vm1568_vm9, %v1544_v27, %v5274_v26  ;;  %v1391_v26 = vsel %vm1370_vm4, %v1358_v56, %v8321_v1  ;;  %v1413_v3 = vsel %vm1403_vm5, %v1380_v41, %v8322_v38  ;;  %v8339_v23 = vld [vmem:[#allocation17_spill] sm:$0xff]  ;;  %v8340_v27 = vld [vmem:[#allocation43_spill] sm:$0xff] }
 0x312   : > { %v1280_v47 = vpop.permute.xlu0 %1279  ;;  %v1424_v29 = vsel %vm1403_vm5, %v1391_v26, %v8323_v60  ;;  %v1446_v6 = vsel %vm1436_vm7, %v1413_v3, %v8325_v37  ;;  %v1282_v42 = vpop.permute.xlu1 %1281  ;;  %v8343_v24 = vld [vmem:[#allocation9_spill] sm:$0xff]  ;;  %v8344_v1 = vld [vmem:[#allocation99_spill] sm:$0xff]  ;;  %v8345_v26 = vld [vmem:[#allocation32_spill] sm:$0xff] }
 0x313   : > { %v1588_v14 = vsel %vm1568_vm9, %v1555_v57, %v1280_v47  ;;  %v1457_v32 = vsel %vm1436_vm7, %v1424_v29, %v8324_v21  ;;  %v1479_v44 = vsel %vm1469_vm6, %v1446_v6, %v4813_v63  ;;  %v1284_v47 = vpop.permute.xlu2 %1283  ;;  %v1349_v41 = vsel %vm1337_vm3, %v8343_v24, %v8342_v54  ;;  %v8346_v3 = vld [vmem:[#allocation120_spill] sm:$0xff]  ;;  %v8347_v60 = vld [vmem:[#allocation133_spill] sm:$0xff]  ;;  %v8350_v6 = vld [vmem:[#allocation162_spill] sm:$0xff] }
 0x314   : > { %3550 = vmatmul.msk.f32.gmra.mxu0 %vm1610_vm11, %v1576_v7  ;;  %3561 = vmatmul.msk.f32.gmra.mxu3 %vm1610_vm11, %v1587_v13  ;;  %v1490_v48 = vsel %vm1469_vm6, %v1457_v32, %v4905_v35  ;;  %v1512_v49 = vsel %vm1502_vm8, %v1479_v44, %v8326_v2  ;;  %v8328_v35 = vld [vmem:[#allocation12_spill] sm:$0xff]  ;;  %v1360_v38 = vsel %vm1337_vm3, %v8345_v26, %v8344_v1 }
 0x315   : > { %v1523_v7 = vsel %vm1502_vm8, %v1490_v48, %v5047_v25  ;;  %v1545_v39 = vsel %vm1535_vm10, %v1512_v49, %v5143_v34  ;;  %v1348_v50 = vsel %vm1337_vm3, %v8328_v35, %v8327_v58  ;;  %v8331_v25 = vld [vmem:[#allocation119_spill] sm:$0xff]  ;;  %v8332_v34 = vld [vmem:[#allocation121_spill] sm:$0xff]  ;;  %v8348_v29 = vld [vmem:[#allocation44_spill] sm:$0xff] }
 0x316   : > { %v1556_v13 = vsel %vm1535_vm10, %v1523_v7, %v5139_v43  ;;  %v1578_v5 = vsel %vm1568_vm9, %v1545_v39, %v5270_v17  ;;  %v1392_v43 = vsel %vm1370_vm4, %v1359_v52, %v8331_v25  ;;  %v1381_v17 = vsel %vm1370_vm4, %v1348_v50, %v8332_v34  ;;  %v8349_v32 = vld [vmem:[#allocation148_spill] sm:$0xff]  ;;  %v8351_v48 = vld [vmem:[#allocation177_spill] sm:$0xff]  ;;  %v8355_v58 = vld [vmem:[#allocation38_spill] sm:$0xff] }
 0x317   : > { %v1589_v63 = vsel %vm1568_vm9, %v1556_v13, %v1282_v42  ;;  %v1414_v61 = vsel %vm1403_vm5, %v1381_v17, %v8333_v11  ;;  %v1425_v55 = vsel %vm1403_vm5, %v1392_v43, %v8334_v10  ;;  %v8352_v2 = vld [vmem:[#allocation188_spill] sm:$0xff]  ;;  %v8353_v7 = vld [vmem:[#allocation197_spill] sm:$0xff]  ;;  %v8357_v43 = vld [vmem:[#allocation86_spill] sm:$0xff] }
 0x318   : > { %v1447_v12 = vsel %vm1436_vm7, %v1414_v61, %v8335_v4  ;;  %v1458_v62 = vsel %vm1436_vm7, %v1425_v55, %v8336_v15  ;;  %v8356_v50 = vld [vmem:[#allocation61_spill] sm:$0xff]  ;;  %v8359_v11 = vld [vmem:[#allocation88_spill] sm:$0xff]  ;;  %v8360_v61 = vld [vmem:[#allocation19_spill] sm:$0xff] }
 0x319   : > { %v1491_v8 = vsel %vm1469_vm6, %v1458_v62, %v8337_v31  ;;  %v1480_v40 = vsel %vm1469_vm6, %v1447_v12, %v8338_v45  ;;  %v8358_v34 = vld [vmem:[#allocation29_spill] sm:$0xff]  ;;  %v1350_v10 = vsel %vm1337_vm3, %v8360_v61, %v8359_v11  ;;  %v8361_v55 = vld [vmem:[#allocation110_spill] sm:$0xff]  ;;  %v8362_v4 = vld [vmem:[#allocation132_spill] sm:$0xff] }
 0x31a   : > { %v1513_v0 = vsel %vm1502_vm8, %v1480_v40, %v8339_v23  ;;  %v1524_v57 = vsel %vm1502_vm8, %v1491_v8, %v8340_v27  ;;  %v1286_v39 = vpop.permute.xlu0 %1285  ;;  %v1361_v17 = vsel %vm1337_vm3, %v8358_v34, %v8357_v43  ;;  %v8363_v12 = vld [vmem:[#allocation33_spill] sm:$0xff]  ;;  %v8365_v8 = vld [vmem:[#allocation83_spill] sm:$0xff]  ;;  %v8368_v27 = vld [vmem:[#allocation196_spill] sm:$0xff] }
 0x31b   : > { %v1557_v53 = vsel %vm1535_vm10, %v1524_v57, %v5207_v51  ;;  %v1382_v51 = vsel %vm1370_vm4, %v1349_v41, %v8346_v3  ;;  %v8364_v62 = vld [vmem:[#allocation157_spill] sm:$0xff]  ;;  %v8366_v40 = vld [vmem:[#allocation171_spill] sm:$0xff]  ;;  %v8371_v54 = vld [vmem:[#allocation72_spill] sm:$0xff] }
 0x31c   : > { %3551 = vmatmul.msk.f32.gmra.mxu0 %vm1610_vm11, %v1577_v36  ;;  %3562 = vmatmul.msk.f32.gmra.mxu3 %vm1610_vm11, %v1588_v14  ;;  %v8341_v36 = vld [vmem:[#allocation68_spill] sm:$0xff]  ;;  %v1590_v28 = vsel %vm1568_vm9, %v1557_v53, %v1284_v47  ;;  %v1415_v37 = vsel %vm1403_vm5, %v1382_v51, %v8349_v32  ;;  %v8367_v23 = vld [vmem:[#allocation185_spill] sm:$0xff]  ;;  %v8372_v41 = vld [vmem:[#allocation79_spill] sm:$0xff] }
 0x31d   : > { %v1546_v14 = vsel %vm1535_vm10, %v1513_v0, %v8341_v36  ;;  %v1448_v44 = vsel %vm1436_vm7, %v1415_v37, %v8350_v6  ;;  %v1288_v36 = vpop.permute.xlu1 %1287  ;;  %v8373_v3 = vld [vmem:[#allocation87_spill] sm:$0xff]  ;;  %v8374_v51 = vld [vmem:[#allocation16_spill] sm:$0xff]  ;;  %v8377_v32 = vld [vmem:[#allocation122_spill] sm:$0xff] }
 0x31e   : > { %v1579_v56 = vsel %vm1568_vm9, %v1546_v14, %v5297_v16  ;;  %v1393_v16 = vsel %vm1370_vm4, %v1360_v38, %v8347_v60  ;;  %v1481_v49 = vsel %vm1469_vm6, %v1448_v44, %v8352_v2  ;;  %v8369_v14 = vld [vmem:[#allocation26_spill] sm:$0xff]  ;;  %v1351_v60 = vsel %vm1337_vm3, %v8374_v51, %v8373_v3  ;;  %v8378_v6 = vld [vmem:[#allocation124_spill] sm:$0xff]  ;;  %v8379_v44 = vld [vmem:[#allocation139_spill] sm:$0xff] }
 0x31f   : > { %v1426_v21 = vsel %vm1403_vm5, %v1393_v16, %v8348_v29  ;;  %v1514_v35 = vsel %vm1502_vm8, %v1481_v49, %v8355_v58  ;;  %v8375_v16 = vld [vmem:[#allocation103_spill] sm:$0xff]  ;;  %v8381_v49 = vld [vmem:[#allocation170_spill] sm:$0xff]  ;;  %v8384_v58 = vld [vmem:[#allocation192_spill] sm:$0xff] }
 0x320   : > { %v1459_v42 = vsel %vm1436_vm7, %v1426_v21, %v8351_v48  ;;  %v1547_v20 = vsel %vm1535_vm10, %v1514_v35, %v8356_v50  ;;  %v8376_v29 = vld [vmem:[#allocation39_spill] sm:$0xff]  ;;  %v1290_v50 = vpop.permute.xlu2 %1289  ;;  %v8387_v43 = vld [vmem:[#allocation73_spill] sm:$0xff]  ;;  %v8404_v51 = vld [vmem:[#allocation66_spill] sm:$0xff] }
 0x321   : > { %v1492_v13 = vsel %vm1469_vm6, %v1459_v42, %v8353_v7  ;;  %v1580_v52 = vsel %vm1568_vm9, %v1547_v20, %v5295_v46  ;;  %v1394_v46 = vsel %vm1370_vm4, %v1361_v17, %v8362_v4  ;;  %v1362_v21 = vsel %vm1337_vm3, %v8376_v29, %v8375_v16  ;;  %v8380_v42 = vld [vmem:[#allocation52_spill] sm:$0xff] }
 0x322   : > { %v1427_v31 = vsel %vm1403_vm5, %v1394_v46, %v8364_v62  ;;  %v1395_v37 = vsel %vm1370_vm4, %v1362_v21, %v8377_v32  ;;  %v8385_v20 = vld [vmem:[#allocation20_spill] sm:$0xff]  ;;  %v8391_v46 = vld [vmem:[#allocation102_spill] sm:$0xff]  ;;  %v8393_v62 = vld [vmem:[#allocation123_spill] sm:$0xff] }
 0x323   : > { %v1460_v45 = vsel %vm1436_vm7, %v1427_v31, %v8365_v8  ;;  %v1428_v2 = vsel %vm1403_vm5, %v1395_v37, %v8380_v42  ;;  %v8388_v17 = vld [vmem:[#allocation4_spill] sm:$0xff]  ;;  %v8394_v8 = vld [vmem:[#allocation134_spill] sm:$0xff]  ;;  %v8405_v21 = vld [vmem:[#allocation91_spill] sm:$0xff] }
 0x324   : > { %3552 = vmatmul.msk.f32.gmra.mxu0 %vm1610_vm11, %v1578_v5  ;;  %3563 = vmatmul.msk.f32.gmra.mxu3 %vm1610_vm11, %v1589_v63  ;;  %v8354_v5 = vld [vmem:[#allocation24_spill] sm:$0xff]  ;;  %v1493_v57 = vsel %vm1469_vm6, %v1460_v45, %v8368_v27  ;;  %v8395_v45 = vld [vmem:[#allocation149_spill] sm:$0xff]  ;;  %v8406_v32 = vld [vmem:[#allocation34_spill] sm:$0xff] }
 0x325   : > { %v1525_v63 = vsel %vm1502_vm8, %v1492_v13, %v8354_v5  ;;  %v8382_v13 = vld [vmem:[#allocation180_spill] sm:$0xff]  ;;  %v8383_v5 = vld [vmem:[#allocation190_spill] sm:$0xff]  ;;  %v1364_v37 = vsel %vm1337_vm3, %v8406_v32, %v8405_v21  ;;  %v8436_v32 = vld [vmem:[#allocation89_spill] sm:$0xff] }
 0x326   : > { %v1558_v9 = vsel %vm1535_vm10, %v1525_v63, %v5205_v19  ;;  %v1383_v19 = vsel %vm1370_vm4, %v1350_v10, %v8361_v55  ;;  %v8389_v55 = vld [vmem:[#allocation69_spill] sm:$0xff] }
 0x327   : > { %v1591_v25 = vsel %vm1568_vm9, %v1558_v9, %v1286_v39  ;;  %v1416_v15 = vsel %vm1403_vm5, %v1383_v19, %v8363_v12  ;;  %v1461_v39 = vsel %vm1436_vm7, %v1428_v2, %v8382_v13  ;;  %v8390_v19 = vld [vmem:[#allocation14_spill] sm:$0xff]  ;;  %v8392_v12 = vld [vmem:[#allocation36_spill] sm:$0xff] }
 0x328   : > { %v1449_v47 = vsel %vm1436_vm7, %v1416_v15, %v8366_v40  ;;  %v1494_v63 = vsel %vm1469_vm6, %v1461_v39, %v8383_v5  ;;  %v1352_v4 = vsel %vm1337_vm3, %v8390_v19, %v8389_v55  ;;  %v1363_v15 = vsel %vm1337_vm3, %v8392_v12, %v8391_v46  ;;  %v8410_v2 = vld [vmem:[#allocation6_spill] sm:$0xff]  ;;  %v8412_v13 = vld [vmem:[#allocation160_spill] sm:$0xff] }
 0x329   : > { %v1482_v0 = vsel %vm1469_vm6, %v1449_v47, %v8367_v23  ;;  %v1385_v31 = vsel %vm1370_vm4, %v1352_v4, %v8393_v62  ;;  %v8396_v47 = vld [vmem:[#allocation151_spill] sm:$0xff]  ;;  %v8413_v5 = vld [vmem:[#allocation172_spill] sm:$0xff]  ;;  %v8420_v55 = vld [vmem:[#allocation90_spill] sm:$0xff]  ;;  %v7805_v12 = vmov 0.0  }
 0x32a   : > { %v1515_v53 = vsel %vm1502_vm8, %v1482_v0, %v8369_v14  ;;  %v1418_v23 = vsel %vm1403_vm5, %v1385_v31, %v8396_v47  ;;  %v8397_v0 = vld [vmem:[#allocation74_spill] sm:$0xff]  ;;  %v8399_v14 = vld [vmem:[#allocation191_spill] sm:$0xff]  ;;  %v8422_v62 = vld [vmem:[#allocation92_spill] sm:$0xff] }
 0x32b   : > { %v1548_v1 = vsel %vm1535_vm10, %v1515_v53, %v8372_v41  ;;  %v1451_v27 = vsel %vm1436_vm7, %v1418_v23, %v8397_v0  ;;  %v8423_v31 = vld [vmem:[#allocation23_spill] sm:$0xff]  ;;  %v8426_v47 = vld [vmem:[#allocation125_spill] sm:$0xff] }
 0x32c   : > { %3553 = vmatmul.msk.f32.gmra.mxu0 %vm1610_vm11, %v1579_v56  ;;  %3564 = vmatmul.msk.f32.gmra.mxu3 %vm1610_vm11, %v1590_v28  ;;  %v8370_v56 = vld [vmem:[#allocation46_spill] sm:$0xff]  ;;  %v1581_v26 = vsel %vm1568_vm9, %v1548_v1, %v5303_v30  ;;  %v1384_v30 = vsel %vm1370_vm4, %v1351_v60, %v8378_v6  ;;  %v1484_v53 = vsel %vm1469_vm6, %v1451_v27, %v8399_v14  ;;  %v8402_v1 = vld [vmem:[#allocation37_spill] sm:$0xff]  ;;  %v8427_v23 = vld [vmem:[#allocation127_spill] sm:$0xff] }
 0x32d   : > { %v1526_v28 = vsel %vm1502_vm8, %v1493_v57, %v8370_v56  ;;  %v1417_v48 = vsel %vm1403_vm5, %v1384_v30, %v8379_v44  ;;  %v8398_v57 = vld [vmem:[#allocation179_spill] sm:$0xff]  ;;  %v8400_v56 = vld [vmem:[#allocation198_spill] sm:$0xff]  ;;  %v8407_v6 = vld [vmem:[#allocation93_spill] sm:$0xff] }
 0x32e   : > { %v1559_v24 = vsel %vm1535_vm10, %v1526_v28, %v8371_v54  ;;  %v1450_v7 = vsel %vm1436_vm7, %v1417_v48, %v8381_v49  ;;  %v1292_v54 = vpop.permute.xlu0 %1291  ;;  %v8408_v30 = vld [vmem:[#allocation15_spill] sm:$0xff]  ;;  %v8409_v48 = vld [vmem:[#allocation113_spill] sm:$0xff]  ;;  %v8411_v49 = vld [vmem:[#allocation150_spill] sm:$0xff] }
 0x32f   : > { %v1592_v38 = vsel %vm1568_vm9, %v1559_v24, %v1288_v36  ;;  %v1483_v35 = vsel %vm1469_vm6, %v1450_v7, %v8384_v58  ;;  %v8401_v24 = vld [vmem:[#allocation28_spill] sm:$0xff]  ;;  %v1353_v44 = vsel %vm1337_vm3, %v8408_v30, %v8407_v6  ;;  %v8414_v58 = vld [vmem:[#allocation174_spill] sm:$0xff]  ;;  %v8437_v6 = vld [vmem:[#allocation137_spill] sm:$0xff] }
 0x330   : > { %v1516_v9 = vsel %vm1502_vm8, %v1483_v35, %v8385_v20  ;;  %v1386_v42 = vsel %vm1370_vm4, %v1353_v44, %v8409_v48  ;;  %v8428_v27 = vld [vmem:[#allocation142_spill] sm:$0xff] }
 0x331   : > { %v1549_v34 = vsel %vm1535_vm10, %v1516_v9, %v8387_v43  ;;  %v1419_v7 = vsel %vm1403_vm5, %v1386_v42, %v8411_v49  ;;  %v8416_v9 = vld [vmem:[#allocation10_spill] sm:$0xff] }
 0x332   : > { %v1582_v61 = vsel %vm1568_vm9, %v1549_v34, %v5327_v22  ;;  %v1396_v22 = vsel %vm1370_vm4, %v1363_v15, %v8394_v8  ;;  %v1452_v35 = vsel %vm1436_vm7, %v1419_v7, %v8414_v58  ;;  %v8417_v43 = vld [vmem:[#allocation30_spill] sm:$0xff]  ;;  %v5676_v15 = vrot.slane %v7805_v12, 1  ;;  %v8440_v7 = vld [vmem:[#allocation135_spill] sm:$0xff]  ;;  %v8442_v58 = vld [vmem:[#allocation181_spill] sm:$0xff] }
 0x333   : > { %v1429_v40 = vsel %vm1403_vm5, %v1396_v22, %v8395_v45  ;;  %v1354_v8 = vsel %vm1337_vm3, %v8423_v31, %v8422_v62  ;;  %v8424_v22 = vld [vmem:[#allocation106_spill] sm:$0xff]  ;;  %v8425_v45 = vld [vmem:[#allocation35_spill] sm:$0xff] }
 0x334   : > { %3554 = vmatmul.msk.f32.gmra.mxu0 %vm1610_vm11, %v1580_v52  ;;  %3565 = vmatmul.msk.f32.gmra.mxu3 %vm1610_vm11, %v1591_v25  ;;  %v8386_v52 = vld [vmem:[#allocation51_spill] sm:$0xff]  ;;  %v1462_v36 = vsel %vm1436_vm7, %v1429_v40, %v8398_v57  ;;  %8421 = vst [vmem:[#allocation71_spill] sm:$0xff] %v5676_v15  ;;  %v1365_v40 = vsel %vm1337_vm3, %v8425_v45, %v8424_v22  ;;  %v8450_v22 = vld [vmem:[#allocation161_spill] sm:$0xff] }
 0x335   : > { %v1527_v25 = vsel %vm1502_vm8, %v1494_v63, %v8386_v52  ;;  %v1495_v28 = vsel %vm1469_vm6, %v1462_v36, %v8400_v56  ;;  %v1387_v0 = vsel %vm1370_vm4, %v1354_v8, %v8427_v23  ;;  %2124 = vrot.lane.b32.xlu1 %v5676_v15, %s3657_s25  ;;  %v8429_v36 = vld [vmem:[#allocation159_spill] sm:$0xff]  ;;  %v8430_v56 = vld [vmem:[#allocation173_spill] sm:$0xff] }
 0x336   : > { %v1560_v11 = vsel %vm1535_vm10, %v1527_v25, %v8388_v17  ;;  %v1528_v41 = vsel %vm1502_vm8, %v1495_v28, %v8401_v24  ;;  %v1294_v25 = vpop.permute.xlu1 %1293  ;;  %v8418_v17 = vld [vmem:[#allocation54_spill] sm:$0xff]  ;;  %v1420_v57 = vsel %vm1403_vm5, %v1387_v0, %v8428_v27 }
 0x337   : > { %v1593_v10 = vsel %vm1568_vm9, %v1560_v11, %v1290_v50  ;;  %v1561_v60 = vsel %vm1535_vm10, %v1528_v41, %v8404_v51  ;;  %v8415_v50 = vld [vmem:[#allocation186_spill] sm:$0xff]  ;;  %v1453_v28 = vsel %vm1436_vm7, %v1420_v57, %v8430_v56  ;;  %v1296_v51 = vpop.permute.xlu2 %1295 }
 0x338   : > { %v1594_v29 = vsel %vm1568_vm9, %v1561_v60, %v1292_v54  ;;  %v1485_v20 = vsel %vm1469_vm6, %v1452_v35, %v8415_v50  ;;  %v8431_v54 = vld [vmem:[#allocation182_spill] sm:$0xff]  ;;  %v8434_v60 = vld [vmem:[#allocation21_spill] sm:$0xff] }
 0x339   : > { %v1518_v34 = vsel %vm1502_vm8, %v1485_v20, %v8417_v43  ;;  %v8443_v35 = vld [vmem:[#allocation13_spill] sm:$0xff]  ;;  %v1298_v20 = vpop.permute.xlu0 %1297  ;;  %v8445_v43 = vld [vmem:[#allocation98_spill] sm:$0xff] }
 0x33a   : > { %v1551_v19 = vsel %vm1535_vm10, %v1518_v34, %v8420_v55  ;;  %v8446_v55 = vld [vmem:[#allocation95_spill] sm:$0xff]  ;;  %v8453_v0 = vld [vmem:[#allocation22_spill] sm:$0xff] }
 0x33b   : > { %v1584_v4 = vsel %vm1568_vm9, %v1551_v19, %v5338_v59  ;;  %v1398_v59 = vsel %vm1370_vm4, %v1365_v40, %v8426_v47  ;;  %v8447_v19 = vld [vmem:[#allocation41_spill] sm:$0xff]  ;;  %v8451_v40 = vld [vmem:[#allocation175_spill] sm:$0xff] }
 0x33c   : > { %3555 = vmatmul.msk.f32.gmra.mxu0 %vm1610_vm11, %v1581_v26  ;;  %3566 = vmatmul.msk.f32.gmra.mxu3 %vm1610_vm11, %v1592_v38  ;;  %v1517_v26 = vsel %vm1502_vm8, %v1484_v53, %v8402_v1  ;;  %v8403_v38 = vld [vmem:[#allocation62_spill] sm:$0xff]  ;;  %v1431_v14 = vsel %vm1403_vm5, %v1398_v59, %v8429_v36  ;;  %v8432_v1 = vld [vmem:[#allocation193_spill] sm:$0xff] }
 0x33d   : > { %v1550_v3 = vsel %vm1535_vm10, %v1517_v26, %v8403_v38  ;;  %v5699_v53 = vld [vmem:[%s7676_s2] ss:$0 sm:$0xff]  ;;  %v1464_v24 = vsel %vm1436_vm7, %v1431_v14, %v8431_v54  ;;  %v8454_v54 = vld [vmem:[#allocation59_spill] sm:$0xff] }
 0x33e   : > { %v1583_v16 = vsel %vm1568_vm9, %v1550_v3, %v5318_v33  ;;  %v1397_v33 = vsel %vm1370_vm4, %v1364_v37, %v8410_v2  ;;  %v1497_v26 = vsel %vm1469_vm6, %v1464_v24, %v8432_v1  ;;  %v8433_v38 = vld [vmem:[#allocation194_spill] sm:$0xff]  ;;  %v8438_v2 = vld [vmem:[#allocation105_spill] sm:$0xff]  ;;  %v1300_v57 = vpop.permute.xlu1 %1299 }
 0x33f   : > { %v1430_v39 = vsel %vm1403_vm5, %v1397_v33, %v8412_v13  ;;  %v1486_v3 = vsel %vm1469_vm6, %v1453_v28, %v8433_v38  ;;  %v8439_v33 = vld [vmem:[#allocation42_spill] sm:$0xff] }
 0x340   : > { %v1463_v63 = vsel %vm1436_vm7, %v1430_v39, %v8413_v5  ;;  %v1728_v41 = vpop.f32.mrf.mxu0  ;;  %v1366_v49 = vsel %vm1337_vm3, %v8439_v33, %v8438_v2  ;;  %v8441_v39 = vld [vmem:[#allocation45_spill] sm:$0xff]  ;;  %v8455_v1 = vld [vmem:[#allocation94_spill] sm:$0xff]  ;;  %v1302_v33 = vpop.permute.xlu2 %1301 }
 0x341   : > { %v1496_v52 = vsel %vm1469_vm6, %v1463_v63, %v8416_v9  ;;  %v1729_v44 = vadd.f32 %v5699_v53, %v1728_v41  ;;  %v1399_v13 = vsel %vm1370_vm4, %v1366_v49, %v8440_v7  ;;  %v8444_v9 = vld [vmem:[#allocation47_spill] sm:$0xff] }
 0x342   : > { %v1529_v11 = vsel %vm1502_vm8, %v1496_v52, %v8418_v17  ;;  %v1432_v5 = vsel %vm1403_vm5, %v1399_v13, %v8441_v39  ;;  %v8462_v7 = vld [vmem:[#allocation55_spill] sm:$0xff] }
 0x343   : > { %v1824_v63 = vmax.f32 %v1729_v44, 0.0  ;;  %v8460_v44 = vld [vmem:[#allocation184_spill] sm:$0xff] }
 0x344   : > { %3556 = vmatmul.msk.f32.gmra.mxu0 %vm1610_vm11, %v1582_v61  ;;  %3567 = vmatmul.msk.f32.gmra.mxu3 %vm1610_vm11, %v1593_v10  ;;  %v8419_v61 = vld [vmem:[#allocation84_spill] sm:$0xff] }
 0x345   : > { %v1562_v10 = vsel %vm1535_vm10, %v1529_v11, %v8419_v61  ;;  %v1889_v17 = vrot.slane %v1824_v63, 7  ;;  %v8463_v63 = vld [vmem:[#allocation199_spill] sm:$0xff] }
 0x346   : > { %v1595_v46 = vsel %vm1568_vm9, %v1562_v10, %v1294_v25 }
 0x347   : > { %v5747_v31 = vsel %vm1888_vm12, 0.0, %v1889_v17 }
 0x348   : > { %8449 = vst [vmem:[#allocation5_spill] sm:$0xff] %v5747_v31  ;;  %v2049_v36 = vrot.slane %v5747_v31, 1 }
 0x34c   : > { %3557 = vmatmul.msk.f32.gmra.mxu0 %vm1610_vm11, %v1583_v16  ;;  %3568 = vmatmul.msk.f32.gmra.mxu3 %vm1610_vm11, %v1594_v29  ;;  %v1519_v16 = vsel %vm1502_vm8, %v1486_v3, %v8434_v60  ;;  %v8435_v29 = vld [vmem:[#allocation50_spill] sm:$0xff]  ;;  %v8456_v60 = vld [vmem:[#allocation109_spill] sm:$0xff] }
 0x34d   : > { %v1530_v21 = vsel %vm1502_vm8, %v1497_v26, %v8435_v29  ;;  %v1552_v37 = vsel %vm1535_vm10, %v1519_v16, %v8436_v32  ;;  %v8457_v16 = vld [vmem:[#allocation49_spill] sm:$0xff] }
 0x34e   : > { %v1563_v30 = vsel %vm1535_vm10, %v1530_v21, %v8437_v6  ;;  %v1585_v48 = vsel %vm1568_vm9, %v1552_v37, %v5374_v18  ;;  %v1465_v18 = vsel %vm1436_vm7, %v1432_v5, %v8442_v58  ;;  %v1368_v29 = vsel %vm1337_vm3, %v8457_v16, %v8456_v60  ;;  %v8458_v21 = vld [vmem:[#allocation128_spill] sm:$0xff]  ;;  %v8459_v6 = vld [vmem:[#allocation58_spill] sm:$0xff] }
 0x34f   : > { %v1596_v42 = vsel %vm1568_vm9, %v1563_v30, %v1296_v51  ;;  %v1498_v50 = vsel %vm1469_vm6, %v1465_v18, %v8443_v35  ;;  %v1401_v32 = vsel %vm1370_vm4, %v1368_v29, %v8458_v21 }
 0x350   : > { %v1531_v52 = vsel %vm1502_vm8, %v1498_v50, %v8444_v9  ;;  %v1434_v30 = vsel %vm1403_vm5, %v1401_v32, %v8459_v6  ;;  %v8464_v50 = vld [vmem:[#allocation108_spill] sm:$0xff] }
 0x351   : > { %v1564_v34 = vsel %vm1535_vm10, %v1531_v52, %v8445_v43  ;;  %v8466_v52 = vld [vmem:[#allocation138_spill] sm:$0xff] }
 0x352   : > { %v1597_v61 = vsel %vm1568_vm9, %v1564_v34, %v1298_v20  ;;  %v8465_v20 = vld [vmem:[#allocation48_spill] sm:$0xff] }
 0x353   : > { %v1369_v9 = vsel %vm1337_vm3, %v8465_v20, %v8464_v50 }
 0x354   : > { %3558 = vmatmul.msk.f32.gmra.mxu0 %vm1610_vm11, %v1584_v4  ;;  %3569 = vmatmul.msk.f32.gmra.mxu3 %vm1610_vm11, %v1595_v46  ;;  %v1367_v4 = vsel %vm1337_vm3, %v8447_v19, %v8446_v55  ;;  %v8448_v46 = vld [vmem:[#allocation8_spill] sm:$0xff] }
 0x355   : > { %v1400_v62 = vsel %vm1370_vm4, %v1367_v4, %v8448_v46  ;;  %v8471_v4 = vld [vmem:[#allocation27_spill] sm:$0xff] }
 0x356   : > { %v1433_v45 = vsel %vm1403_vm5, %v1400_v62, %v8450_v22  ;;  %v1304_v62 = vpop.permute.xlu0 %1303 }
 0x357   : > { %v1466_v47 = vsel %vm1436_vm7, %v1433_v45, %v8451_v40 }
 0x358   : > { %v1499_v27 = vsel %vm1469_vm6, %v1466_v47, %v8453_v0  ;;  %v8472_v47 = vld [vmem:[#allocation40_spill] sm:$0xff] }
 0x359   : > { %v1532_v24 = vsel %vm1502_vm8, %v1499_v27, %v8454_v54 }
 0x35a   : > { %v1565_v26 = vsel %vm1535_vm10, %v1532_v24, %v8455_v1 }
 0x35b   : > { %v1598_v51 = vsel %vm1568_vm9, %v1565_v26, %v1300_v57  ;;  %v8473_v57 = vld [vmem:[#allocation164_spill] sm:$0xff] }
 0x35c   : > { %3559 = vmatmul.msk.f32.gmra.mxu0 %vm1610_vm11, %v1585_v48  ;;  %3570 = vmatmul.msk.f32.gmra.mxu3 %vm1610_vm11, %v1596_v42  ;;  %v1467_v48 = vsel %vm1436_vm7, %v1434_v30, %v8460_v44  ;;  %v8461_v42 = vld [vmem:[#allocation195_spill] sm:$0xff] }
 0x35d   : > { %v1500_v2 = vsel %vm1469_vm6, %v1467_v48, %v8461_v42 }
 0x35e   : > { %v1533_v13 = vsel %vm1502_vm8, %v1500_v2, %v8462_v7 }
 0x35f   : > { %v1566_v58 = vsel %vm1535_vm10, %v1533_v13, %v8463_v63 }
 0x360   : > { %v1599_v35 = vsel %vm1568_vm9, %v1566_v58, %v1302_v33 }
 0x361   : > { %v1731_v25 = vpop.f32.mrf.mxu0 }
 0x362   : > { %v1732_v11 = vadd.f32 %v5699_v53, %v1731_v25  ;;  %v1402_v25 = vsel %vm1370_vm4, %v1369_v9, %v8466_v52 }
 0x364   : > { %v1825_v10 = vmax.f32 %v1732_v11, 0.0  ;;  %3571 = vmatmul.msk.f32.gmra.mxu3 %vm1610_vm11, %v1597_v61  ;;  %v8469_v61 = vld [vmem:[#allocation183_spill] sm:$0xff] }
 0x366   : > { %v1890_v8 = vrot.slane %v1825_v10, 7 }
 0x368   : > { %v5754_v59 = vsel %vm1888_vm12, %v1889_v17, %v1890_v8  ;;  %v5757_v23 = vsel %vm1888_vm12, %v1890_v8, 0.0  ;;  %v8468_v17 = vld [vmem:[#allocation154_spill] sm:$0xff] }
 0x369   : > { %8452 = vst [vmem:[#allocation112_spill] sm:$0xff] %v5754_v59  ;;  %v2052_v14 = vrot.slane %v5757_v23, 1  ;;  %v1734_v56 = vpop.f32.mrf.mxu0  ;;  %v2050_v28 = vrot.slane %v5754_v59, 1  ;;  %v1435_v11 = vsel %vm1403_vm5, %v1402_v25, %v8468_v17 }
 0x36a   : > { %v1735_v41 = vadd.f32 %v5699_v53, %v1734_v56  ;;  %v1468_v10 = vsel %vm1436_vm7, %v1435_v11, %v8469_v61 }
 0x36b   : > { %v5770_v38 = vsel %vm381_vm0, %v2050_v28, %v2052_v14  ;;  %v5773_v3 = vsel %vm381_vm0, %v2049_v36, %v2050_v28  ;;  %v1501_v46 = vsel %vm1469_vm6, %v1468_v10, %v8471_v4 }
 0x36c   : > { %2128 = vrot.lane.b32.xlu0 %v5770_v38, %s3657_s25  ;;  %2126 = vrot.lane.b32.xlu2 %v5773_v3, %s3657_s25  ;;  %v1826_v37 = vmax.f32 %v1735_v41, 0.0  ;;  %v1534_v0 = vsel %vm1502_vm8, %v1501_v46, %v8472_v47 }
 0x36d   : > { %3572 = vmatmul.msk.f32.gmra.mxu3 %vm1610_vm11, %v1598_v51  ;;  %v1567_v36 = vsel %vm1535_vm10, %v1534_v0, %v8473_v57 }
 0x36e   : > { %v1892_v39 = vrot.slane %v1826_v37, 7  ;;  %v1600_v28 = vsel %vm1568_vm9, %v1567_v36, %v1304_v62 }
 0x370   : > { %v5805_v43 = vsel %vm1888_vm12, 0.0, %v1892_v39 }
 0x371   : > { %v1737_v49 = vpop.f32.mrf.mxu0  ;;  %8467 = vst [vmem:[#allocation131_spill] sm:$0xff] %v5805_v43  ;;  %v2054_v45 = vrot.slane %v5805_v43, 1 }
 0x372   : > { %v1738_v5 = vadd.f32 %v5699_v53, %v1737_v49 }
 0x374   : > { %v1827_v18 = vmax.f32 %v1738_v5, 0.0 }
 0x375   : > { %3573 = vmatmul.msk.f32.gmra.mxu3 %vm1610_vm11, %v1599_v35 }
 0x376   : > { %v1893_v34 = vrot.slane %v1827_v18, 7 }
 0x378   : > { %v5812_v55 = vsel %vm1888_vm12, %v1892_v39, %v1893_v34  ;;  %v5815_v19 = vsel %vm1888_vm12, %v1893_v34, 0.0 }
 0x379   : > { %8470 = vst [vmem:[#allocation163_spill] sm:$0xff] %v5812_v55  ;;  %v2057_v8 = vrot.slane %v5815_v19, 1  ;;  %v1740_v22 = vpop.f32.mrf.mxu0  ;;  %v2055_v40 = vrot.slane %v5812_v55, 1 }
 0x37a   : > { %v1741_v27 = vadd.f32 %v5699_v53, %v1740_v22 }
 0x37b   : > { %v5828_v14 = vsel %vm381_vm0, %v2054_v45, %v2055_v40  ;;  %v5831_v56 = vsel %vm381_vm0, %v2055_v40, %v2057_v8 }
 0x37c   : > { %2130 = vrot.lane.b32.xlu1 %v5828_v14, %s3657_s25  ;;  %2132 = vrot.lane.b32.xlu2 %v5831_v56, %s3657_s25  ;;  %v1828_v54 = vmax.f32 %v1741_v27, 0.0 }
 0x37d   : > { %3574 = vmatmul.msk.f32.gmra.mxu3 %vm1610_vm11, %v1600_v28 }
 0x37e   : > { %v1895_v41 = vrot.slane %v1828_v54, 7 }
 0x380   : > { %v5841_v51 = vsel %vm1888_vm12, 0.0, %v1895_v41 }
 0x381   : > { %v1743_v24 = vpop.f32.mrf.mxu0  ;;  %8474 = vst [vmem:[#allocation65_spill] sm:$0xff] %v5841_v51  ;;  %v2059_v6 = vrot.slane %v5841_v51, 1 }
 0x382   : > { %v1744_v1 = vadd.f32 %v5699_v53, %v1743_v24 }
 0x384   : > { %v1829_v26 = vmax.f32 %v1744_v1, 0.0 }
 0x386   : > { %v1896_v60 = vrot.slane %v1829_v26, 7 }
 0x388   : > { %v5844_v16 = vsel %vm1888_vm12, %v1895_v41, %v1896_v60  ;;  %v5847_v29 = vsel %vm1888_vm12, %v1896_v60, 0.0 }
 0x389   : > { %v2062_v21 = vrot.slane %v5847_v29, 1  ;;  %v1746_v32 = vpop.f32.mrf.mxu0  ;;  %v2060_v37 = vrot.slane %v5844_v16, 1 }
 0x38a   : > { %v1747_v30 = vadd.f32 %v5699_v53, %v1746_v32 }
 0x38b   : > { %v5854_v44 = vsel %vm381_vm0, %v2060_v37, %v2062_v21  ;;  %v5857_v48 = vsel %vm381_vm0, %v2059_v6, %v2060_v37 }
 0x38c   : > { %2136 = vrot.lane.b32.xlu1 %v5854_v44, %s3657_s25  ;;  %2134 = vrot.lane.b32.xlu0 %v5857_v48, %s3657_s25  ;;  %v1830_v42 = vmax.f32 %v1747_v30, 0.0 }
 0x38e   : > { %v1898_v49 = vrot.slane %v1830_v42, 7 }
 0x38f   : > { %v5863_v2 = vpop.f32.mrf.mxu3 }
 0x390   : > { %v5867_v39 = vsel %vm1888_vm12, 0.0, %v1898_v49 }
 0x391   : > { %v1749_v33 = vpop.f32.mrf.mxu0  ;;  %v2064_v9 = vrot.slane %v5867_v39, 1 }
 0x392   : > { %v1750_v7 = vadd.f32 %v5699_v53, %v1749_v33 }
 0x394   : > { %v1831_v13 = vmax.f32 %v1750_v7, 0.0 }
 0x396   : > { %v1899_v5 = vrot.slane %v1831_v13, 7 }
 0x397   : > { %v5869_v63 = vpop.f32.mrf.mxu3 }
 0x398   : > { %v5872_v58 = vsel %vm1888_vm12, %v1898_v49, %v1899_v5  ;;  %v5875_v18 = vsel %vm1888_vm12, %v1899_v5, 0.0 }
 0x399   : > { %8475 = vst [vmem:[#allocation2_spill] sm:$0xff] %v5872_v58  ;;  %v2067_v35 = vrot.slane %v5875_v18, 1  ;;  %v1752_v50 = vpop.f32.mrf.mxu0  ;;  %v2065_v20 = vrot.slane %v5872_v58, 1 }
 0x39a   : > { %v1753_v52 = vadd.f32 %v5699_v53, %v1752_v50 }
 0x39b   : > { %v5882_v25 = vsel %vm381_vm0, %v2065_v20, %v2067_v35  ;;  %v5885_v34 = vsel %vm381_vm0, %v2064_v9, %v2065_v20 }
 0x39c   : > { %8476 = vst [vmem:[#allocation111_spill] sm:$0xff] %v5882_v25  ;;  %2140 = vrot.lane.b32.xlu0 %v5882_v25, %s3657_s25  ;;  %2138 = vrot.lane.b32.xlu2 %v5885_v34, %s3657_s25  ;;  %v1832_v17 = vmax.f32 %v1753_v52, 0.0 }
 0x39e   : > { %v1901_v10 = vrot.slane %v1832_v17, 7 }
 0x39f   : > { %v1785_v11 = vpop.f32.mrf.mxu3 }
 0x3a0   : > { %v5893_v62 = vsel %vm1888_vm12, 0.0, %v1901_v10 }
 0x3a1   : > { %v1755_v61 = vpop.f32.mrf.mxu0  ;;  %v2069_v27 = vrot.slane %v5893_v62, 1 }
 0x3a2   : > { %v1756_v4 = vadd.f32 %v5699_v53, %v1755_v61 }
 0x3a4   : > { %v1833_v46 = vmax.f32 %v1756_v4, 0.0 }
 0x3a6   : > { %v1902_v8 = vrot.slane %v1833_v46, 7 }
 0x3a7   : > { %v5895_v22 = vpop.f32.mrf.mxu3 }
 0x3a8   : > { %v5898_v45 = vsel %vm1888_vm12, %v1901_v10, %v1902_v8  ;;  %v5901_v40 = vsel %vm1888_vm12, %v1902_v8, 0.0 }
 0x3a9   : > { %v2072_v47 = vrot.slane %v5901_v40, 1  ;;  %v1758_v0 = vpop.f32.mrf.mxu0  ;;  %v2070_v57 = vrot.slane %v5898_v45, 1 }
 0x3aa   : > { %v1759_v36 = vadd.f32 %v5699_v53, %v1758_v0 }
 0x3ab   : > { %v5908_v28 = vsel %vm381_vm0, %v2069_v27, %v2070_v57  ;;  %v5911_v54 = vsel %vm381_vm0, %v2070_v57, %v2072_v47 }
 0x3ac   : > { %8477 = vst [vmem:[#allocation141_spill] sm:$0xff] %v5908_v28  ;;  %2142 = vrot.lane.b32.xlu1 %v5908_v28, %s3657_s25  ;;  %2144 = vrot.lane.b32.xlu2 %v5911_v54, %s3657_s25  ;;  %v1834_v24 = vmax.f32 %v1759_v36, 0.0 }
 0x3ad   : > { %8478 = vst [vmem:[#allocation56_spill] sm:$0xff] %v5911_v54 }
 0x3ae   : > { %v1904_v26 = vrot.slane %v1834_v24, 7 }
 0x3af   : > { %v1791_v41 = vpop.f32.mrf.mxu3 }
 0x3b0   : > { %v5919_v32 = vsel %vm1888_vm12, 0.0, %v1904_v26 }
 0x3b1   : > { %v1761_v1 = vpop.f32.mrf.mxu0  ;;  %v2074_v13 = vrot.slane %v5919_v32, 1 }
 0x3b2   : > { %v1762_v60 = vadd.f32 %v5699_v53, %v1761_v1 }
 0x3b4   : > { %v1835_v21 = vmax.f32 %v1762_v60, 0.0 }
 0x3b6   : > { %v1905_v37 = vrot.slane %v1835_v21, 7 }
 0x3b7   : > { %v5921_v6 = vpop.f32.mrf.mxu3 }
 0x3b8   : > { %v5924_v30 = vsel %vm1888_vm12, %v1904_v26, %v1905_v37  ;;  %v5927_v42 = vsel %vm1888_vm12, %v1905_v37, 0.0 }
 0x3b9   : > { %v2077_v33 = vrot.slane %v5927_v42, 1  ;;  %v1764_v49 = vpop.f32.mrf.mxu0  ;;  %v2075_v7 = vrot.slane %v5924_v30, 1 }
 0x3ba   : > { %v1765_v5 = vadd.f32 %v5699_v53, %v1764_v49 }
 0x3bb   : > { %v5934_v35 = vsel %vm381_vm0, %v2075_v7, %v2077_v33  ;;  %v5937_v50 = vsel %vm381_vm0, %v2074_v13, %v2075_v7  ;;  %v1786_v33 = vadd.f32 %v5699_v53, %v1785_v11  ;;  %v1780_v7 = vadd.f32 %v5699_v53, %v5863_v2 }
 0x3bc   : > { %8479 = vst [vmem:[#allocation70_spill] sm:$0xff] %v5934_v35  ;;  %2148 = vrot.lane.b32.xlu1 %v5934_v35, %s3657_s25  ;;  %2146 = vrot.lane.b32.xlu0 %v5937_v50, %s3657_s25  ;;  %v1836_v20 = vmax.f32 %v1765_v5, 0.0  ;;  %v1783_v13 = vadd.f32 %v5699_v53, %v5869_v63 }
 0x3bd   : > { %8480 = vst [vmem:[#allocation3_spill] sm:$0xff] %v5937_v50 }
 0x3be   : > { %v1907_v17 = vrot.slane %v1836_v20, 7 }
 0x3bf   : > { %v1797_v9 = vpop.f32.mrf.mxu3 }
 0x3c0   : > { %v5945_v4 = vsel %vm1888_vm12, 0.0, %v1907_v17 }
 0x3c1   : > { %v1767_v52 = vpop.f32.mrf.mxu0  ;;  %v2079_v24 = vrot.slane %v5945_v4, 1 }
 0x3c2   : > { %v1768_v61 = vadd.f32 %v5699_v53, %v1767_v52  ;;  %v1843_v52 = vmax.f32 %v1786_v33, 0.0 }
 0x3c4   : > { %v1837_v10 = vmax.f32 %v1768_v61, 0.0  ;;  %v1841_v61 = vmax.f32 %v1780_v7, 0.0  ;;  %v1917_v11 = vrot.slane %v1843_v52, 7 }
 0x3c6   : > { %v1908_v46 = vrot.slane %v1837_v10, 7  ;;  %v1842_v10 = vmax.f32 %v1783_v13, 0.0  ;;  %v1789_v13 = vadd.f32 %v5699_v53, %v5895_v22 }
 0x3c7   : > { %v5947_v8 = vpop.f32.mrf.mxu3 }
 0x3c8   : > { %v5950_v47 = vsel %vm1888_vm12, %v1907_v17, %v1908_v46  ;;  %v5953_v0 = vsel %vm1888_vm12, %v1908_v46, 0.0  ;;  %v1916_v7 = vrot.slane %v1842_v10, 7 }
 0x3c9   : > { %v2082_v27 = vrot.slane %v5953_v0, 1  ;;  %v1770_v57 = vpop.f32.mrf.mxu0  ;;  %v2080_v36 = vrot.slane %v5950_v47, 1 }
 0x3ca   : > { %v1771_v1 = vadd.f32 %v5699_v53, %v1770_v57  ;;  %v5998_v52 = vsel %vm1888_vm12, %v1916_v7, %v1917_v11 }
 0x3cb   : > { %v5960_v26 = vsel %vm381_vm0, %v2080_v36, %v2082_v27  ;;  %v5963_v60 = vsel %vm381_vm0, %v2079_v24, %v2080_v36  ;;  %v1792_v36 = vadd.f32 %v5699_v53, %v1791_v41 }
 0x3cc   : > { %8481 = vst [vmem:[#allocation101_spill] sm:$0xff] %v5960_v26  ;;  %2152 = vrot.lane.b32.xlu0 %v5960_v26, %s3657_s25  ;;  %2150 = vrot.lane.b32.xlu2 %v5963_v60, %s3657_s25  ;;  %v1838_v21 = vmax.f32 %v1771_v1, 0.0 }
 0x3cd   : > { %8482 = vst [vmem:[#allocation140_spill] sm:$0xff] %v5963_v60 }
 0x3ce   : > { %v1910_v5 = vrot.slane %v1838_v21, 7 }
 0x3cf   : > { %v1803_v37 = vpop.f32.mrf.mxu3 }
 0x3d0   : > { %v5976_v46 = vsel %vm1888_vm12, 0.0, %v1910_v5 }
 0x3d1   : > { %v1773_v49 = vpop.f32.mrf.mxu0  ;;  %8483 = vst [vmem:[#allocation165_spill] sm:$0xff] %v5976_v46  ;;  %v2084_v21 = vrot.slane %v5976_v46, 1 }
 0x3d2   : > { %v1774_v20 = vadd.f32 %v5699_v53, %v1773_v49  ;;  %v1914_v49 = vrot.slane %v1841_v61, 7  ;;  %v1844_v61 = vmax.f32 %v1789_v13, 0.0  ;;  %v1804_v13 = vadd.f32 %v5699_v53, %v1803_v37 }
 0x3d3   : > { %v6034_v37 = vsel %vm1888_vm12, %v1917_v11, 0.0 }
 0x3d4   : > { %v1839_v17 = vmax.f32 %v1774_v20, 0.0  ;;  %v6005_v22 = vsel %vm1888_vm12, %v1914_v49, 0.0 }
 0x3d5   : > { %v2092_v15 = vrot.slane %v6005_v22, 1 }
 0x3d6   : > { %v1911_v27 = vrot.slane %v1839_v17, 7  ;;  %v1845_v17 = vmax.f32 %v1792_v36, 0.0  ;;  %v1798_v36 = vadd.f32 %v5699_v53, %v1797_v9 }
 0x3d7   : > { %v1806_v57 = vpop.f32.mrf.mxu3 }
 0x3d8   : > { %v5980_v2 = vsel %vm1888_vm12, %v1910_v5, %v1911_v27  ;;  %v5983_v63 = vsel %vm1888_vm12, %v1911_v27, 0.0 }
 0x3d9   : > { %8484 = vst [vmem:[#allocation53_spill] sm:$0xff] %v5980_v2  ;;  %v2087_v24 = vrot.slane %v5983_v63, 1  ;;  %v1776_v1 = vpop.f32.mrf.mxu0  ;;  %v2085_v33 = vrot.slane %v5980_v2, 1 }
 0x3da   : > { %v1777_v41 = vadd.f32 %v5699_v53, %v1776_v1  ;;  %v6008_v1 = vsel %vm1888_vm12, 0.0, %v1916_v7 }
 0x3db   : > { %v5992_v5 = vsel %vm381_vm0, %v2084_v21, %v2085_v33  ;;  %v5995_v20 = vsel %vm381_vm0, %v2085_v33, %v2087_v24  ;;  %v2095_v21 = vrot.slane %v5998_v52, 1  ;;  %v1920_v33 = vrot.slane %v1845_v17, 7 }
 0x3dc   : > { %8485 = vst [vmem:[#allocation115_spill] sm:$0xff] %v5992_v5  ;;  %v1840_v27 = vmax.f32 %v1777_v41, 0.0  ;;  %2154 = vrot.lane.b32.xlu1 %v5992_v5, %s3657_s25  ;;  %2156 = vrot.lane.b32.xlu2 %v5995_v20, %s3657_s25  ;;  %v1795_v17 = vadd.f32 %v5699_v53, %v5921_v6  ;;  %v2094_v9 = vrot.slane %v6008_v1, 1 }
 0x3dd   : > { %8486 = vst [vmem:[#allocation11_spill] sm:$0xff] %v5995_v20  ;;  %v1919_v20 = vrot.slane %v1844_v61, 7  ;;  %v1847_v61 = vmax.f32 %v1798_v36, 0.0 }
 0x3de   : > { %v1913_v10 = vrot.slane %v1840_v27, 7  ;;  %v6044_v6 = vsel %vm381_vm0, %v2094_v9, %v2095_v21  ;;  %v1846_v36 = vmax.f32 %v1795_v17, 0.0 }
 0x3df   : > { %v1809_v24 = vpop.f32.mrf.mxu3  ;;  %v6037_v26 = vsel %vm1888_vm12, %v1919_v20, %v1920_v33  ;;  %8490 = vst [vmem:[#allocation144_spill] sm:$0xff] %v6044_v6  ;;  %v6052_v11 = vsel %vm1888_vm12, 0.0, %v1919_v20  ;;  %v1923_v60 = vrot.slane %v1847_v61, 7 }
 0x3e0   : > { %v6013_v41 = vsel %vm1888_vm12, %v1913_v10, %v1914_v49  ;;  %v6016_v12 = vsel %vm1888_vm12, 0.0, %v1913_v10  ;;  %v1801_v49 = vadd.f32 %v5699_v53, %v5947_v8  ;;  %v1849_v8 = vmax.f32 %v1804_v13, 0.0 }
 0x3e1   : > { %8487 = vst [vmem:[#allocation67_spill] sm:$0xff] %v6016_v12  ;;  %v2090_v27 = vrot.slane %v6013_v41, 1  ;;  %v2089_v7 = vrot.slane %v6016_v12, 1  ;;  %v2099_v13 = vrot.slane %v6052_v11, 1  ;;  %v1922_v50 = vrot.slane %v1846_v36, 7 }
 0x3e2   : > { %v1926_v35 = vrot.slane %v1849_v8, 7  ;;  %v6070_v61 = vsel %vm1888_vm12, %v1923_v60, 0.0 }
 0x3e3   : > { %v6028_v10 = vsel %vm381_vm0, %v2090_v27, %v2092_v15  ;;  %v6031_v5 = vsel %vm381_vm0, %v2089_v7, %v2090_v27  ;;  %v6047_v15 = vsel %vm1888_vm12, %v1920_v33, 0.0  ;;  %v2097_v27 = vrot.slane %v6034_v37, 1 }
 0x3e4   : > { %8488 = vst [vmem:[#allocation57_spill] sm:$0xff] %v6028_v10  ;;  %2160 = vrot.lane.b32.xlu1 %v6028_v10, %s3657_s25  ;;  %2158 = vrot.lane.b32.xlu0 %v6031_v5, %s3657_s25  ;;  %v1848_v7 = vmax.f32 %v1801_v49, 0.0  ;;  %v2102_v9 = vrot.slane %v6047_v15, 1  ;;  %v1810_v33 = vadd.f32 %v5699_v53, %v1809_v24  ;;  %v6067_v54 = vsel %vm1888_vm12, %v1922_v50, %v1923_v60 }
 0x3e5   : > { %8489 = vst [vmem:[#allocation114_spill] sm:$0xff] %v6031_v5  ;;  %2162 = vrot.lane.b32.xlu2 %v6044_v6, %s3657_s25  ;;  %v2100_v5 = vrot.slane %v6037_v26, 1  ;;  %v1807_v6 = vadd.f32 %v5699_v53, %v1806_v57  ;;  %v6064_v49 = vsel %vm381_vm0, %v2095_v21, %v2097_v27  ;;  %v6085_v21 = vsel %vm1888_vm12, 0.0, %v1922_v50 }
 0x3e6   : > { %v1925_v20 = vrot.slane %v1848_v7, 7  ;;  %8492 = vst [vmem:[#allocation75_spill] sm:$0xff] %v6064_v49  ;;  %v1851_v24 = vmax.f32 %v1810_v33, 0.0  ;;  %v2107_v36 = vrot.slane %v6070_v61, 1  ;;  %v2105_v7 = vrot.slane %v6067_v54, 1 }
 0x3e7   : > { %v1812_v10 = vpop.f32.mrf.mxu3  ;;  %v6061_v17 = vsel %vm381_vm0, %v2099_v13, %v2100_v5  ;;  %8493 = vst [vmem:[#allocation77_spill] sm:$0xff] %v6067_v54  ;;  %v6077_v57 = vsel %vm381_vm0, %v2100_v5, %v2102_v9  ;;  %v1850_v60 = vmax.f32 %v1807_v6, 0.0 }
 0x3e8   : > { %8491 = vst [vmem:[#allocation158_spill] sm:$0xff] %v6061_v17  ;;  %v6080_v8 = vsel %vm1888_vm12, %v1925_v20, %v1926_v35  ;;  %v6089_v27 = vsel %vm1888_vm12, 0.0, %v1925_v20  ;;  %v1929_v33 = vrot.slane %v1851_v24, 7  ;;  %v1813_v50 = vadd.f32 %v5699_v53, %v1812_v10 }
 0x3e9   : > { %8494 = vst [vmem:[#allocation104_spill] sm:$0xff] %v6077_v57  ;;  %v2110_v9 = vrot.slane %v6080_v8, 1  ;;  %v2109_v6 = vrot.slane %v6089_v27, 1  ;;  %v6104_v24 = vsel %vm1888_vm12, %v1926_v35, 0.0 }
 0x3ea   : > { %8495 = vst [vmem:[#allocation126_spill] sm:$0xff] %v6080_v8 }
 0x3eb   : > { %8496 = vst [vmem:[#allocation143_spill] sm:$0xff] %v6089_v27  ;;  %v6114_v10 = vsel %vm381_vm0, %v2109_v6, %v2110_v9 }
 0x3ec   : > { %2166 = vrot.lane.b32.xlu1 %v6061_v17, %s3657_s25  ;;  %2164 = vrot.lane.b32.xlu0 %v6064_v49, %s3657_s25  ;;  %v2104_v17 = vrot.slane %v6085_v21, 1  ;;  %v6098_v49 = vsel %vm381_vm0, %v2105_v7, %v2107_v36  ;;  %8500 = vst [vmem:[#allocation76_spill] sm:$0xff] %v6114_v10  ;;  %v2112_v36 = vrot.slane %v6104_v24, 1 }
 0x3ed   : > { %2168 = vrot.lane.b32.xlu2 %v6077_v57, %s3657_s25  ;;  %v1928_v57 = vrot.slane %v1850_v60, 7  ;;  %8497 = vst [vmem:[#allocation153_spill] sm:$0xff] %v6098_v49  ;;  %v6117_v60 = vsel %vm1888_vm12, %v1929_v33, 0.0 }
 0x3ee   : > { %v6101_v20 = vsel %vm381_vm0, %v2104_v17, %v2105_v7  ;;  %v1852_v17 = vmax.f32 %v1813_v50, 0.0  ;;  %v6132_v25 = vsel %vm381_vm0, %v2110_v9, %v2112_v36  ;;  %v8507_v36 = vmov 0.0  }
 0x3ef   : > { %8498 = vst [vmem:[#allocation166_spill] sm:$0xff] %v6101_v20  ;;  %v6107_v28 = vsel %vm1888_vm12, %v1928_v57, %v1929_v33  ;;  %v6122_v35 = vsel %vm1888_vm12, 0.0, %v1928_v57 }
 0x3f0   : > { %v1815_v5 = vpop.f32.mrf.mxu3  ;;  %8499 = vst [vmem:[#allocation168_spill] sm:$0xff] %v6107_v28  ;;  %v2115_v7 = vrot.slane %v6107_v28, 1  ;;  %v2114_v6 = vrot.slane %v6122_v35, 1 }
 0x3f1   : > { %v1816_v13 = vadd.f32 %v5699_v53, %v1815_v5  ;;  %8501 = vst [vmem:[#allocation97_spill] sm:$0xff] %v6122_v35 }
 0x3f2   : > { %v6129_v33 = vsel %vm381_vm0, %v2114_v6, %v2115_v7  ;;  %8503 = vst [vmem:[#allocation118_spill] sm:$0xff] %v6132_v25  ;;  %v6155_v6 = vrot.slane %v8507_v36, 2  ;;  %v2225_v36 = vrot.slane %v5812_v55, 2 }
 0x3f3   : > { %v1853_v5 = vmax.f32 %v1816_v13, 0.0  ;;  %v2117_v13 = vrot.slane %v6117_v60, 1  ;;  %8502 = vst [vmem:[#allocation116_spill] sm:$0xff] %v6129_v33 }
 0x3f4   : > { %2172 = vrot.lane.b32.xlu1 %v6098_v49, %s3657_s25  ;;  %2170 = vrot.lane.b32.xlu0 %v6101_v20, %s3657_s25  ;;  %v1931_v20 = vrot.slane %v1852_v17, 7  ;;  %8508 = vst [vmem:[#allocation60_spill] sm:$0xff] %v6155_v6 }
 0x3f5   : > { %2174 = vrot.lane.b32.xlu2 %v6114_v10, %s3657_s25  ;;  %v1932_v49 = vrot.slane %v1853_v5, 7  ;;  %v6145_v5 = vsel %vm381_vm0, %v2115_v7, %v2117_v13  ;;  %v2220_v13 = vrot.slane %v5754_v59, 2 }
 0x3f6   : > { %8505 = vst [vmem:[#allocation152_spill] sm:$0xff] %v6145_v5  ;;  %v6150_v9 = vsel %vm1888_vm12, 0.0, %v1931_v20 }
 0x3f7   : > { %v6135_v57 = vsel %vm1888_vm12, %v1931_v20, %v1932_v49  ;;  %v6138_v50 = vsel %vm1888_vm12, %v1932_v49, 0.0  ;;  %8506 = vst [vmem:[#allocation167_spill] sm:$0xff] %v6150_v9  ;;  %v2222_v20 = vrot.slane %v5757_v23, 2  ;;  %v6190_v23 = vpop.permute.xlu2 %2126 }
 0x3f8   : > { %8504 = vst [vmem:[#allocation18_spill] sm:$0xff] %v6135_v57  ;;  %v2122_v17 = vrot.slane %v6138_v50, 1  ;;  %v2120_v49 = vrot.slane %v6135_v57, 1 }
 0x3f9   : > { %8513 = vst [vmem:[#allocation145_spill] sm:$0xff] %v6190_v23 }
 0x3fc   : > { %2178 = vrot.lane.b32.xlu1 %v6129_v33, %s3657_s25  ;;  %2176 = vrot.lane.b32.xlu0 %v6132_v25, %s3657_s25  ;;  %v2119_v33 = vrot.slane %v6150_v9, 1  ;;  %v6159_v25 = vsel %vm381_vm0, %v2120_v49, %v2122_v17  ;;  %v2219_v17 = vrot.slane %v5747_v31, 2 }
 0x3fd   : > { %2180 = vrot.lane.b32.xlu2 %v6145_v5, %s3657_s25  ;;  %8509 = vst [vmem:[#allocation7_spill] sm:$0xff] %v6159_v25 }
 0x3fe   : > { %v6162_v7 = vsel %vm381_vm0, %v2119_v33, %v2120_v49  ;;  %v2224_v33 = vrot.slane %v5805_v43, 2  ;;  %v6176_v49 = vsel %vm558_vm1, %v2220_v13, %v2222_v20  ;;  %v2227_v20 = vrot.slane %v5815_v19, 2 }
 0x3ff   : > { %8510 = vst [vmem:[#allocation96_spill] sm:$0xff] %v6162_v7  ;;  %v6211_v19 = vpop.permute.xlu2 %2132 }
 0x400   : > { %8511 = vst [vmem:[#allocation117_spill] sm:$0xff] %v6176_v49 }
 0x401   : > { %8515 = vst [vmem:[#allocation63_spill] sm:$0xff] %v6211_v19  ;;  %v2245_v19 = vrot.slane %v5924_v30, 2 }
 0x404   : > { %2184 = vrot.lane.b32.xlu1 %v6159_v25, %s3657_s25  ;;  %2182 = vrot.lane.b32.xlu0 %v6162_v7, %s3657_s25  ;;  %v6179_v25 = vsel %vm558_vm1, %v2219_v17, %v2220_v13  ;;  %v6182_v7 = vsel %vm558_vm1, %v2224_v33, %v2225_v36  ;;  %v2232_v13 = vrot.slane %v5847_v29, 2  ;;  %v2229_v17 = vrot.slane %v5841_v51, 2 }
 0x405   : > { %2294 = vrot.lane.b32.xlu2 %v6155_v6, %s3659_s27  ;;  %8512 = vst [vmem:[#allocation130_spill] sm:$0xff] %v6179_v25  ;;  %v2230_v6 = vrot.slane %v5844_v16, 2  ;;  %v2237_v29 = vrot.slane %v5875_v18, 2 }
 0x407   : > { %v6197_v33 = vsel %vm558_vm1, %v2229_v17, %v2230_v6  ;;  %v2235_v17 = vrot.slane %v5872_v58, 2  ;;  %v6233_v18 = vpop.permute.xlu2 %2138 }
 0x408   : > { %8519 = vst [vmem:[#allocation107_spill] sm:$0xff] %v6233_v18 }
 0x40c   : > { %2298 = vrot.lane.b32.xlu1 %v6176_v49, %s3659_s27  ;;  %2296 = vrot.lane.b32.xlu0 %v6179_v25, %s3659_s27  ;;  %v6200_v49 = vsel %vm558_vm1, %v2225_v36, %v2227_v20  ;;  %v6203_v25 = vsel %vm558_vm1, %v2230_v6, %v2232_v13  ;;  %v2240_v36 = vrot.slane %v5898_v45, 2  ;;  %v2234_v6 = vrot.slane %v5867_v39, 2 }
 0x40d   : > { %2300 = vrot.lane.b32.xlu2 %v6182_v7, %s3659_s27  ;;  %8514 = vst [vmem:[#allocation147_spill] sm:$0xff] %v6203_v25  ;;  %v2239_v20 = vrot.slane %v5893_v62, 2  ;;  %v6219_v13 = vsel %vm558_vm1, %v2235_v17, %v2237_v29  ;;  %v2242_v29 = vrot.slane %v5901_v40, 2 }
 0x40e   : > { %8516 = vst [vmem:[#allocation176_spill] sm:$0xff] %v6219_v13  ;;  %v6222_v23 = vsel %vm558_vm1, %v2234_v6, %v2235_v17  ;;  %v2247_v17 = vrot.slane %v5927_v42, 2  ;;  %v2244_v6 = vrot.slane %v5919_v32, 2  ;;  %v2252_v42 = vrot.slane %v5953_v0, 2 }
 0x40f   : > { %8517 = vst [vmem:[#allocation80_spill] sm:$0xff] %v6222_v23  ;;  %v6256_v40 = vpop.permute.xlu2 %2144 }
 0x410   : > { %8524 = vst [vmem:[#allocation169_spill] sm:$0xff] %v6256_v40  ;;  %v6280_v40 = vpop.permute.xlu0 %2128 }
 0x411   : > { %8529 = vst [vmem:[#allocation25_spill] sm:$0xff] %v6280_v40  ;;  %v2269_v40 = vrot.slane %v6052_v11, 2 }
 0x414   : > { %2304 = vrot.lane.b32.xlu1 %v6197_v33, %s3659_s27  ;;  %2302 = vrot.lane.b32.xlu0 %v6200_v49, %s3659_s27 }
 0x415   : > { %2306 = vrot.lane.b32.xlu2 %v6203_v25, %s3659_s27  ;;  %v6225_v25 = vsel %vm558_vm1, %v2239_v20, %v2240_v36  ;;  %v6239_v20 = vpop.permute.xlu1 %2124 }
 0x416   : > { %8518 = vst [vmem:[#allocation82_spill] sm:$0xff] %v6225_v25 }
 0x417   : > { %8520 = vst [vmem:[#allocation129_spill] sm:$0xff] %v6239_v20 }
 0x41c   : > { %2310 = vrot.lane.b32.xlu1 %v6219_v13, %s3659_s27  ;;  %2308 = vrot.lane.b32.xlu0 %v6222_v23, %s3659_s27  ;;  %v6242_v13 = vsel %vm558_vm1, %v2244_v6, %v2245_v19  ;;  %v6245_v23 = vsel %vm558_vm1, %v2240_v36, %v2242_v29  ;;  %v2250_v6 = vrot.slane %v5950_v47, 2  ;;  %v2255_v36 = vrot.slane %v5980_v2, 2 }
 0x41d   : > { %2312 = vrot.lane.b32.xlu2 %v6225_v25, %s3659_s27  ;;  %8521 = vst [vmem:[#allocation146_spill] sm:$0xff] %v6242_v13  ;;  %v6248_v25 = vsel %vm558_vm1, %v2245_v19, %v2247_v17  ;;  %v2249_v19 = vrot.slane %v5945_v4, 2  ;;  %v2254_v29 = vrot.slane %v5976_v46, 2  ;;  %v6276_v0 = vpop.permute.xlu1 %2130 }
 0x41e   : > { %8522 = vst [vmem:[#allocation156_spill] sm:$0xff] %v6245_v23  ;;  %v6264_v17 = vsel %vm558_vm1, %v2250_v6, %v2252_v42 }
 0x41f   : > { %8523 = vst [vmem:[#allocation85_spill] sm:$0xff] %v6248_v25  ;;  %v6267_v18 = vsel %vm558_vm1, %v2249_v19, %v2250_v6  ;;  %v6270_v20 = vsel %vm558_vm1, %v2254_v29, %v2255_v36  ;;  %v2257_v6 = vrot.slane %v5983_v63, 2  ;;  %v2260_v19 = vrot.slane %v6013_v41, 2 }
 0x420   : > { %8525 = vst [vmem:[#allocation31_spill] sm:$0xff] %v6264_v17  ;;  %v2259_v29 = vrot.slane %v6016_v12, 2 }
 0x421   : > { %8526 = vst [vmem:[#allocation81_spill] sm:$0xff] %v6267_v18 }
 0x422   : > { %8527 = vst [vmem:[#allocation12_spill] sm:$0xff] %v6270_v20 }
 0x423   : > { %8528 = vst [vmem:[#allocation100_spill] sm:$0xff] %v6276_v0  ;;  %v6292_v0 = vsel %vm558_vm1, %v2255_v36, %v2257_v6  ;;  %v2267_v36 = vrot.slane %v6034_v37, 2  ;;  %v2270_v6 = vrot.slane %v6037_v26, 2 }
 0x424   : > { %2316 = vrot.lane.b32.xlu1 %v6242_v13, %s3659_s27  ;;  %2314 = vrot.lane.b32.xlu0 %v6245_v23, %s3659_s27  ;;  %8532 = vst [vmem:[#allocation136_spill] sm:$0xff] %v6292_v0 }
 0x425   : > { %2318 = vrot.lane.b32.xlu2 %v6248_v25, %s3659_s27  ;;  %v6289_v25 = vsel %vm558_vm1, %v2259_v29, %v2260_v19  ;;  %v6301_v63 = vpop.permute.xlu1 %2136 }
 0x426   : > { %v6282_v42 = vpop.permute.xlu2 %2150  ;;  %8531 = vst [vmem:[#allocation121_spill] sm:$0xff] %v6289_v25 }
 0x427   : > { %8530 = vst [vmem:[#allocation119_spill] sm:$0xff] %v6282_v42 }
 0x428   : > { %8534 = vst [vmem:[#allocation78_spill] sm:$0xff] %v6301_v63 }
 0x42c   : > { %2322 = vrot.lane.b32.xlu1 %v6264_v17, %s3659_s27  ;;  %2320 = vrot.lane.b32.xlu0 %v6267_v18, %s3659_s27  ;;  %v2262_v17 = vrot.slane %v6005_v22, 2  ;;  %v6305_v22 = vpop.permute.xlu0 %2134 }
 0x42d   : > { %2324 = vrot.lane.b32.xlu2 %v6270_v20, %s3659_s27  ;;  %8535 = vst [vmem:[#allocation178_spill] sm:$0xff] %v6305_v22  ;;  %v6321_v22 = vsel %vm558_vm1, %v2269_v40, %v2270_v6  ;;  %v2275_v40 = vrot.slane %v6067_v54, 2 }
 0x42e   : > { %v6295_v20 = vsel %vm558_vm1, %v2260_v19, %v2262_v17  ;;  %v2265_v17 = vrot.slane %v5998_v52, 2  ;;  %v2264_v19 = vrot.slane %v6008_v1, 2 }
 0x42f   : > { %8533 = vst [vmem:[#allocation155_spill] sm:$0xff] %v6295_v20 }
 0x430   : > { %v6315_v42 = vsel %vm558_vm1, %v2265_v17, %v2267_v36  ;;  %v6318_v63 = vsel %vm558_vm1, %v2264_v19, %v2265_v17  ;;  %v2272_v36 = vrot.slane %v6047_v15, 2  ;;  %v2277_v19 = vrot.slane %v6070_v61, 2 }
 0x431   : > { %8537 = vst [vmem:[#allocation189_spill] sm:$0xff] %v6315_v42 }
 0x432   : > { %8538 = vst [vmem:[#allocation17_spill] sm:$0xff] %v6318_v63 }
 0x434   : > { %2328 = vrot.lane.b32.xlu1 %v6289_v25, %s3659_s27  ;;  %2326 = vrot.lane.b32.xlu0 %v6292_v0, %s3659_s27  ;;  %v6329_v37 = vpop.permute.xlu0 %2140 }
 0x435   : > { %2330 = vrot.lane.b32.xlu2 %v6295_v20, %s3659_s27  ;;  %8539 = vst [vmem:[#allocation43_spill] sm:$0xff] %v6329_v37  ;;  %v6346_v37 = vsel %vm558_vm1, %v2275_v40, %v2277_v19  ;;  %v2279_v19 = vrot.slane %v6089_v27, 2 }
 0x436   : > { %v6307_v29 = vpop.permute.xlu2 %2156  ;;  %8542 = vst [vmem:[#allocation9_spill] sm:$0xff] %v6346_v37 }
 0x437   : > { %8536 = vst [vmem:[#allocation187_spill] sm:$0xff] %v6307_v29  ;;  %v6331_v29 = vpop.permute.xlu1 %2142 }
 0x438   : > { %8540 = vst [vmem:[#allocation68_spill] sm:$0xff] %v6331_v29 }
 0x43c   : > { %2334 = vrot.lane.b32.xlu1 %v6315_v42, %s3659_s27  ;;  %2332 = vrot.lane.b32.xlu0 %v6318_v63, %s3659_s27  ;;  %v2274_v42 = vrot.slane %v6085_v21, 2  ;;  %v6343_v63 = vsel %vm558_vm1, %v2270_v6, %v2272_v36  ;;  %v6356_v61 = vpop.permute.xlu0 %2146  ;;  %v2280_v36 = vrot.slane %v6080_v8, 2 }
 0x43d   : > { %2336 = vrot.lane.b32.xlu2 %v6321_v22, %s3659_s27  ;;  %8544 = vst [vmem:[#allocation32_spill] sm:$0xff] %v6356_v61 }
 0x43e   : > { %v6340_v20 = vsel %vm558_vm1, %v2274_v42, %v2275_v40  ;;  %v2282_v42 = vrot.slane %v6104_v24, 2  ;;  %v2285_v40 = vrot.slane %v6107_v28, 2 }
 0x43f   : > { %v6334_v17 = vpop.permute.xlu2 %2162  ;;  %v6354_v15 = vpop.permute.xlu1 %2148 }
 0x440   : > { %8541 = vst [vmem:[#allocation64_spill] sm:$0xff] %v6334_v17  ;;  %v2284_v17 = vrot.slane %v6122_v35, 2  ;;  %v6366_v29 = vsel %vm558_vm1, %v2280_v36, %v2282_v42  ;;  %v2287_v42 = vrot.slane %v6117_v60, 2 }
 0x441   : > { %8543 = vst [vmem:[#allocation99_spill] sm:$0xff] %v6354_v15  ;;  %v2289_v15 = vrot.slane %v6150_v9, 2 }
 0x442   : > { %8546 = vst [vmem:[#allocation133_spill] sm:$0xff] %v6366_v29  ;;  %v6372_v61 = vsel %vm558_vm1, %v2284_v17, %v2285_v40  ;;  %v2290_v17 = vrot.slane %v6135_v57, 2 }
 0x443   : > { %8548 = vst [vmem:[#allocation148_spill] sm:$0xff] %v6372_v61 }
 0x444   : > { %2340 = vrot.lane.b32.xlu1 %v6340_v20, %s3659_s27  ;;  %2338 = vrot.lane.b32.xlu0 %v6343_v63, %s3659_s27  ;;  %v6380_v24 = vpop.permute.xlu0 %2152 }
 0x445   : > { %2342 = vrot.lane.b32.xlu2 %v6346_v37, %s3659_s27  ;;  %v6369_v37 = vsel %vm558_vm1, %v2279_v19, %v2280_v36  ;;  %8549 = vst [vmem:[#allocation162_spill] sm:$0xff] %v6380_v24  ;;  %v2292_v19 = vrot.slane %v6138_v50, 2 }
 0x446   : > { %8547 = vst [vmem:[#allocation44_spill] sm:$0xff] %v6369_v37 }
 0x447   : > { %v6359_v6 = vpop.permute.xlu2 %2168  ;;  %v6397_v24 = vsel %vm558_vm1, %v2290_v17, %v2292_v19 }
 0x448   : > { %8545 = vst [vmem:[#allocation120_spill] sm:$0xff] %v6359_v6 }
 0x449   : > { %8554 = vst [vmem:[#allocation38_spill] sm:$0xff] %v6397_v24 }
 0x44c   : > { %2346 = vrot.lane.b32.xlu1 %v6366_v29, %s3659_s27  ;;  %2344 = vrot.lane.b32.xlu0 %v6369_v37, %s3659_s27  ;;  %v6391_v29 = vsel %vm558_vm1, %v2289_v15, %v2290_v17  ;;  %v6394_v37 = vsel %vm558_vm1, %v2285_v40, %v2287_v42 }
 0x44d   : > { %2348 = vrot.lane.b32.xlu2 %v6372_v61, %s3659_s27  ;;  %8552 = vst [vmem:[#allocation197_spill] sm:$0xff] %v6391_v29 }
 0x44e   : > { %v6382_v6 = vpop.permute.xlu1 %2154  ;;  %8553 = vst [vmem:[#allocation24_spill] sm:$0xff] %v6394_v37 }
 0x44f   : > { %8550 = vst [vmem:[#allocation177_spill] sm:$0xff] %v6382_v6  ;;  %v6385_v36 = vpop.permute.xlu2 %2174 }
 0x450   : > { %8551 = vst [vmem:[#allocation188_spill] sm:$0xff] %v6385_v36 }
 0x454   : > { %2352 = vrot.lane.b32.xlu1 %v6391_v29, %s3659_s27  ;;  %2350 = vrot.lane.b32.xlu0 %v6394_v37, %s3659_s27 }
 0x455   : > { %2354 = vrot.lane.b32.xlu2 %v6397_v24, %s3659_s27 }
 0x456   : > { %v6405_v60 = vpop.permute.xlu1 %2160  ;;  %v6407_v50 = vpop.permute.xlu0 %2158 }
 0x457   : > { %8555 = vst [vmem:[#allocation61_spill] sm:$0xff] %v6407_v50  ;;  %v6409_v15 = vpop.permute.xlu2 %2180 }
 0x458   : > { %8556 = vst [vmem:[#allocation86_spill] sm:$0xff] %v6409_v15 }
 0x45c   : > { %2390 = vrot.lane.b32.xlu1 %v5754_v59, %s3661_s29  ;;  %2388 = vrot.lane.b32.xlu0 %v5747_v31, %s3661_s29 }
 0x45d   : > { %2392 = vrot.lane.b32.xlu2 %v5805_v43, %s3661_s29 }
 0x45e   : > { %v6417_v40 = vpop.permute.xlu1 %2166  ;;  %v6419_v42 = vpop.permute.xlu0 %2164 }
 0x45f   : > { %8557 = vst [vmem:[#allocation29_spill] sm:$0xff] %v6419_v42  ;;  %v6421_v17 = vpop.permute.xlu2 %2294 }
 0x460   : > { %8558 = vst [vmem:[#allocation88_spill] sm:$0xff] %v6421_v17 }
 0x464   : > { %2396 = vrot.lane.b32.xlu1 %v5841_v51, %s3661_s29  ;;  %2394 = vrot.lane.b32.xlu0 %v5812_v55, %s3661_s29 }
 0x465   : > { %2398 = vrot.lane.b32.xlu2 %v5844_v16, %s3661_s29 }
 0x466   : > { %v6429_v19 = vpop.permute.xlu1 %2172  ;;  %v6431_v15 = vpop.permute.xlu0 %2170 }
 0x467   : > { %8559 = vst [vmem:[#allocation19_spill] sm:$0xff] %v6431_v15  ;;  %v6433_v24 = vpop.permute.xlu2 %2300 }
 0x468   : > { %8560 = vst [vmem:[#allocation110_spill] sm:$0xff] %v6433_v24 }
 0x46c   : > { %2402 = vrot.lane.b32.xlu1 %v5872_v58, %s3661_s29  ;;  %2400 = vrot.lane.b32.xlu0 %v5867_v39, %s3661_s29 }
 0x46d   : > { %2404 = vrot.lane.b32.xlu2 %v5893_v62, %s3661_s29 }
 0x46e   : > { %v6441_v59 = vpop.permute.xlu1 %2178  ;;  %v6443_v29 = vpop.permute.xlu0 %2176 }
 0x46f   : > { %8561 = vst [vmem:[#allocation132_spill] sm:$0xff] %v6441_v59  ;;  %v6445_v31 = vpop.permute.xlu2 %2306 }
 0x470   : > { %8562 = vst [vmem:[#allocation33_spill] sm:$0xff] %v6443_v29 }
 0x471   : > { %8563 = vst [vmem:[#allocation157_spill] sm:$0xff] %v6445_v31 }
 0x474   : > { %2408 = vrot.lane.b32.xlu1 %v5919_v32, %s3661_s29  ;;  %2406 = vrot.lane.b32.xlu0 %v5898_v45, %s3661_s29 }
 0x475   : > { %2410 = vrot.lane.b32.xlu2 %v5924_v30, %s3661_s29 }
 0x476   : > { %v6453_v24 = vpop.permute.xlu1 %2184  ;;  %v6455_v37 = vpop.permute.xlu0 %2182 }
 0x477   : > { %8564 = vst [vmem:[#allocation83_spill] sm:$0xff] %v6453_v24  ;;  %v6457_v50 = vpop.permute.xlu2 %2312 }
 0x478   : > { %8565 = vst [vmem:[#allocation171_spill] sm:$0xff] %v6455_v37 }
 0x47c   : > { %2414 = vrot.lane.b32.xlu1 %v5950_v47, %s3661_s29  ;;  %2412 = vrot.lane.b32.xlu0 %v5945_v4, %s3661_s29 }
 0x47d   : > { %2416 = vrot.lane.b32.xlu2 %v5976_v46, %s3661_s29 }
 0x47e   : > { %v6465_v59 = vpop.permute.xlu1 %2298  ;;  %v6467_v29 = vpop.permute.xlu0 %2296 }
 0x47f   : > { %8566 = vst [vmem:[#allocation185_spill] sm:$0xff] %v6465_v59  ;;  %v6469_v31 = vpop.permute.xlu2 %2318 }
 0x480   : > { %8567 = vst [vmem:[#allocation196_spill] sm:$0xff] %v6467_v29 }
 0x484   : > { %2420 = vrot.lane.b32.xlu1 %v6016_v12, %s3661_s29  ;;  %2418 = vrot.lane.b32.xlu0 %v5980_v2, %s3661_s29 }
 0x485   : > { %2422 = vrot.lane.b32.xlu2 %v6013_v41, %s3661_s29 }
 0x486   : > { %v6477_v24 = vpop.permute.xlu1 %2304  ;;  %v6479_v37 = vpop.permute.xlu0 %2302 }
 0x487   : > { %8568 = vst [vmem:[#allocation26_spill] sm:$0xff] %v6477_v24  ;;  %v6481_v17 = vpop.permute.xlu2 %2324  ;;  %v1818_v24 = vpop.f32.mrf.mxu3 }
 0x488   : > { %8569 = vst [vmem:[#allocation46_spill] sm:$0xff] %v6479_v37  ;;  %v1819_v6 = vadd.f32 %v5699_v53, %v1818_v24 }
 0x489   : > { %8570 = vst [vmem:[#allocation72_spill] sm:$0xff] %v6481_v17 }
 0x48a   : > { %v1854_v42 = vmax.f32 %v1819_v6, 0.0 }
 0x48c   : > { %2426 = vrot.lane.b32.xlu1 %v5998_v52, %s3661_s29  ;;  %2424 = vrot.lane.b32.xlu0 %v6008_v1, %s3661_s29  ;;  %v1934_v24 = vrot.slane %v1854_v42, 7 }
 0x48d   : > { %2428 = vrot.lane.b32.xlu2 %v6052_v11, %s3661_s29 }
 0x48e   : > { %v6489_v59 = vpop.permute.xlu1 %2310  ;;  %v6491_v29 = vpop.permute.xlu0 %2308 }
 0x48f   : > { %8571 = vst [vmem:[#allocation79_spill] sm:$0xff] %v6489_v59  ;;  %v6493_v12 = vpop.permute.xlu2 %2330  ;;  %v1821_v59 = vpop.f32.mrf.mxu3 }
 0x490   : > { %8572 = vst [vmem:[#allocation87_spill] sm:$0xff] %v6491_v29  ;;  %v1822_v36 = vadd.f32 %v5699_v53, %v1821_v59  ;;  %v6536_v59 = vsel %vm1888_vm12, 0.0, %v1934_v24 }
 0x491   : > { %8579 = vst [vmem:[#allocation52_spill] sm:$0xff] %v6536_v59 }
 0x492   : > { %v1855_v58 = vmax.f32 %v1822_v36, 0.0 }
 0x494   : > { %2432 = vrot.lane.b32.xlu1 %v6085_v21, %s3661_s29  ;;  %2430 = vrot.lane.b32.xlu0 %v6037_v26, %s3661_s29 }
 0x495   : > { %2434 = vrot.lane.b32.xlu2 %v6067_v54, %s3661_s29  ;;  %v2485_v54 = vrot.slane %v6536_v59, 1 }
 0x496   : > { %v6501_v37 = vpop.permute.xlu1 %2316  ;;  %v6503_v2 = vpop.permute.xlu0 %2314 }
 0x497   : > { %v6505_v17 = vpop.permute.xlu2 %2336 }
 0x49c   : > { %2438 = vrot.lane.b32.xlu1 %v6080_v8, %s3661_s29  ;;  %2436 = vrot.lane.b32.xlu0 %v6089_v27, %s3661_s29  ;;  %v6531_v27 = vrot.slane %v1855_v58, 7 }
 0x49d   : > { %2440 = vrot.lane.b32.xlu2 %v6122_v35, %s3661_s29 }
 0x49e   : > { %v6513_v29 = vpop.permute.xlu1 %2322  ;;  %v6515_v46 = vpop.permute.xlu0 %2320  ;;  %v6540_v6 = vsel %vm1888_vm12, %v1934_v24, %v6531_v27 }
 0x49f   : > { %8573 = vst [vmem:[#allocation16_spill] sm:$0xff] %v6513_v29  ;;  %v6519_v15 = vpop.permute.xlu2 %2342  ;;  %v2486_v29 = vrot.slane %v6540_v6, 1 }
 0x4a0   : > { %8574 = vst [vmem:[#allocation103_spill] sm:$0xff] %v6515_v46  ;;  %v8621_v46 = vld [vmem:[#allocation118_spill] sm:$0xff] }
 0x4a1   : > { %8575 = vst [vmem:[#allocation39_spill] sm:$0xff] %v6519_v15 }
 0x4a2   : > { %8580 = vst [vmem:[#allocation170_spill] sm:$0xff] %v6540_v6 }
 0x4a4   : > { %2444 = vrot.lane.b32.xlu1 %v6150_v9, %s3661_s29  ;;  %2442 = vrot.lane.b32.xlu0 %v6107_v28, %s3661_s29  ;;  %v8590_v9 = vld [vmem:[#allocation111_spill] sm:$0xff] }
 0x4a5   : > { %2446 = vrot.lane.b32.xlu2 %v6135_v57, %s3661_s29 }
 0x4a6   : > { %v6527_v35 = vpop.permute.xlu1 %2328  ;;  %v6529_v8 = vpop.permute.xlu0 %2326 }
 0x4a7   : > { %8576 = vst [vmem:[#allocation122_spill] sm:$0xff] %v6527_v35  ;;  %v6533_v53 = vpop.permute.xlu2 %2348  ;;  %v8592_v35 = vld [vmem:[#allocation56_spill] sm:$0xff] }
 0x4a8   : > { %8577 = vst [vmem:[#allocation124_spill] sm:$0xff] %v6529_v8 }
 0x4a9   : > { %8578 = vst [vmem:[#allocation139_spill] sm:$0xff] %v6533_v53 }
 0x4ac   : > { %2448 = vrot.lane.b32.xlu0 %v6536_v59, %s3661_s29  ;;  %2450 = vrot.lane.b32.xlu1 %v6540_v6, %s3661_s29 }
 0x4ad   : > { %2490 = vrot.lane.b32.xlu2 %v5773_v3, %s3663_s6 }
 0x4ae   : > { %v6548_v58 = vpop.permute.xlu1 %2334  ;;  %v6550_v36 = vpop.permute.xlu0 %2332 }
 0x4af   : > { %8581 = vst [vmem:[#allocation180_spill] sm:$0xff] %v6548_v58  ;;  %v6552_v42 = vpop.permute.xlu2 %2354 }
 0x4b0   : > { %8582 = vst [vmem:[#allocation190_spill] sm:$0xff] %v6550_v36 }
 0x4b1   : > { %8583 = vst [vmem:[#allocation192_spill] sm:$0xff] %v6552_v42 }
 0x4b4   : > { %2492 = vrot.lane.b32.xlu0 %v5770_v38, %s3663_s6  ;;  %2494 = vrot.lane.b32.xlu1 %v5828_v14, %s3663_s6 }
 0x4b5   : > { %2496 = vrot.lane.b32.xlu2 %v5831_v56, %s3663_s6 }
 0x4b6   : > { %v6560_v24 = vpop.permute.xlu1 %2340  ;;  %v6562_v53 = vpop.permute.xlu0 %2338 }
 0x4b7   : > { %8584 = vst [vmem:[#allocation20_spill] sm:$0xff] %v6560_v24  ;;  %v6564_v3 = vpop.permute.xlu2 %2392 }
 0x4b8   : > { %8585 = vst [vmem:[#allocation51_spill] sm:$0xff] %v6562_v53 }
 0x4b9   : > { %8586 = vst [vmem:[#allocation73_spill] sm:$0xff] %v6564_v3  ;;  %v8591_v3 = vld [vmem:[#allocation141_spill] sm:$0xff] }
 0x4bc   : > { %2498 = vrot.lane.b32.xlu0 %v5857_v48, %s3663_s6  ;;  %2500 = vrot.lane.b32.xlu1 %v5854_v44, %s3663_s6 }
 0x4bd   : > { %2502 = vrot.lane.b32.xlu2 %v5885_v34, %s3663_s6 }
 0x4be   : > { %v6572_v38 = vpop.permute.xlu1 %2346  ;;  %v6574_v42 = vpop.permute.xlu0 %2344 }
 0x4bf   : > { %8587 = vst [vmem:[#allocation4_spill] sm:$0xff] %v6572_v38  ;;  %v6576_v57 = vpop.permute.xlu2 %2398  ;;  %v8596_v38 = vld [vmem:[#allocation3_spill] sm:$0xff] }
 0x4c0   : > { %8588 = vst [vmem:[#allocation69_spill] sm:$0xff] %v6574_v42  ;;  %v8598_v42 = vld [vmem:[#allocation140_spill] sm:$0xff] }
 0x4c1   : > { %8589 = vst [vmem:[#allocation14_spill] sm:$0xff] %v6576_v57  ;;  %v8597_v57 = vld [vmem:[#allocation70_spill] sm:$0xff] }
 0x4c4   : > { %2504 = vrot.lane.b32.xlu0 %v8590_v9, %s3663_s6  ;;  %2506 = vrot.lane.b32.xlu1 %v8591_v3, %s3663_s6 }
 0x4c5   : > { %2508 = vrot.lane.b32.xlu2 %v8592_v35, %s3663_s6 }
 0x4c6   : > { %v6584_v28 = vpop.permute.xlu1 %2352  ;;  %v6586_v8 = vpop.permute.xlu0 %2350 }
 0x4c7   : > { %8593 = vst [vmem:[#allocation102_spill] sm:$0xff] %v6584_v28  ;;  %v6588_v53 = vpop.permute.xlu2 %2404  ;;  %v8601_v28 = vld [vmem:[#allocation101_spill] sm:$0xff] }
 0x4c8   : > { %8594 = vst [vmem:[#allocation36_spill] sm:$0xff] %v6586_v8  ;;  %v8602_v8 = vld [vmem:[#allocation115_spill] sm:$0xff] }
 0x4c9   : > { %8595 = vst [vmem:[#allocation123_spill] sm:$0xff] %v6588_v53  ;;  %v8603_v53 = vld [vmem:[#allocation11_spill] sm:$0xff] }
 0x4cc   : > { %2510 = vrot.lane.b32.xlu0 %v8596_v38, %s3663_s6  ;;  %2512 = vrot.lane.b32.xlu1 %v8597_v57, %s3663_s6 }
 0x4cd   : > { %2514 = vrot.lane.b32.xlu2 %v8598_v42, %s3663_s6 }
 0x4ce   : > { %v6596_v24 = vpop.permute.xlu1 %2390  ;;  %v6598_v3 = vpop.permute.xlu0 %2388 }
 0x4cf   : > { %8599 = vst [vmem:[#allocation134_spill] sm:$0xff] %v6596_v24  ;;  %v6600_v35 = vpop.permute.xlu2 %2410  ;;  %v8607_v24 = vld [vmem:[#allocation114_spill] sm:$0xff] }
 0x4d0   : > { %8600 = vst [vmem:[#allocation149_spill] sm:$0xff] %v6598_v3  ;;  %v8608_v3 = vld [vmem:[#allocation57_spill] sm:$0xff] }
 0x4d4   : > { %2516 = vrot.lane.b32.xlu0 %v8601_v28, %s3663_s6  ;;  %2518 = vrot.lane.b32.xlu1 %v8602_v8, %s3663_s6  ;;  %v8609_v28 = vld [vmem:[#allocation144_spill] sm:$0xff] }
 0x4d5   : > { %2520 = vrot.lane.b32.xlu2 %v8603_v53, %s3663_s6 }
 0x4d6   : > { %v6608_v38 = vpop.permute.xlu1 %2396  ;;  %v6610_v57 = vpop.permute.xlu0 %2394 }
 0x4d7   : > { %8604 = vst [vmem:[#allocation151_spill] sm:$0xff] %v6608_v38  ;;  %v6612_v42 = vpop.permute.xlu2 %2416  ;;  %v8613_v38 = vld [vmem:[#allocation75_spill] sm:$0xff] }
 0x4d8   : > { %8605 = vst [vmem:[#allocation74_spill] sm:$0xff] %v6610_v57  ;;  %v8614_v57 = vld [vmem:[#allocation158_spill] sm:$0xff] }
 0x4d9   : > { %8606 = vst [vmem:[#allocation179_spill] sm:$0xff] %v6612_v42 }
 0x4dc   : > { %2522 = vrot.lane.b32.xlu0 %v8607_v24, %s3663_s6  ;;  %2524 = vrot.lane.b32.xlu1 %v8608_v3, %s3663_s6  ;;  %v8615_v24 = vld [vmem:[#allocation104_spill] sm:$0xff] }
 0x4dd   : > { %2526 = vrot.lane.b32.xlu2 %v8609_v28, %s3663_s6 }
 0x4de   : > { %v6620_v36 = vpop.permute.xlu1 %2402  ;;  %v6622_v8 = vpop.permute.xlu0 %2400 }
 0x4df   : > { %8610 = vst [vmem:[#allocation191_spill] sm:$0xff] %v6620_v36  ;;  %v6624_v53 = vpop.permute.xlu2 %2422  ;;  %v8618_v36 = vld [vmem:[#allocation166_spill] sm:$0xff] }
 0x4e0   : > { %8611 = vst [vmem:[#allocation198_spill] sm:$0xff] %v6622_v8  ;;  %v8619_v8 = vld [vmem:[#allocation153_spill] sm:$0xff] }
 0x4e1   : > { %8612 = vst [vmem:[#allocation28_spill] sm:$0xff] %v6624_v53 }
 0x4e4   : > { %2528 = vrot.lane.b32.xlu0 %v8613_v38, %s3663_s6  ;;  %2530 = vrot.lane.b32.xlu1 %v8614_v57, %s3663_s6 }
 0x4e5   : > { %2532 = vrot.lane.b32.xlu2 %v8615_v24, %s3663_s6 }
 0x4e6   : > { %v6632_v58 = vpop.permute.xlu1 %2408  ;;  %v6634_v3 = vpop.permute.xlu0 %2406 }
 0x4e7   : > { %8616 = vst [vmem:[#allocation37_spill] sm:$0xff] %v6634_v3  ;;  %v6636_v9 = vpop.permute.xlu2 %2428  ;;  %v8622_v3 = vld [vmem:[#allocation116_spill] sm:$0xff] }
 0x4e8   : > { %8617 = vst [vmem:[#allocation62_spill] sm:$0xff] %v6636_v9 }
 0x4ec   : > { %2534 = vrot.lane.b32.xlu0 %v8618_v36, %s3663_s6  ;;  %2536 = vrot.lane.b32.xlu1 %v8619_v8, %s3663_s6 }
 0x4ed   : > { %2538 = vrot.lane.b32.xlu2 %v6114_v10, %s3663_s6 }
 0x4ee   : > { %v6644_v53 = vpop.permute.xlu1 %2414  ;;  %v6646_v42 = vpop.permute.xlu0 %2412 }
 0x4ef   : > { %v6648_v15 = vpop.permute.xlu2 %2434 }
 0x4f0   : > { %8620 = vst [vmem:[#allocation66_spill] sm:$0xff] %v6648_v15  ;;  %v6666_v15 = vsel %vm1888_vm12, %v6531_v27, 0.0 }
 0x4f1   : > { %8625 = vst [vmem:[#allocation93_spill] sm:$0xff] %v6666_v15  ;;  %v2488_v59 = vrot.slane %v6666_v15, 1 }
 0x4f4   : > { %2540 = vrot.lane.b32.xlu0 %v8621_v46, %s3663_s6  ;;  %2542 = vrot.lane.b32.xlu1 %v8622_v3, %s3663_s6  ;;  %v8626_v46 = vld [vmem:[#allocation96_spill] sm:$0xff]  ;;  %v8627_v3 = vld [vmem:[#allocation7_spill] sm:$0xff] }
 0x4f5   : > { %2544 = vrot.lane.b32.xlu2 %v6145_v5, %s3663_s6  ;;  %v6673_v5 = vsel %vm381_vm0, %v2485_v54, %v2486_v29  ;;  %v8633_v54 = vld [vmem:[#allocation117_spill] sm:$0xff] }
 0x4f6   : > { %v6656_v9 = vpop.permute.xlu1 %2420  ;;  %v6658_v8 = vpop.permute.xlu0 %2418  ;;  %8628 = vst [vmem:[#allocation15_spill] sm:$0xff] %v6673_v5 }
 0x4f7   : > { %8623 = vst [vmem:[#allocation91_spill] sm:$0xff] %v6656_v9  ;;  %v6660_v10 = vpop.permute.xlu2 %2440 }
 0x4f8   : > { %8624 = vst [vmem:[#allocation34_spill] sm:$0xff] %v6660_v10  ;;  %v6685_v10 = vsel %vm381_vm0, %v2486_v29, %v2488_v59  ;;  %vm3191_vm0 = vcmask 523264  }
 0x4f9   : > { %8631 = vst [vmem:[#allocation150_spill] sm:$0xff] %v6685_v10 }
 0x4fc   : > { %2546 = vrot.lane.b32.xlu0 %v8626_v46, %s3663_s6  ;;  %2548 = vrot.lane.b32.xlu1 %v8627_v3, %s3663_s6  ;;  %v8632_v3 = vld [vmem:[#allocation130_spill] sm:$0xff] }
 0x4fd   : > { %2550 = vrot.lane.b32.xlu2 %v6673_v5, %s3663_s6 }
 0x4fe   : > { %v6677_v9 = vpop.permute.xlu1 %2426  ;;  %v6679_v6 = vpop.permute.xlu0 %2424 }
 0x4ff   : > { %8629 = vst [vmem:[#allocation113_spill] sm:$0xff] %v6679_v6  ;;  %v6682_v27 = vpop.permute.xlu2 %2446 }
 0x500   : > { %8630 = vst [vmem:[#allocation6_spill] sm:$0xff] %v6682_v27  ;;  %v8640_v27 = vld [vmem:[#allocation147_spill] sm:$0xff] }
 0x504   : > { %2591 = vrot.lane.b32.xlu1 %v8632_v3, %s3665_s21  ;;  %2552 = vrot.lane.b32.xlu0 %v6685_v10, %s3663_s6  ;;  %v8641_v10 = vld [vmem:[#allocation176_spill] sm:$0xff] }
 0x505   : > { %2593 = vrot.lane.b32.xlu2 %v8633_v54, %s3665_s21  ;;  %v8639_v54 = vld [vmem:[#allocation80_spill] sm:$0xff] }
 0x506   : > { %v6693_v5 = vpop.permute.xlu1 %2432  ;;  %v6695_v46 = vpop.permute.xlu0 %2430 }
 0x507   : > { %8634 = vst [vmem:[#allocation160_spill] sm:$0xff] %v6695_v46  ;;  %v6697_v15 = vpop.permute.xlu2 %2490 }
 0x508   : > { %8635 = vst [vmem:[#allocation172_spill] sm:$0xff] %v6697_v15 }
 0x50c   : > { %2597 = vrot.lane.b32.xlu1 %v6200_v49, %s3665_s21  ;;  %2595 = vrot.lane.b32.xlu0 %v6182_v7, %s3665_s21 }
 0x50d   : > { %2599 = vrot.lane.b32.xlu2 %v6197_v33, %s3665_s21 }
 0x50e   : > { %v6705_v29 = vpop.permute.xlu1 %2438  ;;  %v6707_v59 = vpop.permute.xlu0 %2436 }
 0x50f   : > { %8636 = vst [vmem:[#allocation174_spill] sm:$0xff] %v6705_v29  ;;  %v6709_v3 = vpop.permute.xlu2 %2496 }
 0x510   : > { %8637 = vst [vmem:[#allocation186_spill] sm:$0xff] %v6707_v59 }
 0x511   : > { %8638 = vst [vmem:[#allocation10_spill] sm:$0xff] %v6709_v3  ;;  %v8645_v3 = vld [vmem:[#allocation82_spill] sm:$0xff] }
 0x514   : > { %2603 = vrot.lane.b32.xlu1 %v8639_v54, %s3665_s21  ;;  %2601 = vrot.lane.b32.xlu0 %v8640_v27, %s3665_s21 }
 0x515   : > { %2605 = vrot.lane.b32.xlu2 %v8641_v10, %s3665_s21 }
 0x516   : > { %v6717_v6 = vpop.permute.xlu1 %2444  ;;  %v6719_v15 = vpop.permute.xlu0 %2442 }
 0x517   : > { %8642 = vst [vmem:[#allocation30_spill] sm:$0xff] %v6717_v6  ;;  %v6721_v46 = vpop.permute.xlu2 %2502  ;;  %v8649_v6 = vld [vmem:[#allocation85_spill] sm:$0xff] }
 0x518   : > { %8643 = vst [vmem:[#allocation54_spill] sm:$0xff] %v6719_v15  ;;  %v8650_v15 = vld [vmem:[#allocation31_spill] sm:$0xff] }
 0x519   : > { %8644 = vst [vmem:[#allocation84_spill] sm:$0xff] %v6721_v46 }
 0x51c   : > { %2609 = vrot.lane.b32.xlu1 %v6245_v23, %s3665_s21  ;;  %2607 = vrot.lane.b32.xlu0 %v8645_v3, %s3665_s21 }
 0x51d   : > { %2611 = vrot.lane.b32.xlu2 %v6242_v13, %s3665_s21 }
 0x51e   : > { %v6729_v59 = vpop.permute.xlu1 %2450  ;;  %v6731_v29 = vpop.permute.xlu0 %2448 }
 0x51f   : > { %8646 = vst [vmem:[#allocation90_spill] sm:$0xff] %v6729_v59  ;;  %v6733_v10 = vpop.permute.xlu2 %2508  ;;  %v8653_v59 = vld [vmem:[#allocation12_spill] sm:$0xff] }
 0x520   : > { %8647 = vst [vmem:[#allocation92_spill] sm:$0xff] %v6731_v29 }
 0x521   : > { %8648 = vst [vmem:[#allocation23_spill] sm:$0xff] %v6733_v10 }
 0x524   : > { %2615 = vrot.lane.b32.xlu1 %v6267_v18, %s3665_s21  ;;  %2613 = vrot.lane.b32.xlu0 %v8649_v6, %s3665_s21  ;;  %v8657_v18 = vld [vmem:[#allocation17_spill] sm:$0xff]  ;;  %v8658_v6 = vld [vmem:[#allocation155_spill] sm:$0xff] }
 0x525   : > { %2617 = vrot.lane.b32.xlu2 %v8650_v15, %s3665_s21 }
 0x526   : > { %v6741_v46 = vpop.permute.xlu1 %2494  ;;  %v6743_v23 = vpop.permute.xlu0 %2492 }
 0x527   : > { %8651 = vst [vmem:[#allocation106_spill] sm:$0xff] %v6741_v46  ;;  %v6745_v13 = vpop.permute.xlu2 %2514 }
 0x528   : > { %8652 = vst [vmem:[#allocation35_spill] sm:$0xff] %v6743_v23 }
 0x52c   : > { %2621 = vrot.lane.b32.xlu1 %v6292_v0, %s3665_s21  ;;  %2619 = vrot.lane.b32.xlu0 %v8653_v59, %s3665_s21  ;;  %v8659_v0 = vld [vmem:[#allocation189_spill] sm:$0xff] }
 0x52d   : > { %2623 = vrot.lane.b32.xlu2 %v6289_v25, %s3665_s21 }
 0x52e   : > { %v6753_v29 = vpop.permute.xlu1 %2500  ;;  %v6755_v10 = vpop.permute.xlu0 %2498 }
 0x52f   : > { %8654 = vst [vmem:[#allocation125_spill] sm:$0xff] %v6753_v29  ;;  %v6757_v15 = vpop.permute.xlu2 %2520 }
 0x530   : > { %8655 = vst [vmem:[#allocation127_spill] sm:$0xff] %v6755_v10 }
 0x531   : > { %8656 = vst [vmem:[#allocation142_spill] sm:$0xff] %v6757_v15 }
 0x534   : > { %2627 = vrot.lane.b32.xlu1 %v8657_v18, %s3665_s21  ;;  %2625 = vrot.lane.b32.xlu0 %v8658_v6, %s3665_s21 }
 0x535   : > { %2629 = vrot.lane.b32.xlu2 %v8659_v0, %s3665_s21 }
 0x536   : > { %v6765_v46 = vpop.permute.xlu1 %2506  ;;  %v6767_v59 = vpop.permute.xlu0 %2504 }
 0x537   : > { %8660 = vst [vmem:[#allocation159_spill] sm:$0xff] %v6765_v46  ;;  %v6769_v25 = vpop.permute.xlu2 %2526  ;;  %v8664_v46 = vld [vmem:[#allocation44_spill] sm:$0xff] }
 0x538   : > { %8661 = vst [vmem:[#allocation173_spill] sm:$0xff] %v6767_v59  ;;  %v8665_v59 = vld [vmem:[#allocation9_spill] sm:$0xff] }
 0x539   : > { %8662 = vst [vmem:[#allocation182_spill] sm:$0xff] %v6769_v25  ;;  %v8666_v25 = vld [vmem:[#allocation133_spill] sm:$0xff] }
 0x53c   : > { %2633 = vrot.lane.b32.xlu1 %v6343_v63, %s3665_s21  ;;  %2631 = vrot.lane.b32.xlu0 %v6321_v22, %s3665_s21 }
 0x53d   : > { %2635 = vrot.lane.b32.xlu2 %v6340_v20, %s3665_s21 }
 0x53e   : > { %v6777_v29 = vpop.permute.xlu1 %2512  ;;  %v2511_v6 = vpop.permute.xlu0 %2510 }
 0x53f   : > { %v6779_v10 = vpop.permute.xlu2 %2532 }
 0x540   : > { %8663 = vst [vmem:[#allocation193_spill] sm:$0xff] %v6779_v10 }
 0x544   : > { %2639 = vrot.lane.b32.xlu1 %v8664_v46, %s3665_s21  ;;  %2637 = vrot.lane.b32.xlu0 %v8665_v59, %s3665_s21 }
 0x545   : > { %2641 = vrot.lane.b32.xlu2 %v8666_v25, %s3665_s21 }
 0x546   : > { %v6787_v23 = vpop.permute.xlu1 %2518  ;;  %v2517_v3 = vpop.permute.xlu0 %2516 }
 0x547   : > { %v6789_v15 = vpop.permute.xlu2 %2538 }
 0x548   : > { %8667 = vst [vmem:[#allocation194_spill] sm:$0xff] %v6789_v15 }
 0x54c   : > { %2719 = vrot.lane.b32.xlu1 %v6008_v1, %s3666_s22  ;;  %2643 = vrot.lane.b32.xlu0 %v6372_v61, %s3665_s21 }
 0x54d   : > { %2812 = vrot.lane.b32.xlu2 %v8609_v28, %s3667_s23 }
 0x54e   : > { %v6797_v46 = vpop.permute.xlu1 %2524  ;;  %v6799_v10 = vpop.permute.xlu0 %2522 }
 0x54f   : > { %v6801_v25 = vpop.permute.xlu2 %2544 }
 0x550   : > { %8668 = vst [vmem:[#allocation21_spill] sm:$0xff] %v6801_v25 }
 0x554   : > { %2687 = vrot.lane.b32.xlu1 %v5805_v43, %s3666_s22  ;;  %2905 = vrot.lane.b32.xlu0 %v8657_v18, %s3668_s24 }
 0x555   : > { %2780 = vrot.lane.b32.xlu2 %v5828_v14, %s3667_s23 }
 0x556   : > { %v6809_v61 = vpop.permute.xlu1 %2530  ;;  %v2529_v15 = vpop.permute.xlu0 %2528 }
 0x557   : > { %v6811_v28 = vpop.permute.xlu2 %2550 }
 0x558   : > { %8669 = vst [vmem:[#allocation50_spill] sm:$0xff] %v6811_v28 }
 0x55c   : > { %2873 = vrot.lane.b32.xlu1 %v6182_v7, %s3668_s24  ;;  %2721 = vrot.lane.b32.xlu0 %v5998_v52, %s3666_s22 }
 0x55d   : > { %2814 = vrot.lane.b32.xlu2 %v8613_v38, %s3667_s23 }
 0x55e   : > { %v6819_v25 = vpop.permute.xlu1 %2536  ;;  %v6821_v18 = vpop.permute.xlu0 %2534 }
 0x55f   : > { %v6823_v43 = vpop.permute.xlu2 %2593 }
 0x560   : > { %8670 = vst [vmem:[#allocation89_spill] sm:$0xff] %v6823_v43 }
 0x564   : > { %2689 = vrot.lane.b32.xlu1 %v5812_v55, %s3666_s22  ;;  %2907 = vrot.lane.b32.xlu0 %v8659_v0, %s3668_s24  ;;  %v8674_v55 = vld [vmem:[#allocation68_spill] sm:$0xff] }
 0x565   : > { %2782 = vrot.lane.b32.xlu2 %v5831_v56, %s3667_s23  ;;  %v2975_v43 = vsel %vm1370_vm4, %v5893_v62, %v8674_v55 }
 0x566   : > { %v6831_v14 = vpop.permute.xlu1 %2542  ;;  %v6833_v7 = vpop.permute.xlu0 %2540 }
 0x567   : > { %v6835_v38 = vpop.permute.xlu2 %2599 }
 0x56c   : > { %2875 = vrot.lane.b32.xlu1 %v6200_v49, %s3668_s24  ;;  %2723 = vrot.lane.b32.xlu0 %v6052_v11, %s3666_s22  ;;  %v3006_v49 = vsel %vm1436_vm7, %v2975_v43, %v6457_v50 }
 0x56d   : > { %2816 = vrot.lane.b32.xlu2 %v8614_v57, %s3667_s23  ;;  %v3038_v57 = vsel %vm1502_vm8, %v3006_v49, %v6632_v58 }
 0x56e   : > { %v6843_v28 = vpop.permute.xlu1 %2548  ;;  %v6845_v0 = vpop.permute.xlu0 %2546  ;;  %v3070_v55 = vsel %vm1568_vm9, %v3038_v57, %v2511_v6 }
 0x56f   : > { %8671 = vst [vmem:[#allocation137_spill] sm:$0xff] %v6843_v28  ;;  %v6847_v56 = vpop.permute.xlu2 %2605 }
 0x570   : > { %8672 = vst [vmem:[#allocation105_spill] sm:$0xff] %v6845_v0 }
 0x571   : > { %8673 = vst [vmem:[#allocation42_spill] sm:$0xff] %v6847_v56 }
 0x574   : > { %2691 = vrot.lane.b32.xlu1 %v5841_v51, %s3666_s22  ;;  %2909 = vrot.lane.b32.xlu0 %v6321_v22, %s3668_s24  ;;  %v8675_v22 = vld [vmem:[#allocation99_spill] sm:$0xff] }
 0x575   : > { %2784 = vrot.lane.b32.xlu2 %v5857_v48, %s3667_s23  ;;  %v2978_v43 = vsel %vm1370_vm4, %v5924_v30, %v8675_v22 }
 0x576   : > { %v6862_v28 = vpop.permute.xlu1 %2591  ;;  %v6864_v0 = vpop.permute.xlu0 %2552  ;;  %v3009_v48 = vsel %vm1436_vm7, %v2978_v43, %v6469_v31  ;;  %v8676_v43 = vld [vmem:[#allocation169_spill] sm:$0xff] }
 0x577   : > { %v2612_v56 = vpop.permute.xlu2 %2611  ;;  %v3041_v50 = vsel %vm1502_vm8, %v3009_v48, %v6644_v53  ;;  %v8677_v48 = vld [vmem:[#allocation32_spill] sm:$0xff] }
 0x578   : > { %v6868_v51 = vsel %vm3092_vm13, %v3070_v55, %v2612_v56  ;;  %v3073_v56 = vsel %vm1568_vm9, %v3041_v50, %v2517_v3  ;;  %v2984_v3 = vsel %vm1370_vm4, %v6013_v41, %v6405_v60 }
 0x57c   : > { %2877 = vrot.lane.b32.xlu1 %v6197_v33, %s3668_s24  ;;  %2725 = vrot.lane.b32.xlu0 %v6037_v26, %s3666_s22 }
 0x57d   : > { %2818 = vrot.lane.b32.xlu2 %v8615_v24, %s3667_s23 }
 0x57e   : > { %v6883_v6 = vpop.permute.xlu1 %2597  ;;  %v6885_v58 = vpop.permute.xlu0 %2595 }
 0x57f   : > { %v2618_v49 = vpop.permute.xlu2 %2617 }
 0x580   : > { %v6889_v33 = vsel %vm3092_vm13, %v3073_v56, %v2618_v49 }
 0x584   : > { %2693 = vrot.lane.b32.xlu1 %v5844_v16, %s3666_s22  ;;  %2911 = vrot.lane.b32.xlu0 %v6343_v63, %s3668_s24  ;;  %v3015_v63 = vsel %vm1436_vm7, %v2984_v3, %v6493_v12  ;;  %v2976_v12 = vsel %vm1370_vm4, %v5898_v45, %v8676_v43  ;;  %v8680_v43 = vld [vmem:[#allocation77_spill] sm:$0xff] }
 0x585   : > { %2786 = vrot.lane.b32.xlu2 %v5854_v44, %s3667_s23  ;;  %v3047_v44 = vsel %vm1502_vm8, %v3015_v63, %v6677_v9  ;;  %v2987_v9 = vsel %vm1370_vm4, %v6052_v11, %v6417_v40  ;;  %v8678_v63 = vld [vmem:[#allocation119_spill] sm:$0xff] }
 0x586   : > { %v6897_v31 = vpop.permute.xlu1 %2603  ;;  %v6899_v53 = vpop.permute.xlu0 %2601  ;;  %v3079_v60 = vsel %vm1568_vm9, %v3047_v44, %v2529_v15  ;;  %v3007_v15 = vsel %vm1436_vm7, %v2976_v12, %v6503_v2  ;;  %v3018_v56 = vsel %vm1436_vm7, %v2987_v9, %v6505_v17  ;;  %v2979_v44 = vsel %vm1370_vm4, %v5945_v4, %v8678_v63  ;;  %v8682_v9 = vld [vmem:[#allocation103_spill] sm:$0xff] }
 0x587   : > { %v6901_v24 = vpop.permute.xlu2 %2623  ;;  %v3039_v49 = vsel %vm1502_vm8, %v3007_v15, %v6600_v35  ;;  %v3050_v2 = vsel %vm1502_vm8, %v3018_v56, %v6693_v5  ;;  %v3232_v5 = vld [vmem:[%s7677_s3 + $0x40] sm:$0xff]  ;;  %v2990_v12 = vsel %vm1370_vm4, %v8680_v43, %v6429_v19  ;;  %v8683_v15 = vld [vmem:[#allocation39_spill] sm:$0xff] }
 0x588   : > { %v3082_v35 = vsel %vm1568_vm9, %v3050_v2, %v6821_v18  ;;  %3615 = vmatpush.msra.mxu2 %v3232_v5  ;;  %3341 = vmatpush.msra.mxu1 %v3232_v5  ;;  %v3230_v18 = vld [vmem:[%s7677_s3 + $0x30] sm:$0xff]  ;;  %v3021_v56 = vsel %vm1436_vm7, %v2990_v12, %v8683_v15  ;;  %v8685_v2 = vld [vmem:[#allocation153_spill] sm:$0xff]  ;;  %v3225_v12 = vld [vmem:[%s7677_s3 + $0x8] sm:$0xff] }
 0x58c   : > { %2879 = vrot.lane.b32.xlu1 %v8640_v27, %s3668_s24  ;;  %2727 = vrot.lane.b32.xlu0 %v6085_v21, %s3666_s22 }
 0x58d   : > { %2820 = vrot.lane.b32.xlu2 %v8618_v36, %s3667_s23  ;;  %v2977_v36 = vsel %vm1370_vm4, %v5919_v32, %v8677_v48  ;;  %v8681_v48 = vld [vmem:[#allocation16_spill] sm:$0xff] }
 0x58e   : > { %v6916_v57 = vpop.permute.xlu1 %2609  ;;  %v6918_v55 = vpop.permute.xlu0 %2607  ;;  %v3008_v50 = vsel %vm1436_vm7, %v2977_v36, %v6501_v37 }
 0x58f   : > { %v2630_v22 = vpop.permute.xlu2 %2629  ;;  %v3040_v11 = vsel %vm1502_vm8, %v3008_v50, %v6646_v42  ;;  %v3010_v50 = vsel %vm1436_vm7, %v2979_v44, %v8682_v9 }
 0x590   : > { %v6922_v27 = vsel %vm3092_vm13, %v3079_v60, %v2630_v22  ;;  %v3072_v37 = vsel %vm1568_vm9, %v3040_v11, %v6745_v13  ;;  %v3231_v13 = vld [vmem:[%s7677_s3 + $0x38] sm:$0xff]  ;;  %v8679_v60 = vld [vmem:[#allocation162_spill] sm:$0xff] }
 0x591   : > { %3616 = vmatpush.msra.mxu2 %v3231_v13  ;;  %3342 = vmatpush.msra.mxu1 %v3231_v13  ;;  %v2980_v22 = vsel %vm1370_vm4, %v5950_v47, %v8679_v60  ;;  %v3228_v60 = vld [vmem:[%s7677_s3 + $0x20] sm:$0xff] }
 0x592   : > { %v3011_v36 = vsel %vm1436_vm7, %v2980_v22, %v8681_v48  ;;  %v8688_v22 = vld [vmem:[#allocation2_spill] sm:$0xff] }
 0x593   : > { %v3043_v19 = vsel %vm1502_vm8, %v3011_v36, %v6658_v8  ;;  %3617 = vmatpush.msra.mxu2 %v3230_v18  ;;  %3343 = vmatpush.msra.mxu1 %v3230_v18  ;;  %v3227_v18 = vld [vmem:[%s7677_s3 + $0x18] sm:$0xff] }
 0x594   : > { %2695 = vrot.lane.b32.xlu1 %v5867_v39, %s3666_s22  ;;  %2913 = vrot.lane.b32.xlu0 %v6340_v20, %s3668_s24  ;;  %v3071_v20 = vsel %vm1568_vm9, %v3039_v49, %v6777_v29  ;;  %v8684_v49 = vld [vmem:[#allocation179_spill] sm:$0xff] }
 0x595   : > { %2788 = vrot.lane.b32.xlu2 %v5885_v34, %s3667_s23  ;;  %v3042_v11 = vsel %vm1502_vm8, %v3010_v50, %v8684_v49  ;;  %v8690_v50 = vld [vmem:[#allocation64_spill] sm:$0xff] }
 0x596   : > { %v2616_v40 = vpop.permute.xlu1 %2615  ;;  %v2614_v17 = vpop.permute.xlu0 %2613  ;;  %v2985_v15 = vsel %vm1370_vm4, %v6008_v1, %v8690_v50  ;;  %v8697_v1 = vld [vmem:[#allocation160_spill] sm:$0xff] }
 0x597   : > { %v6958_v3 = vsel %vm3092_vm13, %v3072_v37, %v2616_v40  ;;  %v2636_v42 = vpop.permute.xlu2 %2635  ;;  %v6961_v34 = vsel %vm3092_vm13, %v3071_v20, %v2614_v17  ;;  %v8686_v37 = vld [vmem:[#allocation174_spill] sm:$0xff] }
 0x598   : > { %v6970_v29 = vsel %vm3092_vm13, %v3082_v35, %v2636_v42  ;;  %v3053_v20 = vsel %vm1502_vm8, %v3021_v56, %v8686_v37  ;;  %v8687_v40 = vld [vmem:[#allocation142_spill] sm:$0xff]  ;;  %v3074_v35 = vsel %vm1568_vm9, %v3042_v11, %v6787_v23  ;;  %v8691_v56 = vld [vmem:[#allocation29_spill] sm:$0xff]  ;;  %v8692_v11 = vld [vmem:[#allocation180_spill] sm:$0xff] }
 0x599   : > { %v3075_v17 = vsel %vm1568_vm9, %v3043_v19, %v8687_v40  ;;  %v3085_v8 = vsel %vm1568_vm9, %v3053_v20, %v6833_v7  ;;  %v3226_v7 = vld [vmem:[%s7677_s3 + $0x10] sm:$0xff]  ;;  %v2986_v49 = vsel %vm1370_vm4, %v5998_v52, %v8691_v56  ;;  %v8695_v20 = vld [vmem:[#allocation143_spill] sm:$0xff]  ;;  %v8696_v40 = vld [vmem:[#allocation62_spill] sm:$0xff] }
 0x59a   : > { %v3017_v19 = vsel %vm1436_vm7, %v2986_v49, %v8692_v11  ;;  %v8694_v37 = vld [vmem:[#allocation176_spill] sm:$0xff]  ;;  %v8703_v49 = vld [vmem:[#allocation51_spill] sm:$0xff] }
 0x59b   : > { %v8698_v52 = vld [vmem:[#allocation76_spill] sm:$0xff] }
 0x59c   : > { %2881 = vrot.lane.b32.xlu1 %v8639_v54, %s3668_s24  ;;  %2729 = vrot.lane.b32.xlu0 %v8680_v43, %s3666_s22  ;;  %v3229_v54 = vld [vmem:[%s7677_s3 + $0x28] sm:$0xff]  ;;  %v8702_v56 = vld [vmem:[#allocation20_spill] sm:$0xff] }
 0x59d   : > { %2822 = vrot.lane.b32.xlu2 %v8685_v2, %s3667_s23  ;;  %3618 = vmatpush.msra.mxu2 %v3229_v54  ;;  %v8689_v43 = vld [vmem:[#allocation111_spill] sm:$0xff]  ;;  %v8693_v2 = vld [vmem:[#allocation190_spill] sm:$0xff] }
 0x59e   : > { %v2622_v42 = vpop.permute.xlu1 %2621  ;;  %v2620_v5 = vpop.permute.xlu0 %2619  ;;  %3344 = vmatpush.msra.mxu1 %v3229_v54  ;;  %v3016_v54 = vsel %vm1436_vm7, %v2985_v15, %v8693_v2  ;;  %v8705_v2 = vld [vmem:[#allocation66_spill] sm:$0xff] }
 0x59f   : > { %v7012_v13 = vsel %vm3092_vm13, %v3075_v17, %v2622_v42  ;;  %v2642_v63 = vpop.permute.xlu2 %2641  ;;  %v7015_v44 = vsel %vm3092_vm13, %v3074_v35, %v2620_v5  ;;  %3619 = vmatpush.msra.mxu2 %v3228_v60  ;;  %v3048_v17 = vsel %vm1502_vm8, %v3016_v54, %v8696_v40  ;;  %v3049_v35 = vsel %vm1502_vm8, %v3017_v19, %v8697_v1  ;;  %v8699_v42 = vld [vmem:[#allocation193_spill] sm:$0xff]  ;;  %v8704_v19 = vld [vmem:[#allocation44_spill] sm:$0xff]  ;;  %v8708_v40 = vld [vmem:[#allocation194_spill] sm:$0xff] }
 0x5a0   : > { %v7021_v23 = vsel %vm3092_vm13, %v3085_v8, %v2642_v63  ;;  %3345 = vmatpush.msra.mxu1 %v3228_v60  ;;  %v3081_v5 = vsel %vm1568_vm9, %v3049_v35, %v8699_v42  ;;  %v3080_v8 = vsel %vm1568_vm9, %v3048_v17, %v6809_v61 }
 0x5a1   : > { %3620 = vmatpush.msra.mxu2 %v3227_v18 }
 0x5a2   : > { %3346 = vmatpush.msra.mxu1 %v3227_v18 }
 0x5a3   : > { %3621 = vmatpush.msra.mxu2 %v3226_v7 }
 0x5a4   : > { %2697 = vrot.lane.b32.xlu1 %v8688_v22, %s3666_s22  ;;  %2915 = vrot.lane.b32.xlu0 %v8665_v59, %s3668_s24  ;;  %v3224_v59 = vld [vmem:[%s7677_s3] sm:$0xff] }
 0x5a5   : > { %2790 = vrot.lane.b32.xlu2 %v8689_v43, %s3667_s23  ;;  %3622 = vmatpush.msra.mxu2 %v3225_v12 }
 0x5a6   : > { %v7038_v48 = vpop.permute.xlu1 %2627  ;;  %v7040_v36 = vpop.permute.xlu0 %2625  ;;  %3347 = vmatpush.msra.mxu1 %v3226_v7 }
 0x5a7   : > { %v7042_v9 = vpop.permute.xlu2 %2812  ;;  %3623 = vmatpush.msra.mxu2 %v3224_v59 }
 0x5a8   : > { %3348 = vmatpush.msra.mxu1 %v3225_v12  ;;  %v8700_v12 = vld [vmem:[#allocation120_spill] sm:$0xff] }
 0x5a9   : > { %v2988_v50 = vsel %vm1370_vm4, %v6037_v26, %v8700_v12  ;;  %v8706_v26 = vld [vmem:[#allocation186_spill] sm:$0xff] }
 0x5aa   : > { %3349 = vmatpush.msra.mxu1 %v3224_v59  ;;  %v8701_v59 = vld [vmem:[#allocation19_spill] sm:$0xff]  ;;  %v3019_v11 = vsel %vm1436_vm7, %v2988_v50, %v8703_v49  ;;  %v8711_v50 = vld [vmem:[#allocation82_spill] sm:$0xff]  ;;  %v8716_v49 = vld [vmem:[#allocation165_spill] sm:$0xff] }
 0x5ab   : > { %v2989_v15 = vsel %vm1370_vm4, %v6085_v21, %v8701_v59  ;;  %v3051_v54 = vsel %vm1502_vm8, %v3019_v11, %v8705_v2  ;;  %v8707_v21 = vld [vmem:[#allocation141_spill] sm:$0xff]  ;;  %v8713_v59 = vld [vmem:[#allocation34_spill] sm:$0xff] }
 0x5ac   : > { %2883 = vrot.lane.b32.xlu1 %v8694_v37, %s3668_s24  ;;  %2731 = vrot.lane.b32.xlu0 %v8695_v20, %s3666_s22  ;;  %v3020_v61 = vsel %vm1436_vm7, %v2989_v15, %v8702_v56  ;;  %v3083_v1 = vsel %vm1568_vm9, %v3051_v54, %v6819_v25  ;;  %v8712_v25 = vld [vmem:[#allocation126_spill] sm:$0xff]  ;;  %v8717_v54 = vld [vmem:[#allocation72_spill] sm:$0xff] }
 0x5ad   : > { %2824 = vrot.lane.b32.xlu2 %v8698_v52, %s3667_s23  ;;  %v3052_v37 = vsel %vm1502_vm8, %v3020_v61, %v8706_v26  ;;  %v8714_v56 = vld [vmem:[#allocation118_spill] sm:$0xff]  ;;  %v8715_v61 = vld [vmem:[#allocation177_spill] sm:$0xff] }
 0x5ae   : > { %v2634_v63 = vpop.permute.xlu1 %2633  ;;  %v2632_v60 = vpop.permute.xlu0 %2631  ;;  %v3084_v17 = vsel %vm1568_vm9, %v3052_v37, %v8708_v40  ;;  %v2981_v11 = vsel %vm1370_vm4, %v8716_v49, %v8715_v61  ;;  %v8718_v40 = vld [vmem:[#allocation91_spill] sm:$0xff] }
 0x5af   : > { %v7072_v18 = vsel %vm3092_vm13, %v3081_v5, %v2634_v63  ;;  %v2781_v7 = vpop.permute.xlu2 %2780  ;;  %v7075_v43 = vsel %vm3092_vm13, %v3080_v8, %v2632_v60  ;;  %v8709_v8 = vld [vmem:[#allocation188_spill] sm:$0xff]  ;;  %v8710_v60 = vld [vmem:[#allocation69_spill] sm:$0xff]  ;;  %v3012_v26 = vsel %vm1436_vm7, %v2981_v11, %v8717_v54 }
 0x5b0   : > { %v2991_v63 = vsel %vm1370_vm4, %v8695_v20, %v8709_v8  ;;  %v8720_v8 = vld [vmem:[#allocation56_spill] sm:$0xff]  ;;  %v8726_v54 = vld [vmem:[#allocation97_spill] sm:$0xff] }
 0x5b1   : > { %v3022_v12 = vsel %vm1436_vm7, %v2991_v63, %v8710_v60  ;;  %v8721_v63 = vld [vmem:[#allocation129_spill] sm:$0xff]  ;;  %v8724_v11 = vld [vmem:[#allocation172_spill] sm:$0xff] }
 0x5b2   : > { %v3054_v15 = vsel %vm1502_vm8, %v3022_v12, %v8713_v59 }
 0x5b3   : > { %v3086_v20 = vsel %vm1568_vm9, %v3054_v15, %v6831_v14 }
 0x5b4   : > { %2699 = vrot.lane.b32.xlu1 %v5893_v62, %s3666_s22  ;;  %2917 = vrot.lane.b32.xlu0 %v8704_v19, %s3668_s24 }
 0x5b5   : > { %2792 = vrot.lane.b32.xlu2 %v8707_v21, %s3667_s23 }
 0x5b6   : > { %v2640_v35 = vpop.permute.xlu1 %2639  ;;  %v2638_v62 = vpop.permute.xlu0 %2637 }
 0x5b7   : > { %v7102_v52 = vsel %vm3092_vm13, %v3084_v17, %v2640_v35  ;;  %v2815_v42 = vpop.permute.xlu2 %2814  ;;  %v7105_v5 = vsel %vm3092_vm13, %v3083_v1, %v2638_v62  ;;  %v3044_v17 = vsel %vm1502_vm8, %v3012_v26, %v8718_v40  ;;  %v8719_v62 = vld [vmem:[#allocation133_spill] sm:$0xff]  ;;  %v8727_v26 = vld [vmem:[#allocation116_spill] sm:$0xff]  ;;  %v8728_v40 = vld [vmem:[#allocation187_spill] sm:$0xff] }
 0x5b8   : > { %v3076_v1 = vsel %vm1568_vm9, %v3044_v17, %v6799_v10  ;;  %v2966_v10 = vsel %vm1370_vm4, 0.0, %v8721_v63  ;;  %v8729_v17 = vld [vmem:[#allocation53_spill] sm:$0xff] }
 0x5b9   : > { %v3109_v35 = vsel %vm3092_vm13, %v3076_v1, %v6901_v24  ;;  %v2982_v1 = vsel %vm1370_vm4, %v8729_v17, %v8728_v40 }
 0x5bc   : > { %2885 = vrot.lane.b32.xlu1 %v8711_v50, %s3668_s24  ;;  %2733 = vrot.lane.b32.xlu0 %v8712_v25, %s3666_s22  ;;  %v8722_v50 = vld [vmem:[#allocation88_spill] sm:$0xff] }
 0x5bd   : > { %2826 = vrot.lane.b32.xlu2 %v8714_v56, %s3667_s23  ;;  %v2997_v59 = vsel %vm1436_vm7, %v2966_v10, %v8722_v50  ;;  %v8723_v56 = vld [vmem:[#allocation149_spill] sm:$0xff] }
 0x5be   : > { %v2720_v19 = vpop.permute.xlu1 %2719  ;;  %v2644_v2 = vpop.permute.xlu0 %2643  ;;  %v3028_v61 = vsel %vm1502_vm8, %v2997_v59, %v8723_v56  ;;  %v8733_v56 = vld [vmem:[#allocation3_spill] sm:$0xff] }
 0x5bf   : > { %v2783_v37 = vpop.permute.xlu2 %2782  ;;  %v7128_v21 = vsel %vm3092_vm13, %v3086_v20, %v2644_v2  ;;  %v3142_v14 = vsel %vm3125_vm14, %v3109_v35, %v2720_v19  ;;  %v3060_v20 = vsel %vm1568_vm9, %v3028_v61, %v8724_v11 }
 0x5c0   : > { %v3175_v24 = vsel %vm3158_vm15, %v3142_v14, %v7042_v9  ;;  %v3093_v19 = vsel %vm3092_vm13, %v3060_v20, %v6862_v28  ;;  %v8725_v9 = vld [vmem:[#allocation156_spill] sm:$0xff] }
 0x5c1   : > { %v8730_v28 = vld [vmem:[#allocation124_spill] sm:$0xff] }
 0x5c4   : > { %2701 = vrot.lane.b32.xlu1 %v5898_v45, %s3666_s22  ;;  %2919 = vrot.lane.b32.xlu0 %v8719_v62, %s3668_s24 }
 0x5c5   : > { %2794 = vrot.lane.b32.xlu2 %v8720_v8, %s3667_s23  ;;  %v3013_v8 = vsel %vm1436_vm7, %v2982_v1, %v8730_v28 }
 0x5c6   : > { %v2688_v60 = vpop.permute.xlu1 %2687  ;;  %v2906_v12 = vpop.permute.xlu0 %2905 }
 0x5c7   : > { %v2817_v45 = vpop.permute.xlu2 %2816  ;;  %v3208_v15 = vsel %vm3191_vm0, %v3175_v24, %v2906_v12  ;;  %v3126_v2 = vsel %vm3125_vm14, %v3093_v19, %v2688_v60  ;;  %v8731_v60 = vld [vmem:[#allocation28_spill] sm:$0xff] }
 0x5c8   : > { %3591 = vmatmul.msk.f32.vlgmr.msra.gmra.mxu2 %vm3237_vm2, %v3208_v15  ;;  %v3159_v62 = vsel %vm3158_vm15, %v3126_v2, %v2781_v7  ;;  %v3045_v12 = vsel %vm1502_vm8, %v3013_v8, %v8731_v60  ;;  %v8732_v7 = vld [vmem:[#allocation148_spill] sm:$0xff]  ;;  %v8734_v2 = vld [vmem:[#allocation134_spill] sm:$0xff] }
 0x5c9   : > { %v3077_v24 = vsel %vm1568_vm9, %v3045_v12, %v6797_v46  ;;  %v8742_v12 = vld [vmem:[#allocation122_spill] sm:$0xff] }
 0x5ca   : > { %v3110_v50 = vsel %vm3092_vm13, %v3077_v24, %v7040_v36  ;;  %v3029_v36 = vsel %vm1502_vm8, %v2997_v59, %v8734_v2  ;;  %v8740_v59 = vld [vmem:[#allocation61_spill] sm:$0xff]  ;;  %v8746_v2 = vld [vmem:[#allocation70_spill] sm:$0xff] }
 0x5cc   : > { %2887 = vrot.lane.b32.xlu1 %v8725_v9, %s3668_s24  ;;  %2735 = vrot.lane.b32.xlu0 %v8726_v54, %s3666_s22  ;;  %v8735_v9 = vld [vmem:[#allocation35_spill] sm:$0xff] }
 0x5cd   : > { %2828 = vrot.lane.b32.xlu2 %v8727_v26, %s3667_s23  ;;  %v8736_v26 = vld [vmem:[#allocation89_spill] sm:$0xff] }
 0x5ce   : > { %v2874_v35 = vpop.permute.xlu1 %2873  ;;  %v2722_v14 = vpop.permute.xlu0 %2721 }
 0x5cf   : > { %v2785_v63 = vpop.permute.xlu2 %2784  ;;  %v3192_v10 = vsel %vm3191_vm0, %v3159_v62, %v2874_v35  ;;  %v3143_v15 = vsel %vm3125_vm14, %v3110_v50, %v2722_v14  ;;  %v8737_v35 = vld [vmem:[#allocation146_spill] sm:$0xff]  ;;  %v8739_v14 = vld [vmem:[#allocation152_spill] sm:$0xff]  ;;  %v8741_v62 = vld [vmem:[#allocation67_spill] sm:$0xff] }
 0x5d0   : > { %3575 = vmatmul.msk.f32.vlgmr.msra.gmra.mxu1 %vm3237_vm2, %v3192_v10  ;;  %v3176_v20 = vsel %vm3158_vm15, %v3143_v15, %v2815_v42  ;;  %v8738_v42 = vld [vmem:[#allocation168_spill] sm:$0xff]  ;;  %v2983_v28 = vsel %vm1370_vm4, %v8741_v62, %v8740_v59  ;;  %v8750_v59 = vld [vmem:[#allocation73_spill] sm:$0xff] }
 0x5d1   : > { %v3014_v24 = vsel %vm1436_vm7, %v2983_v28, %v8742_v12 }
 0x5d4   : > { %2703 = vrot.lane.b32.xlu1 %v5919_v32, %s3666_s22  ;;  %2921 = vrot.lane.b32.xlu0 %v8732_v7, %s3668_s24  ;;  %v3061_v32 = vsel %vm1568_vm9, %v3029_v36, %v8735_v9  ;;  %v8743_v7 = vld [vmem:[#allocation113_spill] sm:$0xff] }
 0x5d5   : > { %2796 = vrot.lane.b32.xlu2 %v8733_v56, %s3667_s23  ;;  %v3094_v40 = vsel %vm3092_vm13, %v3061_v32, %v8736_v26  ;;  %v3046_v56 = vsel %vm1502_vm8, %v3014_v24, %v8743_v7  ;;  %v8747_v36 = vld [vmem:[#allocation145_spill] sm:$0xff]  ;;  %v8753_v24 = vld [vmem:[#allocation167_spill] sm:$0xff] }
 0x5d6   : > { %v2690_v61 = vpop.permute.xlu1 %2689  ;;  %v2908_v11 = vpop.permute.xlu0 %2907  ;;  %v8748_v9 = vld [vmem:[#allocation5_spill] sm:$0xff] }
 0x5d7   : > { %v2819_v19 = vpop.permute.xlu2 %2818  ;;  %v3209_v46 = vsel %vm3191_vm0, %v3176_v20, %v2908_v11  ;;  %v3127_v1 = vsel %vm3125_vm14, %v3094_v40, %v2690_v61  ;;  %v8744_v61 = vld [vmem:[#allocation182_spill] sm:$0xff]  ;;  %v2967_v32 = vsel %vm1370_vm4, %v8748_v9, %v8747_v36  ;;  %v8757_v36 = vld [vmem:[#allocation112_spill] sm:$0xff] }
 0x5d8   : > { %3592 = vmatmul.msk.f32.gmra.mxu2 %vm3237_vm2, %v3209_v46  ;;  %v3160_v60 = vsel %vm3158_vm15, %v3127_v1, %v2783_v37  ;;  %v3078_v11 = vsel %vm1568_vm9, %v3046_v56, %v8744_v61  ;;  %v8745_v37 = vld [vmem:[#allocation24_spill] sm:$0xff] }
 0x5d9   : > { %v3111_v20 = vsel %vm3092_vm13, %v3078_v11, %v7038_v48  ;;  %v8749_v48 = vld [vmem:[#allocation196_spill] sm:$0xff] }
 0x5dc   : > { %2889 = vrot.lane.b32.xlu1 %v8737_v35, %s3668_s24  ;;  %2737 = vrot.lane.b32.xlu0 %v8738_v42, %s3666_s22  ;;  %v2998_v35 = vsel %vm1436_vm7, %v2967_v32, %v8749_v48  ;;  %v8759_v48 = vld [vmem:[#allocation74_spill] sm:$0xff] }
 0x5dd   : > { %2830 = vrot.lane.b32.xlu2 %v8739_v14, %s3667_s23  ;;  %v3030_v28 = vsel %vm1502_vm8, %v2998_v35, %v8750_v59 }
 0x5de   : > { %v2876_v8 = vpop.permute.xlu1 %2875  ;;  %v2724_v10 = vpop.permute.xlu0 %2723 }
 0x5df   : > { %v2787_v50 = vpop.permute.xlu2 %2786  ;;  %v3193_v15 = vsel %vm3191_vm0, %v3160_v60, %v2876_v8  ;;  %v3144_v46 = vsel %vm3125_vm14, %v3111_v20, %v2724_v10  ;;  %v8751_v8 = vld [vmem:[#allocation106_spill] sm:$0xff] }
 0x5e0   : > { %3576 = vmatmul.msk.f32.gmra.mxu1 %vm3237_vm2, %v3193_v15  ;;  %v3177_v1 = vsel %vm3158_vm15, %v3144_v46, %v2817_v45  ;;  %v3062_v10 = vsel %vm1568_vm9, %v3030_v28, %v8751_v8  ;;  %v8752_v45 = vld [vmem:[#allocation85_spill] sm:$0xff]  ;;  %v8754_v15 = vld [vmem:[#allocation96_spill] sm:$0xff] }
 0x5e1   : > { %v3095_v60 = vsel %vm3092_vm13, %v3062_v10, %v6885_v58  ;;  %v8755_v46 = vld [vmem:[#allocation197_spill] sm:$0xff]  ;;  %v8762_v8 = vld [vmem:[#allocation140_spill] sm:$0xff] }
 0x5e2   : > { %v8763_v10 = vld [vmem:[#allocation81_spill] sm:$0xff] }
 0x5e4   : > { %2705 = vrot.lane.b32.xlu1 %v5924_v30, %s3666_s22  ;;  %2923 = vrot.lane.b32.xlu0 %v8745_v37, %s3668_s24 }
 0x5e5   : > { %2798 = vrot.lane.b32.xlu2 %v8746_v2, %s3667_s23  ;;  %v8756_v2 = vld [vmem:[#allocation25_spill] sm:$0xff] }
 0x5e6   : > { %v2692_v26 = vpop.permute.xlu1 %2691  ;;  %v2910_v40 = vpop.permute.xlu0 %2909 }
 0x5e7   : > { %v2821_v14 = vpop.permute.xlu2 %2820  ;;  %v3210_v30 = vsel %vm3191_vm0, %v3177_v1, %v2910_v40  ;;  %v3128_v12 = vsel %vm3125_vm14, %v3095_v60, %v2692_v26  ;;  %v8758_v40 = vld [vmem:[#allocation185_spill] sm:$0xff] }
 0x5e8   : > { %3593 = vmatmul.msk.f32.gmra.mxu2 %vm3237_vm2, %v3210_v30  ;;  %v3161_v61 = vsel %vm3158_vm15, %v3128_v12, %v2785_v63  ;;  %v2968_v63 = vsel %vm1370_vm4, %v8757_v36, %v8756_v2 }
 0x5ec   : > { %2891 = vrot.lane.b32.xlu1 %v8752_v45, %s3668_s24  ;;  %2739 = vrot.lane.b32.xlu0 %v8753_v24, %s3666_s22 }
 0x5ed   : > { %2832 = vrot.lane.b32.xlu2 %v8754_v15, %s3667_s23 }
 0x5ee   : > { %v2878_v7 = vpop.permute.xlu1 %2877  ;;  %v2726_v56 = vpop.permute.xlu0 %2725 }
 0x5ef   : > { %v2789_v11 = vpop.permute.xlu2 %2788  ;;  %v3194_v20 = vsel %vm3191_vm0, %v3161_v61, %v2878_v7  ;;  %v3145_v58 = vsel %vm3125_vm14, %v6922_v27, %v2726_v56  ;;  %v2999_v27 = vsel %vm1436_vm7, %v2968_v63, %v8758_v40  ;;  %v8764_v56 = vld [vmem:[#allocation38_spill] sm:$0xff]  ;;  %v8765_v61 = vld [vmem:[#allocation7_spill] sm:$0xff] }
 0x5f0   : > { %3577 = vmatmul.msk.f32.gmra.mxu1 %vm3237_vm2, %v3194_v20  ;;  %v3178_v26 = vsel %vm3158_vm15, %v3145_v58, %v2819_v19  ;;  %v3031_v35 = vsel %vm1502_vm8, %v2999_v27, %v8759_v48  ;;  %v8761_v19 = vld [vmem:[#allocation18_spill] sm:$0xff]  ;;  %v8766_v20 = vld [vmem:[#allocation100_spill] sm:$0xff]  ;;  %v8767_v58 = vld [vmem:[#allocation131_spill] sm:$0xff] }
 0x5f1   : > { %v8769_v40 = vld [vmem:[#allocation151_spill] sm:$0xff] }
 0x5f4   : > { %2707 = vrot.lane.b32.xlu1 %v5945_v4, %s3666_s22  ;;  %2925 = vrot.lane.b32.xlu0 %v8755_v46, %s3668_s24 }
 0x5f5   : > { %2645 = vrot.lane.b32.xlu2 %v8745_v37, %s3665_s21  ;;  %v8760_v37 = vld [vmem:[#allocation10_spill] sm:$0xff] }
 0x5f6   : > { %v2694_v9 = vpop.permute.xlu1 %2693  ;;  %v2912_v32 = vpop.permute.xlu0 %2911  ;;  %v3063_v30 = vsel %vm1568_vm9, %v3031_v35, %v8760_v37  ;;  %v8772_v37 = vld [vmem:[#allocation52_spill] sm:$0xff] }
 0x5f7   : > { %v2823_v1 = vpop.permute.xlu2 %2822  ;;  %v3211_v4 = vsel %vm3191_vm0, %v3178_v26, %v2912_v32  ;;  %v3096_v59 = vsel %vm3092_vm13, %v3063_v30, %v6883_v6 }
 0x5f8   : > { %3594 = vmatmul.msk.f32.gmra.mxu2 %vm3237_vm2, %v3211_v4  ;;  %v3129_v28 = vsel %vm3125_vm14, %v3096_v59, %v2694_v9  ;;  %v8768_v9 = vld [vmem:[#allocation110_spill] sm:$0xff] }
 0x5f9   : > { %v3162_v45 = vsel %vm3158_vm15, %v3129_v28, %v2787_v50  ;;  %v2969_v50 = vsel %vm1370_vm4, %v8767_v58, %v8766_v20 }
 0x5fc   : > { %2741 = vrot.lane.b32.xlu1 %v8761_v19, %s3666_s22  ;;  %2800 = vrot.lane.b32.xlu0 %v8762_v8, %s3667_s23 }
 0x5fd   : > { %2893 = vrot.lane.b32.xlu2 %v8763_v10, %s3668_s24 }
 0x5fe   : > { %v2880_v60 = vpop.permute.xlu1 %2879  ;;  %v2728_v12 = vpop.permute.xlu0 %2727 }
 0x5ff   : > { %v2791_v15 = vpop.permute.xlu2 %2790  ;;  %v3195_v7 = vsel %vm3191_vm0, %v3162_v45, %v2880_v60  ;;  %v3146_v6 = vsel %vm3125_vm14, %v7075_v43, %v2728_v12  ;;  %v3000_v43 = vsel %vm1436_vm7, %v2969_v50, %v8768_v9  ;;  %v8773_v60 = vld [vmem:[#allocation170_spill] sm:$0xff]  ;;  %v2586_v12 = vrot.slane %v8772_v37, 2 }
 0x600   : > { %3578 = vmatmul.msk.f32.gmra.mxu1 %vm3237_vm2, %v3195_v7  ;;  %v3179_v63 = vsel %vm3158_vm15, %v3146_v6, %v2821_v14  ;;  %v3032_v27 = vsel %vm1502_vm8, %v3000_v43, %v8769_v40  ;;  %v8771_v14 = vld [vmem:[#allocation101_spill] sm:$0xff]  ;;  %v8775_v6 = vld [vmem:[#allocation31_spill] sm:$0xff]  ;;  %v8779_v43 = vld [vmem:[#allocation14_spill] sm:$0xff] }
 0x601   : > { %v8780_v40 = vld [vmem:[#allocation125_spill] sm:$0xff] }
 0x604   : > { %2927 = vrot.lane.b32.xlu1 %v8764_v56, %s3668_s24  ;;  %2834 = vrot.lane.b32.xlu0 %v8765_v61, %s3667_s23  ;;  %v8777_v61 = vld [vmem:[#allocation163_spill] sm:$0xff] }
 0x605   : > { %2709 = vrot.lane.b32.xlu2 %v5950_v47, %s3666_s22  ;;  %v8770_v47 = vld [vmem:[#allocation127_spill] sm:$0xff] }
 0x606   : > { %v2696_v2 = vpop.permute.xlu1 %2695  ;;  %v2914_v36 = vpop.permute.xlu0 %2913  ;;  %v3064_v4 = vsel %vm1568_vm9, %v3032_v27, %v8770_v47 }
 0x607   : > { %v2825_v32 = vpop.permute.xlu2 %2824  ;;  %v3212_v26 = vsel %vm3191_vm0, %v3179_v63, %v2914_v36  ;;  %v3097_v48 = vsel %vm3092_vm13, %v3064_v4, %v6835_v38  ;;  %v2587_v38 = vrot.slane %v8773_v60, 2  ;;  %v8778_v36 = vld [vmem:[#allocation46_spill] sm:$0xff] }
 0x608   : > { %3595 = vmatmul.msk.f32.gmra.mxu2 %vm3237_vm2, %v3212_v26  ;;  %v3130_v35 = vsel %vm3125_vm14, %v3097_v48, %v2696_v2 }
 0x609   : > { %v3163_v28 = vsel %vm3158_vm15, %v3130_v35, %v2789_v11  ;;  %v2588_v7 = vsel %vm558_vm1, %v2586_v12, %v2587_v38  ;;  %v8776_v11 = vld [vmem:[#allocation63_spill] sm:$0xff] }
 0x60a   : > { %v2970_v20 = vsel %vm1370_vm4, %v8777_v61, %v8776_v11 }
 0x60c   : > { %2802 = vrot.lane.b32.xlu1 %v8771_v14, %s3667_s23  ;;  %2647 = vrot.lane.b32.xlu0 %v8755_v46, %s3665_s21  ;;  %v8774_v46 = vld [vmem:[#allocation15_spill] sm:$0xff] }
 0x60d   : > { %2743 = vrot.lane.b32.xlu2 %v8772_v37, %s3666_s22 }
 0x60e   : > { %v2882_v30 = vpop.permute.xlu1 %2881  ;;  %v2730_v59 = vpop.permute.xlu0 %2729 }
 0x60f   : > { %v2793_v8 = vpop.permute.xlu2 %2792  ;;  %v3196_v10 = vsel %vm3191_vm0, %v3163_v28, %v2882_v30  ;;  %v3147_v45 = vsel %vm3125_vm14, %v7072_v18, %v2730_v59  ;;  %v3001_v18 = vsel %vm1436_vm7, %v2970_v20, %v8778_v36  ;;  %v8784_v59 = vld [vmem:[#allocation178_spill] sm:$0xff]  ;;  %v8785_v28 = vld [vmem:[#allocation65_spill] sm:$0xff] }
 0x610   : > { %3579 = vmatmul.msk.f32.gmra.mxu1 %vm3237_vm2, %v3196_v10  ;;  %v3180_v2 = vsel %vm3158_vm15, %v3147_v45, %v2823_v1  ;;  %v3033_v26 = vsel %vm1502_vm8, %v3001_v18, %v8779_v43  ;;  %v8781_v1 = vld [vmem:[#allocation115_spill] sm:$0xff] }
 0x611   : > { %v3065_v27 = vsel %vm1568_vm9, %v3033_v26, %v8780_v40 }
 0x612   : > { %v3098_v47 = vsel %vm3092_vm13, %v3065_v27, %v6899_v53 }
 0x614   : > { %2836 = vrot.lane.b32.xlu1 %v8774_v46, %s3667_s23  ;;  %2895 = vrot.lane.b32.xlu0 %v8775_v6, %s3668_s24  ;;  %v8786_v46 = vld [vmem:[#allocation93_spill] sm:$0xff] }
 0x615   : > { %2929 = vrot.lane.b32.xlu2 %v2588_v7, %s3668_s24  ;;  %v2589_v6 = vrot.slane %v8786_v46, 2 }
 0x616   : > { %v2698_v58 = vpop.permute.xlu1 %2697  ;;  %v2916_v50 = vpop.permute.xlu0 %2915 }
 0x617   : > { %v2827_v63 = vpop.permute.xlu2 %2826  ;;  %v3213_v9 = vsel %vm3191_vm0, %v3180_v2, %v2916_v50  ;;  %v3131_v4 = vsel %vm3125_vm14, %v3098_v47, %v2698_v58  ;;  %v8789_v50 = vld [vmem:[#allocation84_spill] sm:$0xff]  ;;  %v2590_v18 = vsel %vm558_vm1, %v2587_v38, %v2589_v6  ;;  %v8790_v38 = vmov 0.0   ;;  %v8793_v47 = vld [vmem:[#allocation78_spill] sm:$0xff] }
 0x618   : > { %3596 = vmatmul.msk.f32.gmra.mxu2 %vm3237_vm2, %v3213_v9  ;;  %v3164_v14 = vsel %vm3158_vm15, %v3131_v4, %v2791_v15  ;;  %v2971_v15 = vsel %vm1370_vm4, %v8785_v28, %v8784_v59  ;;  %v8797_v28 = vld [vmem:[#allocation42_spill] sm:$0xff] }
 0x61c   : > { %2649 = vrot.lane.b32.xlu1 %v8764_v56, %s3665_s21  ;;  %2711 = vrot.lane.b32.xlu0 %v8716_v49, %s3666_s22  ;;  %v8782_v56 = vld [vmem:[#allocation12_spill] sm:$0xff]  ;;  %v8783_v49 = vld [vmem:[#allocation150_spill] sm:$0xff] }
 0x61d   : > { %2804 = vrot.lane.b32.xlu2 %v8781_v1, %s3667_s23 }
 0x61e   : > { %v2884_v48 = vpop.permute.xlu1 %2883  ;;  %v2732_v35 = vpop.permute.xlu0 %2731 }
 0x61f   : > { %v2795_v37 = vpop.permute.xlu2 %2794  ;;  %v3197_v30 = vsel %vm3191_vm0, %v3164_v14, %v2884_v48  ;;  %v3148_v53 = vsel %vm3125_vm14, %v6970_v29, %v2732_v35  ;;  %v8787_v29 = vld [vmem:[#allocation26_spill] sm:$0xff]  ;;  %v8794_v35 = vld [vmem:[#allocation157_spill] sm:$0xff] }
 0x620   : > { %3580 = vmatmul.msk.f32.gmra.mxu1 %vm3237_vm2, %v3197_v30  ;;  %v3181_v45 = vsel %vm3158_vm15, %v3148_v53, %v2825_v32  ;;  %v3002_v11 = vsel %vm1436_vm7, %v2971_v15, %v8787_v29  ;;  %v8795_v53 = vld [vmem:[#allocation191_spill] sm:$0xff] }
 0x624   : > { %2897 = vrot.lane.b32.xlu1 %v8782_v56, %s3668_s24  ;;  %2745 = vrot.lane.b32.xlu0 %v8773_v60, %s3666_s22  ;;  %v8788_v60 = vld [vmem:[#allocation198_spill] sm:$0xff] }
 0x625   : > { %2838 = vrot.lane.b32.xlu2 %v8783_v49, %s3667_s23  ;;  %v3034_v58 = vsel %vm1502_vm8, %v3002_v11, %v8788_v60  ;;  %v8796_v49 = vld [vmem:[#allocation173_spill] sm:$0xff]  ;;  %v8802_v60 = vld [vmem:[#allocation107_spill] sm:$0xff] }
 0x626   : > { %v2700_v10 = vpop.permute.xlu1 %2699  ;;  %v2918_v12 = vpop.permute.xlu0 %2917  ;;  %v3066_v2 = vsel %vm1568_vm9, %v3034_v58, %v8789_v50 }
 0x627   : > { %v2829_v61 = vpop.permute.xlu2 %2828  ;;  %v3214_v20 = vsel %vm3191_vm0, %v3181_v45, %v2918_v12  ;;  %v3099_v36 = vsel %vm3092_vm13, %v3066_v2, %v6897_v31 }
 0x628   : > { %3597 = vmatmul.msk.f32.gmra.mxu2 %vm3237_vm2, %v3214_v20  ;;  %v3132_v32 = vsel %vm3125_vm14, %v3099_v36, %v2700_v10  ;;  %v8799_v10 = vld [vmem:[#allocation71_spill] sm:$0xff]  ;;  %v8800_v20 = vld [vmem:[#allocation114_spill] sm:$0xff] }
 0x629   : > { %v3165_v26 = vsel %vm3158_vm15, %v3132_v32, %v2793_v8  ;;  %v2972_v8 = vsel %vm1370_vm4, %v5844_v16, %v8793_v47  ;;  %v8803_v36 = vld [vmem:[#allocation87_spill] sm:$0xff] }
 0x62c   : > { %2713 = vrot.lane.b32.xlu1 %v8729_v17, %s3666_s22  ;;  %2931 = vrot.lane.b32.xlu0 %v2590_v18, %s3668_s24  ;;  %v8791_v17 = vld [vmem:[#allocation11_spill] sm:$0xff] }
 0x62d   : > { %2651 = vrot.lane.b32.xlu2 %v2588_v7, %s3665_s21  ;;  %v8792_v7 = vld [vmem:[#allocation136_spill] sm:$0xff] }
 0x62e   : > { %v2886_v9 = vpop.permute.xlu1 %2885  ;;  %v2734_v43 = vpop.permute.xlu0 %2733 }
 0x62f   : > { %v2797_v40 = vpop.permute.xlu2 %2796  ;;  %v3198_v27 = vsel %vm3191_vm0, %v3165_v26, %v2886_v9  ;;  %v3149_v31 = vsel %vm3125_vm14, %v7105_v5, %v2734_v43  ;;  %v3003_v5 = vsel %vm1436_vm7, %v2972_v8, %v8794_v35  ;;  %v8804_v43 = vld [vmem:[#allocation123_spill] sm:$0xff] }
 0x630   : > { %3581 = vmatmul.msk.f32.gmra.mxu1 %vm3237_vm2, %v3198_v27  ;;  %v3182_v48 = vsel %vm3158_vm15, %v3149_v31, %v2827_v63  ;;  %v3035_v56 = vsel %vm1502_vm8, %v3003_v5, %v8795_v53  ;;  %v8798_v63 = vld [vmem:[#allocation60_spill] sm:$0xff]  ;;  %v8805_v26 = vld [vmem:[#allocation159_spill] sm:$0xff] }
 0x631   : > { %v3067_v59 = vsel %vm1568_vm9, %v3035_v56, %v8796_v49 }
 0x632   : > { %v3100_v16 = vsel %vm3092_vm13, %v3067_v59, %v8797_v28 }
 0x634   : > { %2747 = vrot.lane.b32.xlu1 %v8790_v38, %s3666_s22  ;;  %2806 = vrot.lane.b32.xlu0 %v8791_v17, %s3667_s23 }
 0x635   : > { %2899 = vrot.lane.b32.xlu2 %v8792_v7, %s3668_s24  ;;  %v8806_v7 = vld [vmem:[#allocation57_spill] sm:$0xff] }
 0x636   : > { %v2702_v4 = vpop.permute.xlu1 %2701  ;;  %v2920_v1 = vpop.permute.xlu0 %2919 }
 0x637   : > { %v2831_v14 = vpop.permute.xlu2 %2830  ;;  %v3215_v30 = vsel %vm3191_vm0, %v3182_v48, %v2920_v1  ;;  %v3133_v15 = vsel %vm3125_vm14, %v3100_v16, %v2702_v4 }
 0x638   : > { %3598 = vmatmul.msk.f32.gmra.mxu2 %vm3237_vm2, %v3215_v30  ;;  %v3166_v46 = vsel %vm3158_vm15, %v3133_v15, %v2795_v37  ;;  %v2973_v37 = vsel %vm1370_vm4, %v5867_v39, %v8802_v60  ;;  %v7429_v39 = vld [vmem:[%s7678_s4] ss:$0 sm:$0xff]  ;;  %v8808_v30 = vld [vmem:[#allocation43_spill] sm:$0xff]  ;;  %v8810_v15 = vld [vmem:[#allocation37_spill] sm:$0xff] }
 0x639   : > { %v3004_v32 = vsel %vm1436_vm7, %v2973_v37, %v8803_v36  ;;  %v2974_v53 = vsel %vm1370_vm4, %v8688_v22, %v8808_v30 }
 0x63c   : > { %2933 = vrot.lane.b32.xlu1 %v8798_v63, %s3668_s24  ;;  %2840 = vrot.lane.b32.xlu0 %v8799_v10, %s3667_s23 }
 0x63d   : > { %2715 = vrot.lane.b32.xlu2 %v8741_v62, %s3666_s22  ;;  %v8801_v62 = vld [vmem:[#allocation121_spill] sm:$0xff] }
 0x63e   : > { %v2888_v12 = vpop.permute.xlu1 %2887  ;;  %v2736_v45 = vpop.permute.xlu0 %2735 }
 0x63f   : > { %v2799_v6 = vpop.permute.xlu2 %2798  ;;  %v3199_v29 = vsel %vm3191_vm0, %v3166_v46, %v2888_v12  ;;  %v3150_v11 = vsel %vm3125_vm14, %v7102_v52, %v2736_v45 }
 0x640   : > { %3582 = vmatmul.msk.f32.gmra.mxu1 %vm3237_vm2, %v3199_v29  ;;  %v3183_v2 = vsel %vm3158_vm15, %v3150_v11, %v2829_v61 }
 0x644   : > { %2808 = vrot.lane.b32.xlu1 %v8800_v20, %s3667_s23  ;;  %2653 = vrot.lane.b32.xlu0 %v2590_v18, %s3665_s21  ;;  %v3036_v18 = vsel %vm1502_vm8, %v3004_v32, %v8804_v43 }
 0x645   : > { %2901 = vrot.lane.b32.xlu2 %v8801_v62, %s3668_s24  ;;  %v3068_v61 = vsel %vm1568_vm9, %v3036_v18, %v8805_v26 }
 0x646   : > { %v2704_v58 = vpop.permute.xlu1 %2703  ;;  %v2922_v50 = vpop.permute.xlu0 %2921  ;;  %v3101_v27 = vsel %vm3092_vm13, %v3068_v61, %v6918_v55  ;;  %v8807_v55 = vld [vmem:[#allocation155_spill] sm:$0xff] }
 0x647   : > { %v2833_v52 = vpop.permute.xlu2 %2832  ;;  %v3216_v9 = vsel %vm3191_vm0, %v3183_v2, %v2922_v50  ;;  %v3134_v31 = vsel %vm3125_vm14, %v3101_v27, %v2704_v58 }
 0x648   : > { %3599 = vmatmul.msk.f32.gmra.mxu2 %vm3237_vm2, %v3216_v9  ;;  %v3167_v48 = vsel %vm3158_vm15, %v3134_v31, %v2797_v40  ;;  %v8809_v40 = vld [vmem:[#allocation79_spill] sm:$0xff] }
 0x649   : > { %v3005_v28 = vsel %vm1436_vm7, %v2974_v53, %v8809_v40 }
 0x64a   : > { %v3037_v63 = vsel %vm1502_vm8, %v3005_v28, %v8810_v15 }
 0x64b   : > { %v3399_v38 = vpop.f32.mrf.mxu2 }
 0x64c   : > { %v3400_v17 = vadd.f32 %v7429_v39, %v3399_v38  ;;  %2810 = vrot.lane.b32.xlu1 %v8806_v7, %s3667_s23  ;;  %2717 = vrot.lane.b32.xlu0 %v6013_v41, %s3666_s22  ;;  %v8812_v38 = vld [vmem:[#allocation33_spill] sm:$0xff] }
 0x64d   : > { %2903 = vrot.lane.b32.xlu2 %v8807_v55, %s3668_s24  ;;  %v3351_v47 = vpop.f32.mrf.mxu1  ;;  %v8814_v55 = vld [vmem:[#allocation54_spill] sm:$0xff] }
 0x64e   : > { %3463 = vst.msk [vmem:[%s7439_s28 + $0x80] sm:$0xff] %vm1370_vm4, %v3400_v17  ;;  %v3352_v8 = vadd.f32 %v7429_v39, %v3351_v47  ;;  %v2890_v4 = vpop.permute.xlu1 %2889  ;;  %v2738_v1 = vpop.permute.xlu0 %2737  ;;  %v2992_v17 = vsel %vm1370_vm4, %v8712_v25, %v8812_v38 }
 0x64f   : > { %v3200_v35 = vsel %vm3191_vm0, %v3167_v48, %v2890_v4  ;;  %v2646_v5 = vpop.permute.xlu2 %2645  ;;  %v3151_v41 = vsel %vm3125_vm14, %v7021_v23, %v2738_v1  ;;  %v8811_v23 = vld [vmem:[#allocation23_spill] sm:$0xff] }
 0x650   : > { %3447 = vst.msk [vmem:[%s7439_s28] sm:$0xff] %vm1370_vm4, %v3352_v8  ;;  %3583 = vmatmul.msk.f32.gmra.mxu1 %vm3237_vm2, %v3200_v35  ;;  %v3184_v59 = vsel %vm3158_vm15, %v3151_v41, %v2831_v14  ;;  %v3069_v10 = vsel %vm1568_vm9, %v3037_v63, %v8811_v23  ;;  %v8815_v8 = vld [vmem:[#allocation21_spill] sm:$0xff]  ;;  %v8817_v63 = vld [vmem:[#allocation139_spill] sm:$0xff] }
 0x651   : > { %v3102_v22 = vsel %vm3092_vm13, %v3069_v10, %v6916_v57  ;;  %v8818_v10 = vld [vmem:[#allocation30_spill] sm:$0xff] }
 0x656   : > { %v2706_v56 = vpop.permute.xlu1 %2705  ;;  %v2924_v49 = vpop.permute.xlu0 %2923 }
 0x657   : > { %v3217_v16 = vsel %vm3191_vm0, %v3184_v59, %v2924_v49  ;;  %v3135_v12 = vsel %vm3125_vm14, %v3102_v22, %v2706_v56  ;;  %v2894_v14 = vpop.permute.xlu2 %2893 }
 0x658   : > { %3600 = vmatmul.msk.f32.gmra.mxu2 %vm3237_vm2, %v3217_v16  ;;  %v3168_v60 = vsel %vm3158_vm15, %v3135_v12, %v2799_v6  ;;  %v8816_v16 = vld [vmem:[#allocation132_spill] sm:$0xff]  ;;  %v8819_v12 = vld [vmem:[#allocation105_spill] sm:$0xff] }
 0x659   : > { %v2993_v15 = vsel %vm1370_vm4, %v8726_v54, %v8816_v16  ;;  %v8825_v16 = vld [vmem:[#allocation102_spill] sm:$0xff] }
 0x65a   : > { %v3024_v23 = vsel %vm1436_vm7, %v2993_v15, %v8817_v63  ;;  %v8826_v63 = vld [vmem:[#allocation92_spill] sm:$0xff] }
 0x65b   : > { %v3402_v45 = vpop.f32.mrf.mxu2  ;;  %v3056_v22 = vsel %vm1502_vm8, %v3024_v23, %v8818_v10 }
 0x65c   : > { %v3403_v46 = vadd.f32 %v7429_v39, %v3402_v45 }
 0x65d   : > { %v3354_v29 = vpop.f32.mrf.mxu1 }
 0x65e   : > { %3464 = vst.msk [vmem:[%s7439_s28 + $0x88] sm:$0xff] %vm1370_vm4, %v3403_v46  ;;  %v3355_v11 = vadd.f32 %v7429_v39, %v3354_v29  ;;  %v2892_v20 = vpop.permute.xlu1 %2891  ;;  %v2740_v62 = vpop.permute.xlu0 %2739 }
 0x65f   : > { %v3201_v37 = vsel %vm3191_vm0, %v3168_v60, %v2892_v20  ;;  %v3152_v57 = vsel %vm3125_vm14, %v7128_v21, %v2740_v62  ;;  %v2710_v58 = vpop.permute.xlu2 %2709 }
 0x660   : > { %3448 = vst.msk [vmem:[%s7439_s28 + $0x8] sm:$0xff] %vm1370_vm4, %v3355_v11  ;;  %3584 = vmatmul.msk.f32.gmra.mxu1 %vm3237_vm2, %v3201_v37  ;;  %v3185_v36 = vsel %vm3158_vm15, %v3152_v57, %v2833_v52  ;;  %v3137_v29 = vsel %vm3125_vm14, %v6961_v34, %v2710_v58 }
 0x666   : > { %v2708_v50 = vpop.permute.xlu1 %2707  ;;  %v2926_v2 = vpop.permute.xlu0 %2925 }
 0x667   : > { %v3218_v32 = vsel %vm3191_vm0, %v3185_v36, %v2926_v2  ;;  %v3136_v18 = vsel %vm3125_vm14, %v6868_v51, %v2708_v50  ;;  %v2744_v27 = vpop.permute.xlu2 %2743  ;;  %v8813_v51 = vld [vmem:[#allocation4_spill] sm:$0xff] }
 0x668   : > { %3601 = vmatmul.msk.f32.gmra.mxu2 %vm3237_vm2, %v3218_v32  ;;  %v3023_v7 = vsel %vm1436_vm7, %v2992_v17, %v8813_v51  ;;  %v8822_v17 = vld [vmem:[#allocation6_spill] sm:$0xff] }
 0x669   : > { %v3055_v47 = vsel %vm1502_vm8, %v3023_v7, %v8814_v55 }
 0x66a   : > { %v3087_v4 = vsel %vm1568_vm9, %v3055_v47, %v8815_v8 }
 0x66b   : > { %v3405_v6 = vpop.f32.mrf.mxu2  ;;  %v3120_v1 = vsel %vm3092_vm13, %v3087_v4, %v2646_v5 }
 0x66c   : > { %v3406_v9 = vadd.f32 %v7429_v39, %v3405_v6 }
 0x66d   : > { %v3357_v43 = vpop.f32.mrf.mxu1 }
 0x66e   : > { %3465 = vst.msk [vmem:[%s7439_s28 + $0x90] sm:$0xff] %vm1370_vm4, %v3406_v9  ;;  %v3358_v21 = vadd.f32 %v7429_v39, %v3357_v43  ;;  %v2742_v26 = vpop.permute.xlu1 %2741  ;;  %v2801_v61 = vpop.permute.xlu0 %2800  ;;  %v8820_v43 = vld [vmem:[#allocation86_spill] sm:$0xff] }
 0x66f   : > { %v3169_v52 = vsel %vm3158_vm15, %v3136_v18, %v2801_v61  ;;  %v3153_v48 = vsel %vm3125_vm14, %v3120_v1, %v2742_v26  ;;  %v2930_v53 = vpop.permute.xlu2 %2929  ;;  %v2994_v18 = vsel %vm1370_vm4, %v8738_v42, %v8820_v43 }
 0x670   : > { %3449 = vst.msk [vmem:[%s7439_s28 + $0x10] sm:$0xff] %vm1370_vm4, %v3358_v21  ;;  %v3202_v31 = vsel %vm3191_vm0, %v3169_v52, %v2894_v14  ;;  %v3088_v14 = vsel %vm1568_vm9, %v3056_v22, %v8819_v12  ;;  %v8827_v22 = vld [vmem:[#allocation50_spill] sm:$0xff] }
 0x671   : > { %3585 = vmatmul.msk.f32.gmra.mxu1 %vm3237_vm2, %v3202_v31 }
 0x676   : > { %v2928_v35 = vpop.permute.xlu1 %2927  ;;  %v2835_v41 = vpop.permute.xlu0 %2834 }
 0x677   : > { %v3186_v25 = vsel %vm3158_vm15, %v3153_v48, %v2835_v41  ;;  %v2805_v45 = vpop.permute.xlu2 %2804 }
 0x678   : > { %v3219_v30 = vsel %vm3191_vm0, %v3186_v25, %v2928_v35 }
 0x679   : > { %3602 = vmatmul.msk.f32.gmra.mxu2 %vm3237_vm2, %v3219_v30 }
 0x67b   : > { %v3408_v56 = vpop.f32.mrf.mxu2 }
 0x67c   : > { %v3409_v49 = vadd.f32 %v7429_v39, %v3408_v56 }
 0x67d   : > { %v3360_v59 = vpop.f32.mrf.mxu1 }
 0x67e   : > { %3466 = vst.msk [vmem:[%s7439_s28 + $0x98] sm:$0xff] %vm1370_vm4, %v3409_v49  ;;  %v3361_v5 = vadd.f32 %v7429_v39, %v3360_v59  ;;  %v2803_v40 = vpop.permute.xlu1 %2802  ;;  %v2648_v28 = vpop.permute.xlu0 %2647 }
 0x67f   : > { %v3121_v46 = vsel %vm3092_vm13, %v3088_v14, %v2648_v28  ;;  %v3170_v54 = vsel %vm3158_vm15, %v3137_v29, %v2803_v40  ;;  %v2839_v58 = vpop.permute.xlu2 %2838  ;;  %v8824_v40 = vld [vmem:[#allocation171_spill] sm:$0xff] }
 0x680   : > { %3450 = vst.msk [vmem:[%s7439_s28 + $0x18] sm:$0xff] %vm1370_vm4, %v3361_v5  ;;  %v3154_v20 = vsel %vm3125_vm14, %v3121_v46, %v2744_v27  ;;  %v8821_v27 = vld [vmem:[#allocation36_spill] sm:$0xff]  ;;  %v2995_v28 = vsel %vm1370_vm4, %v8753_v24, %v8824_v40 }
 0x681   : > { %v3025_v52 = vsel %vm1436_vm7, %v2994_v18, %v8821_v27  ;;  %v3026_v15 = vsel %vm1436_vm7, %v2995_v28, %v8825_v16 }
 0x682   : > { %v3057_v51 = vsel %vm1502_vm8, %v3025_v52, %v8822_v17 }
 0x686   : > { %v2837_v11 = vpop.permute.xlu1 %2836  ;;  %v2896_v62 = vpop.permute.xlu0 %2895 }
 0x687   : > { %v3187_v60 = vsel %vm3158_vm15, %v3154_v20, %v2837_v11  ;;  %v3203_v37 = vsel %vm3191_vm0, %v3170_v54, %v2896_v62  ;;  %v2652_v31 = vpop.permute.xlu2 %2651 }
 0x688   : > { %3586 = vmatmul.msk.f32.gmra.mxu1 %vm3237_vm2, %v3203_v37  ;;  %v3220_v57 = vsel %vm3191_vm0, %v3187_v60, %v2930_v53  ;;  %v8828_v60 = vld [vmem:[#allocation83_spill] sm:$0xff] }
 0x689   : > { %3603 = vmatmul.msk.f32.gmra.mxu2 %vm3237_vm2, %v3220_v57  ;;  %v2996_v37 = vsel %vm1370_vm4, %v8761_v19, %v8828_v60  ;;  %v8829_v57 = vld [vmem:[#allocation192_spill] sm:$0xff] }
 0x68b   : > { %v3411_v50 = vpop.f32.mrf.mxu2 }
 0x68c   : > { %v3412_v34 = vadd.f32 %v7429_v39, %v3411_v50  ;;  %v3027_v50 = vsel %vm1436_vm7, %v2996_v37, %v8829_v57 }
 0x68d   : > { %v3363_v2 = vpop.f32.mrf.mxu1 }
 0x68e   : > { %3467 = vst.msk [vmem:[%s7439_s28 + $0xa0] sm:$0xff] %vm1370_vm4, %v3412_v34  ;;  %v3364_v36 = vadd.f32 %v7429_v39, %v3363_v2  ;;  %v2650_v32 = vpop.permute.xlu1 %2649  ;;  %v2712_v6 = vpop.permute.xlu0 %2711  ;;  %v8830_v34 = vld [vmem:[#allocation90_spill] sm:$0xff] }
 0x68f   : > { %v3138_v9 = vsel %vm3125_vm14, %v6958_v3, %v2712_v6  ;;  %v8823_v3 = vld [vmem:[#allocation137_spill] sm:$0xff]  ;;  %v2900_v30 = vpop.permute.xlu2 %2899 }
 0x690   : > { %3451 = vst.msk [vmem:[%s7439_s28 + $0x20] sm:$0xff] %vm1370_vm4, %v3364_v36  ;;  %v3171_v61 = vsel %vm3158_vm15, %v3138_v9, %v2805_v45  ;;  %v3089_v7 = vsel %vm1568_vm9, %v3057_v51, %v8823_v3 }
 0x691   : > { %v3122_v42 = vsel %vm3092_vm13, %v3089_v7, %v2650_v32 }
 0x696   : > { %v2898_v21 = vpop.permute.xlu1 %2897  ;;  %v2746_v26 = vpop.permute.xlu0 %2745 }
 0x697   : > { %v3204_v38 = vsel %vm3191_vm0, %v3171_v61, %v2898_v21  ;;  %v3155_v55 = vsel %vm3125_vm14, %v3122_v42, %v2746_v26  ;;  %v2716_v23 = vpop.permute.xlu2 %2715 }
 0x698   : > { %3587 = vmatmul.msk.f32.gmra.mxu1 %vm3237_vm2, %v3204_v38  ;;  %v3188_v41 = vsel %vm3158_vm15, %v3155_v55, %v2839_v58  ;;  %v3059_v58 = vsel %vm1502_vm8, %v3027_v50, %v8830_v34  ;;  %v3140_v32 = vsel %vm3125_vm14, %v7015_v44, %v2716_v23 }
 0x699   : > { %v3091_v36 = vsel %vm1568_vm9, %v3059_v58, %v6864_v0 }
 0x69b   : > { %v3414_v47 = vpop.f32.mrf.mxu2 }
 0x69c   : > { %v3415_v8 = vadd.f32 %v7429_v39, %v3414_v47 }
 0x69d   : > { %v3366_v4 = vpop.f32.mrf.mxu1 }
 0x69e   : > { %3468 = vst.msk [vmem:[%s7439_s28 + $0xa8] sm:$0xff] %vm1370_vm4, %v3415_v8  ;;  %v3367_v1 = vadd.f32 %v7429_v39, %v3366_v4  ;;  %v2714_v48 = vpop.permute.xlu1 %2713  ;;  %v2932_v35 = vpop.permute.xlu0 %2931 }
 0x69f   : > { %v3221_v25 = vsel %vm3191_vm0, %v3188_v41, %v2932_v35  ;;  %v3139_v53 = vsel %vm3125_vm14, %v6889_v33, %v2714_v48  ;;  %v3058_v33 = vsel %vm1502_vm8, %v3026_v15, %v8826_v63  ;;  %v2902_v2 = vpop.permute.xlu2 %2901 }
 0x6a0   : > { %3452 = vst.msk [vmem:[%s7439_s28 + $0x28] sm:$0xff] %vm1370_vm4, %v3367_v1  ;;  %3604 = vmatmul.msk.f32.gmra.mxu2 %vm3237_vm2, %v3221_v25  ;;  %v3090_v12 = vsel %vm1568_vm9, %v3058_v33, %v8827_v22 }
 0x6a1   : > { %v3123_v45 = vsel %vm3092_vm13, %v3090_v12, %v2652_v31 }
 0x6a6   : > { %v2748_v56 = vpop.permute.xlu1 %2747  ;;  %v2807_v49 = vpop.permute.xlu0 %2806 }
 0x6a7   : > { %v3172_v59 = vsel %vm3158_vm15, %v3139_v53, %v2807_v49  ;;  %v3156_v24 = vsel %vm3125_vm14, %v3123_v45, %v2748_v56  ;;  %v2904_v51 = vpop.permute.xlu2 %2903 }
 0x6a8   : > { %v3205_v5 = vsel %vm3191_vm0, %v3172_v59, %v2900_v30 }
 0x6a9   : > { %3588 = vmatmul.msk.f32.gmra.mxu1 %vm3237_vm2, %v3205_v5 }
 0x6ab   : > { %v3417_v10 = vpop.f32.mrf.mxu2 }
 0x6ac   : > { %v3418_v14 = vadd.f32 %v7429_v39, %v3417_v10 }
 0x6ad   : > { %v3369_v46 = vpop.f32.mrf.mxu1 }
 0x6ae   : > { %3469 = vst.msk [vmem:[%s7439_s28 + $0xb0] sm:$0xff] %vm1370_vm4, %v3418_v14  ;;  %v3370_v29 = vadd.f32 %v7429_v39, %v3369_v46  ;;  %v2934_v54 = vpop.permute.xlu1 %2933  ;;  %v2841_v11 = vpop.permute.xlu0 %2840 }
 0x6af   : > { %v3189_v20 = vsel %vm3158_vm15, %v3156_v24, %v2841_v11 }
 0x6b0   : > { %3453 = vst.msk [vmem:[%s7439_s28 + $0x30] sm:$0xff] %vm1370_vm4, %v3370_v29  ;;  %v3222_v62 = vsel %vm3191_vm0, %v3189_v20, %v2934_v54 }
 0x6b1   : > { %3605 = vmatmul.msk.f32.gmra.mxu2 %vm3237_vm2, %v3222_v62 }
 0x6b6   : > { %v2809_v6 = vpop.permute.xlu1 %2808  ;;  %v2654_v9 = vpop.permute.xlu0 %2653 }
 0x6b7   : > { %v3173_v43 = vsel %vm3158_vm15, %v3140_v32, %v2809_v6  ;;  %v3124_v19 = vsel %vm3092_vm13, %v3091_v36, %v2654_v9 }
 0x6b8   : > { %v3157_v18 = vsel %vm3125_vm14, %v3124_v19, %v2748_v56  ;;  %v3206_v21 = vsel %vm3191_vm0, %v3173_v43, %v2902_v2 }
 0x6b9   : > { %3589 = vmatmul.msk.f32.gmra.mxu1 %vm3237_vm2, %v3206_v21  ;;  %v3190_v26 = vsel %vm3158_vm15, %v3157_v18, %v2841_v11 }
 0x6ba   : > { %v3223_v0 = vsel %vm3191_vm0, %v3190_v26, %v2934_v54 }
 0x6bb   : > { %v3420_v61 = vpop.f32.mrf.mxu2  ;;  %3606 = vmatmul.msk.f32.gmra.mxu2 %vm3237_vm2, %v3223_v0 }
 0x6bc   : > { %v3421_v44 = vadd.f32 %v7429_v39, %v3420_v61 }
 0x6bd   : > { %v3372_v27 = vpop.f32.mrf.mxu1 }
 0x6be   : > { %3470 = vst.msk [vmem:[%s7439_s28 + $0xb8] sm:$0xff] %vm1370_vm4, %v3421_v44  ;;  %v3373_v52 = vadd.f32 %v7429_v39, %v3372_v27  ;;  %v2811_v31 = vpop.permute.xlu1 %2810  ;;  %v2718_v38 = vpop.permute.xlu0 %2717 }
 0x6bf   : > { %v3141_v17 = vsel %vm3125_vm14, %v7012_v13, %v2718_v38 }
 0x6c0   : > { %3454 = vst.msk [vmem:[%s7439_s28 + $0x38] sm:$0xff] %vm1370_vm4, %v3373_v52  ;;  %v3174_v3 = vsel %vm3158_vm15, %v3141_v17, %v2811_v31 }
 0x6c1   : > { %v3207_v7 = vsel %vm3191_vm0, %v3174_v3, %v2904_v51 }
 0x6c2   : > { %3590 = vmatmul.msk.f32.gmra.mxu1 %vm3237_vm2, %v3207_v7 }
 0x6cb   : > { %v3423_v42 = vpop.f32.mrf.mxu2 }
 0x6cc   : > { %v3424_v55 = vadd.f32 %v7429_v39, %v3423_v42 }
 0x6cd   : > { %v3375_v47 = vpop.f32.mrf.mxu1 }
 0x6ce   : > { %3471 = vst.msk [vmem:[%s7439_s28 + $0xc0] sm:$0xff] %vm1370_vm4, %v3424_v55  ;;  %v3376_v13 = vadd.f32 %v7429_v39, %v3375_v47 }
 0x6d0   : > { %3455 = vst.msk [vmem:[%s7439_s28 + $0x40] sm:$0xff] %vm1370_vm4, %v3376_v13 }
 0x6db   : > { %v3426_v8 = vpop.f32.mrf.mxu2 }
 0x6dc   : > { %v3427_v4 = vadd.f32 %v7429_v39, %v3426_v8 }
 0x6dd   : > { %v3378_v1 = vpop.f32.mrf.mxu1 }
 0x6de   : > { %3472 = vst.msk [vmem:[%s7439_s28 + $0xc8] sm:$0xff] %vm1370_vm4, %v3427_v4  ;;  %v3379_v48 = vadd.f32 %v7429_v39, %v3378_v1 }
 0x6e0   : > { %3456 = vst.msk [vmem:[%s7439_s28 + $0x48] sm:$0xff] %vm1370_vm4, %v3379_v48 }
 0x6eb   : > { %v3429_v35 = vpop.f32.mrf.mxu2 }
 0x6ec   : > { %v3430_v41 = vadd.f32 %v7429_v39, %v3429_v35 }
 0x6ee   : > { %3473 = vst.msk [vmem:[%s7439_s28 + $0xd0] sm:$0xff] %vm1370_vm4, %v3430_v41  ;;  %v3381_v25 = vpop.f32.mrf.mxu1 }
 0x6ef   : > { %v3382_v30 = vadd.f32 %v7429_v39, %v3381_v25 }
 0x6f1   : > { %3457 = vst.msk [vmem:[%s7439_s28 + $0x50] sm:$0xff] %vm1370_vm4, %v3382_v30 }
 0x6fc   : > { %v3432_v53 = vpop.f32.mrf.mxu2 }
 0x6fd   : > { %v3433_v56 = vadd.f32 %v7429_v39, %v3432_v53 }
 0x6ff   : > { %3474 = vst.msk [vmem:[%s7439_s28 + $0xd8] sm:$0xff] %vm1370_vm4, %v3433_v56 }
 0x705   : > { %v3384_v49 = vpop.f32.mrf.mxu1 }
 0x706   : > { %v3385_v59 = vadd.f32 %v7429_v39, %v3384_v49 }
 0x708   : > { %3458 = vst.msk [vmem:[%s7439_s28 + $0x58] sm:$0xff] %vm1370_vm4, %v3385_v59 }
 0x70c   : > { %v3435_v5 = vpop.f32.mrf.mxu2 }
 0x70d   : > { %v3436_v40 = vadd.f32 %v7429_v39, %v3435_v5 }
 0x70f   : > { %3475 = vst.msk [vmem:[%s7439_s28 + $0xe0] sm:$0xff] %vm1370_vm4, %v3436_v40 }
 0x715   : > { %v3387_v28 = vpop.f32.mrf.mxu1 }
 0x716   : > { %v3388_v16 = vadd.f32 %v7429_v39, %v3387_v28 }
 0x718   : > { %3459 = vst.msk [vmem:[%s7439_s28 + $0x60] sm:$0xff] %vm1370_vm4, %v3388_v16 }
 0x723   : > { %v3438_v15 = vpop.f32.mrf.mxu2 }
 0x724   : > { %v3439_v63 = vadd.f32 %v7429_v39, %v3438_v15 }
 0x726   : > { %3476 = vst.msk [vmem:[%s7439_s28 + $0xe8] sm:$0xff] %vm1370_vm4, %v3439_v63  ;;  %v3390_v33 = vpop.f32.mrf.mxu1 }
 0x727   : > { %v3391_v23 = vadd.f32 %v7429_v39, %v3390_v33 }
 0x729   : > { %3460 = vst.msk [vmem:[%s7439_s28 + $0x68] sm:$0xff] %vm1370_vm4, %v3391_v23 }
 0x734   : > { %v3441_v10 = vpop.f32.mrf.mxu2 }
 0x735   : > { %v3442_v22 = vadd.f32 %v7429_v39, %v3441_v10 }
 0x736   : > { %v3393_v12 = vpop.f32.mrf.mxu1 }
 0x737   : > { %3477 = vst.msk [vmem:[%s7439_s28 + $0xf0] sm:$0xff] %vm1370_vm4, %v3442_v22  ;;  %v3394_v14 = vadd.f32 %v7429_v39, %v3393_v12 }
 0x739   : > { %3461 = vst.msk [vmem:[%s7439_s28 + $0x70] sm:$0xff] %vm1370_vm4, %v3394_v14 }
 0x73e   : > { %v3444_v45 = vpop.f32.mrf.mxu2 }
 0x73f   : > { %v3445_v46 = vadd.f32 %v7429_v39, %v3444_v45  ;;  %v3396_v24 = vpop.f32.mrf.mxu1 }
 0x740   : > { %v3397_v29 = vadd.f32 %v7429_v39, %v3396_v24 }
 0x741   : > { %3478 = vst.msk [vmem:[%s7439_s28 + $0xf8] sm:$0xff] %vm1370_vm4, %v3445_v46 }
 0x742   : > { %3462 = vst.msk [vmem:[%s7439_s28 + $0x78] sm:$0xff] %vm1370_vm4, %v3397_v29 }
 0x743 PF: > { %s15_s18 = sadd.s32 1, %s3654_s18  }
 0x744   : > { %p12_p4 = scmp.ge.s32.totalorder %s15_s18, 4  }
 0x746   :  { %14 = sbr.rel (!%p12_p4) target bundleno = 1 (0x1), region = 70 }

</bundles_post_ra>
